<compile_context>
chip_gen: v7x
topology: tpu7x:2x2x1
jax: 0.10.0
libtpu: 0.0.40
codegen_flags: <defaults>
</compile_context>

<pallas_src>
import jax
import jax.numpy as jnp
from jax import lax
from jax.experimental import pallas as pl
from jax.experimental.pallas import tpu as pltpu

BN_EPS = 1e-5
LANE = 128
VMEM_LIMIT = 32 * 1024 * 1024  # safe default on v5e/v6e/v7x (raise for big tiles on v5e/v6e)


def _round_up(x, m):
    return (x + m - 1) // m * m


# ---------------------------------------------------------------------------
# Pass A kernel: y1 = conv3x3(x) via VMEM im2col + ONE MXU matmul (K = 9*cp),
# plus per-image BN partial statistics. Grid: one image per step, parallel.
# ---------------------------------------------------------------------------
def _conv3x3_stats_kernel(x_ref, w_ref, y_ref, sum_ref, ssq_ref,
                          halo_ref, col_ref):
    _, h, w, cp = x_ref.shape
    hw = h * w

    # In-kernel 1-px zero halo (no XLA pad). Interior is fully rewritten each
    # step, so only the border needs zeroing.
    halo_ref[1:h + 1, 1:w + 1, :] = x_ref[0]
    zrow = jnp.zeros((1, w + 2, cp), jnp.float32)
    zcol = jnp.zeros((h + 2, 1, cp), jnp.float32)
    halo_ref[0:1, :, :] = zrow
    halo_ref[h + 1:h + 2, :, :] = zrow
    halo_ref[:, 0:1, :] = zcol
    halo_ref[:, w + 1:w + 2, :] = zcol

    # im2col: nine shifted slabs, each a lane-aligned 128-wide bf16 store.
    for dh in range(3):
        for dw in range(3):
            t = dh * 3 + dw
            col_ref[:, t * cp:(t + 1) * cp] = (
                halo_ref[dh:dh + h, dw:dw + w, :]
                .reshape(hw, cp).astype(jnp.bfloat16))

    # single MXU matmul, contraction depth K = 9*cp (>= 256).
    acc = jnp.dot(col_ref[...], w_ref[...], preferred_element_type=jnp.float32)
    y_ref[0] = acc.astype(y_ref.dtype)

    # per-image BN partial stats (reduced to whole-batch stats outside).
    sum_ref[0] = jnp.sum(acc, axis=0, keepdims=True)
    ssq_ref[0] = jnp.sum(acc * acc, axis=0, keepdims=True)


def _conv3x3_stats(x_cp, w_flat):
    n, h, w, cp = x_cp.shape
    hw = h * w
    k = 9 * cp
    return pl.pallas_call(
        _conv3x3_stats_kernel,
        grid=(n,),
        in_specs=[
            pl.BlockSpec((1, h, w, cp), lambda i: (i, 0, 0, 0)),
            pl.BlockSpec((k, cp), lambda i: (0, 0)),
        ],
        out_specs=(
            pl.BlockSpec((1, hw, cp), lambda i: (i, 0, 0)),
            pl.BlockSpec((1, 1, cp), lambda i: (i, 0, 0)),
            pl.BlockSpec((1, 1, cp), lambda i: (i, 0, 0)),
        ),
        out_shape=(
            jax.ShapeDtypeStruct((n, hw, cp), jnp.bfloat16),
            jax.ShapeDtypeStruct((n, 1, cp), jnp.float32),
            jax.ShapeDtypeStruct((n, 1, cp), jnp.float32),
        ),
        scratch_shapes=[
            pltpu.VMEM((h + 2, w + 2, cp), jnp.float32),   # halo
            pltpu.VMEM((hw, k), jnp.bfloat16),             # im2col
        ],
        compiler_params=pltpu.CompilerParams(
            dimension_semantics=("parallel",),
            vmem_limit_bytes=VMEM_LIMIT),
    )(x_cp, w_flat)


# ---------------------------------------------------------------------------
# Pass B kernel: h1 = relu(y1*scale1 + shift1) (BN1 folded to an FMA) written
# straight into the VMEM halo scratch (h1 never touches HBM), then
# y2 = conv3x3(h1) via im2col + one matmul, plus conv2's BN partial stats.
# ---------------------------------------------------------------------------
def _bnrelu_conv3x3_stats_kernel(y1_ref, scale_ref, shift_ref, w_ref,
                                 y2_ref, sum_ref, ssq_ref, halo_ref, col_ref):
    hp2, wp2, cp = halo_ref.shape
    h, w = hp2 - 2, wp2 - 2
    hw = h * w

    h1 = jnp.maximum(
        y1_ref[0].astype(jnp.float32) * scale_ref[...] + shift_ref[...], 0.0)

    halo_ref[1:h + 1, 1:w + 1, :] = h1.reshape(h, w, cp)
    zrow = jnp.zeros((1, wp2, cp), jnp.float32)
    zcol = jnp.zeros((hp2, 1, cp), jnp.float32)
    halo_ref[0:1, :, :] = zrow
    halo_ref[h + 1:h + 2, :, :] = zrow
    halo_ref[:, 0:1, :] = zcol
    halo_ref[:, w + 1:w + 2, :] = zcol

    for dh in range(3):
        for dw in range(3):
            t = dh * 3 + dw
            col_ref[:, t * cp:(t + 1) * cp] = (
                halo_ref[dh:dh + h, dw:dw + w, :]
                .reshape(hw, cp).astype(jnp.bfloat16))

    acc = jnp.dot(col_ref[...], w_ref[...], preferred_element_type=jnp.float32)
    y2_ref[0] = acc.astype(y2_ref.dtype)

    sum_ref[0] = jnp.sum(acc, axis=0, keepdims=True)
    ssq_ref[0] = jnp.sum(acc * acc, axis=0, keepdims=True)


def _bnrelu_conv3x3_stats(y1, scale1, shift1, w_flat, h, w):
    n, hw, cp = y1.shape
    k = 9 * cp
    return pl.pallas_call(
        _bnrelu_conv3x3_stats_kernel,
        grid=(n,),
        in_specs=[
            pl.BlockSpec((1, hw, cp), lambda i: (i, 0, 0)),
            pl.BlockSpec((1, cp), lambda i: (0, 0)),
            pl.BlockSpec((1, cp), lambda i: (0, 0)),
            pl.BlockSpec((k, cp), lambda i: (0, 0)),
        ],
        out_specs=(
            pl.BlockSpec((1, hw, cp), lambda i: (i, 0, 0)),
            pl.BlockSpec((1, 1, cp), lambda i: (i, 0, 0)),
            pl.BlockSpec((1, 1, cp), lambda i: (i, 0, 0)),
        ),
        out_shape=(
            jax.ShapeDtypeStruct((n, hw, cp), jnp.bfloat16),
            jax.ShapeDtypeStruct((n, 1, cp), jnp.float32),
            jax.ShapeDtypeStruct((n, 1, cp), jnp.float32),
        ),
        scratch_shapes=[
            pltpu.VMEM((h + 2, w + 2, cp), jnp.float32),
            pltpu.VMEM((hw, k), jnp.bfloat16),
        ],
        compiler_params=pltpu.CompilerParams(
            dimension_semantics=("parallel",),
            vmem_limit_bytes=VMEM_LIMIT),
    )(y1, scale1, shift1, w_flat)


# ---------------------------------------------------------------------------
# Pass C kernel: out = relu(y2*scale2 + shift2 + residual), with the epilogue
# layout fused in: in-kernel (hw,cp)->(cp,hw) transpose (XLU), real channels
# only, output written directly in (n, c, h*w) == NCHW layout.
# ---------------------------------------------------------------------------
def _bn_add_relu_kernel(y2_ref, scale_ref, shift_ref, res_ref, out_ref):
    c = res_ref.shape[1]
    vals = y2_ref[0].astype(jnp.float32) * scale_ref[...] + shift_ref[...]   # (hw, cp)
    vals_t = jnp.transpose(vals, (1, 0))                                     # (cp, hw)
    out_ref[0] = jnp.maximum(vals_t[:c, :] + res_ref[0], 0.0)


def _bn_add_relu(y2, scale2, shift2, res):
    n, hw, cp = y2.shape
    c = res.shape[1]
    return pl.pallas_call(
        _bn_add_relu_kernel,
        grid=(n,),
        in_specs=[
            pl.BlockSpec((1, hw, cp), lambda i: (i, 0, 0)),
            pl.BlockSpec((1, cp), lambda i: (0, 0)),
            pl.BlockSpec((1, cp), lambda i: (0, 0)),
            pl.BlockSpec((1, c, hw), lambda i: (i, 0, 0)),
        ],
        out_specs=pl.BlockSpec((1, c, hw), lambda i: (i, 0, 0)),
        out_shape=jax.ShapeDtypeStruct((n, c, hw), jnp.float32),
        compiler_params=pltpu.CompilerParams(
            dimension_semantics=("parallel",),
            vmem_limit_bytes=VMEM_LIMIT),
    )(y2, scale2, shift2, res)


# ---------------------------------------------------------------------------
# BN finalize (tiny (1, cp) vectors): fold training-mode batch stats into a
# per-channel scale/shift: scale = g*rsqrt(var+eps), shift = b - mean*scale.
# NOTE: E[x^2]-E[x]^2 can cancel; f32 accumulation + the max(...,0) guard keep
# it safe at these magnitudes.
# ---------------------------------------------------------------------------
def _bn_fold(s, ssq, gamma_p, beta_p, m):
    mean = s / m
    var = jnp.maximum(ssq / m - mean * mean, 0.0)
    scale = gamma_p * lax.rsqrt(var + BN_EPS)
    shift = beta_p - mean * scale
    return scale, shift


# ---------------------------------------------------------------------------
# ResidualBlock forward (first_stride=1 -> identity shortcut, in_feats==out_feats)
# ---------------------------------------------------------------------------
@jax.jit
def residual_block_forward(x_nchw, params):
    n, c, h, w = x_nchw.shape
    cp = max(LANE, _round_up(c, LANE))   # lane-dense channel padding
    hw = h * w

    x_nhwc = jnp.transpose(x_nchw, (0, 2, 3, 1))                     # NHWC
    x_cp = jnp.pad(x_nhwc, ((0, 0), (0, 0), (0, 0), (0, cp - c)))    # (n,h,w,cp), no halo

    def pack_w(wgt):                                                 # HWIO -> (9*cp, cp) bf16
        kh, kw, ci, co = wgt.shape
        wp = jnp.pad(wgt, ((0, 0), (0, 0), (0, cp - ci), (0, cp - co)))
        return wp.reshape(kh * kw * cp, cp).astype(jnp.bfloat16)

    def pad_v(v):
        # INVARIANT: gamma/beta are ZERO-padded so padded lanes get
        # scale = shift = 0 and stay exactly zero into conv2.
        return jnp.pad(v, ((0, 0), (0, cp - v.shape[-1])))

    w1f, w2f = pack_w(params["w1"]), pack_w(params["w2"])
    g1, b1 = pad_v(params["g1"]), pad_v(params["b1"])
    g2, b2 = pad_v(params["g2"]), pad_v(params["b2"])

    m = n * h * w

    # pass A: conv1 (single im2col matmul) + per-image BN partial stats
    y1, s1, ss1 = _conv3x3_stats(x_cp, w1f)
    scale1, shift1 = _bn_fold(jnp.sum(s1, axis=0), jnp.sum(ss1, axis=0), g1, b1, m)

    # pass B: bn1+relu in VMEM (h1 never hits HBM) fused with conv2 + stats
    y2, s2, ss2 = _bnrelu_conv3x3_stats(y1, scale1, shift1, w2f, h, w)
    scale2, shift2 = _bn_fold(jnp.sum(s2, axis=0), jnp.sum(ss2, axis=0), g2, b2, m)

    # pass C: bn2 + identity residual + relu, output directly in NCHW layout
    res = x_nchw.reshape(n, c, hw)                                   # free view
    out = _bn_add_relu(y2, scale2, shift2, res)                      # (n, c, hw)
    return out.reshape(n, c, h, w)


# ---------------------------------------------------------------------------
# Pure-JAX f32 reference (PyTorch semantics) for the correctness check
# ---------------------------------------------------------------------------
def _reference_forward(x_nchw, params):
    x = jnp.transpose(x_nchw, (0, 2, 3, 1))

    def conv(inp, wgt):
        return lax.conv_general_dilated(
            inp, wgt, (1, 1), "SAME",
            dimension_numbers=("NHWC", "HWIO", "NHWC"))

    def bn(y, g, b):
        mean = jnp.mean(y, axis=(0, 1, 2), keepdims=True)
        var = jnp.mean((y - mean) ** 2, axis=(0, 1, 2), keepdims=True)
        return ((y - mean) / jnp.sqrt(var + BN_EPS)) * g.reshape(1, 1, 1, -1) \
            + b.reshape(1, 1, 1, -1)

    hmid = jax.nn.relu(bn(conv(x, params["w1"]), params["g1"], params["b1"]))
    left = bn(conv(hmid, params["w2"]), params["g2"], params["b2"])
    out = jax.nn.relu(left + x)
    return jnp.transpose(out, (0, 3, 1, 2))


if __name__ == "__main__":
    key = jax.random.PRNGKey(0)
    N, C, H, W = 2, 4, 16, 16          # in_feats = out_feats = 4, first_stride = 1
    kx, k1, k2 = jax.random.split(key, 3)

    x = jax.random.normal(kx, (N, C, H, W), jnp.float32)

    # kaiming_normal_(mode='fan_out', nonlinearity='relu'): std = sqrt(2 / (Cout*3*3))
    fan_out = C * 3 * 3
    std = (2.0 / fan_out) ** 0.5
    params = dict(
        w1=jax.random.normal(k1, (3, 3, C, C), jnp.float32) * std,
        w2=jax.random.normal(k2, (3, 3, C, C), jnp.float32) * std,
        g1=jnp.ones((1, C), jnp.float32), b1=jnp.zeros((1, C), jnp.float32),
        g2=jnp.ones((1, C), jnp.float32), b2=jnp.zeros((1, C), jnp.float32),
    )
    # TODO(synk): BatchNorm running_mean/running_var updates are training-only
    # module state, not part of the forward output, so they are not modeled.

    out = jax.block_until_ready(residual_block_forward(x, params))
    ref = _reference_forward(x, params)

    assert out.shape == (N, C, H, W) and out.dtype == jnp.float32
    # Tolerance sized for bf16 MXU operands / bf16 inter-pass activations vs f32 ref.
    err_max = float(jnp.max(jnp.abs(out - ref)))
    assert jnp.allclose(out, ref, atol=5e-2, rtol=5e-2), err_max

    print("KERNEL_OK")
</pallas_src>

<mosaic_0001>
module attributes {stable_mosaic.version = 11 : i64} {
  func.func @_bnrelu_conv3x3_stats_kernel(%arg0: i32, %arg1: memref<1x256x128xbf16, #tpu.memory_space<vmem>>, %arg2: memref<1x128xf32, #tpu.memory_space<vmem>>, %arg3: memref<1x128xf32, #tpu.memory_space<vmem>>, %arg4: memref<1152x128xbf16, #tpu.memory_space<vmem>>, %arg5: memref<1x256x128xbf16, #tpu.memory_space<vmem>>, %arg6: memref<1x1x128xf32, #tpu.memory_space<vmem>>, %arg7: memref<1x1x128xf32, #tpu.memory_space<vmem>>, %arg8: memref<18x18x128xf32, #tpu.memory_space<vmem>>, %arg9: memref<256x1152xbf16, #tpu.memory_space<vmem>>) attributes {dimension_semantics = [#tpu.dimension_semantics<parallel>], iteration_bounds = array<i64: 2>, scalar_prefetch = 0 : i64, scratch_operands = 2 : i64, tpu.core_type = #tpu.core_type<tc>, window_params = [{transform_indices = @transform_0, window_bounds = array<i64: 1, 256, 128>}, {pipeline_mode = #tpu.pipeline_mode<synchronous>, transform_indices = @transform_1, window_bounds = array<i64: 1, 128>}, {pipeline_mode = #tpu.pipeline_mode<synchronous>, transform_indices = @transform_2, window_bounds = array<i64: 1, 128>}, {pipeline_mode = #tpu.pipeline_mode<synchronous>, transform_indices = @transform_3, window_bounds = array<i64: 1152, 128>}, {transform_indices = @transform_4, window_bounds = array<i64: 1, 256, 128>}, {transform_indices = @transform_5, window_bounds = array<i64: 1, 1, 128>}, {transform_indices = @transform_6, window_bounds = array<i64: 1, 1, 128>}]} {
    %c0 = arith.constant 0 : index
    %c0_0 = arith.constant 0 : index
    %c0_1 = arith.constant 0 : index
    %0 = vector.load %arg1[%c0, %c0_0, %c0_1] : memref<1x256x128xbf16, #tpu.memory_space<vmem>>, vector<1x256x128xbf16>
    %1 = vector.shape_cast %0 : vector<1x256x128xbf16> to vector<256x128xbf16>
    %2 = arith.extf %1 : vector<256x128xbf16> to vector<256x128xf32>
    %c0_2 = arith.constant 0 : index
    %c0_3 = arith.constant 0 : index
    %3 = vector.load %arg2[%c0_2, %c0_3] : memref<1x128xf32, #tpu.memory_space<vmem>>, vector<1x128xf32>
    %4 = vector.broadcast %3 : vector<1x128xf32> to vector<256x128xf32>
    %5 = arith.mulf %2, %4 : vector<256x128xf32>
    %c0_4 = arith.constant 0 : index
    %c0_5 = arith.constant 0 : index
    %6 = vector.load %arg3[%c0_4, %c0_5] : memref<1x128xf32, #tpu.memory_space<vmem>>, vector<1x128xf32>
    %7 = vector.broadcast %6 : vector<1x128xf32> to vector<256x128xf32>
    %8 = arith.addf %5, %7 : vector<256x128xf32>
    %cst = arith.constant 0.000000e+00 : f32
    %9 = vector.broadcast %cst : f32 to vector<256x128xf32>
    %10 = arith.maximumf %8, %9 : vector<256x128xf32>
    %11 = vector.shape_cast %10 : vector<256x128xf32> to vector<16x16x128xf32>
    %c1 = arith.constant 1 : index
    %c1_6 = arith.constant 1 : index
    %c0_7 = arith.constant 0 : index
    %12 = vector.load %arg8[%c1, %c1_6, %c0_7] : memref<18x18x128xf32, #tpu.memory_space<vmem>>, vector<16x16x128xf32>
    tpu.vector_store %arg8[%c1, %c1_6, %c0_7], %11 {strides = array<i32>} : memref<18x18x128xf32, #tpu.memory_space<vmem>>, vector<16x16x128xf32>,
    %cst_8 = arith.constant 0.000000e+00 : f32
    %13 = vector.broadcast %cst_8 : f32 to vector<1x18x128xf32>
    %cst_9 = arith.constant 0.000000e+00 : f32
    %14 = vector.broadcast %cst_9 : f32 to vector<18x1x128xf32>
    %c0_10 = arith.constant 0 : index
    %c0_11 = arith.constant 0 : index
    %c0_12 = arith.constant 0 : index
    %15 = vector.load %arg8[%c0_10, %c0_11, %c0_12] : memref<18x18x128xf32, #tpu.memory_space<vmem>>, vector<1x18x128xf32>
    tpu.vector_store %arg8[%c0_10, %c0_11, %c0_12], %13 {strides = array<i32>} : memref<18x18x128xf32, #tpu.memory_space<vmem>>, vector<1x18x128xf32>,
    %c17 = arith.constant 17 : index
    %c0_13 = arith.constant 0 : index
    %c0_14 = arith.constant 0 : index
    %16 = vector.load %arg8[%c17, %c0_13, %c0_14] : memref<18x18x128xf32, #tpu.memory_space<vmem>>, vector<1x18x128xf32>
    tpu.vector_store %arg8[%c17, %c0_13, %c0_14], %13 {strides = array<i32>} : memref<18x18x128xf32, #tpu.memory_space<vmem>>, vector<1x18x128xf32>,
    %c0_15 = arith.constant 0 : index
    %c0_16 = arith.constant 0 : index
    %c0_17 = arith.constant 0 : index
    %17 = vector.load %arg8[%c0_15, %c0_16, %c0_17] : memref<18x18x128xf32, #tpu.memory_space<vmem>>, vector<18x1x128xf32>
    tpu.vector_store %arg8[%c0_15, %c0_16, %c0_17], %14 {strides = array<i32>} : memref<18x18x128xf32, #tpu.memory_space<vmem>>, vector<18x1x128xf32>,
    %c0_18 = arith.constant 0 : index
    %c17_19 = arith.constant 17 : index
    %c0_20 = arith.constant 0 : index
    %18 = vector.load %arg8[%c0_18, %c17_19, %c0_20] : memref<18x18x128xf32, #tpu.memory_space<vmem>>, vector<18x1x128xf32>
    tpu.vector_store %arg8[%c0_18, %c17_19, %c0_20], %14 {strides = array<i32>} : memref<18x18x128xf32, #tpu.memory_space<vmem>>, vector<18x1x128xf32>,
    %c0_21 = arith.constant 0 : index
    %c0_22 = arith.constant 0 : index
    %c0_23 = arith.constant 0 : index
    %19 = vector.load %arg8[%c0_21, %c0_22, %c0_23] : memref<18x18x128xf32, #tpu.memory_space<vmem>>, vector<16x16x128xf32>
    %20 = vector.shape_cast %19 : vector<16x16x128xf32> to vector<256x128xf32>
    %21 = arith.truncf %20 : vector<256x128xf32> to vector<256x128xbf16>
    %c0_24 = arith.constant 0 : index
    %c0_25 = arith.constant 0 : index
    %22 = vector.load %arg9[%c0_24, %c0_25] : memref<256x1152xbf16, #tpu.memory_space<vmem>>, vector<256x128xbf16>
    tpu.vector_store %arg9[%c0_24, %c0_25], %21 {strides = array<i32>} : memref<256x1152xbf16, #tpu.memory_space<vmem>>, vector<256x128xbf16>,
    %c0_26 = arith.constant 0 : index
    %c1_27 = arith.constant 1 : index
    %c0_28 = arith.constant 0 : index
    %23 = vector.load %arg8[%c0_26, %c1_27, %c0_28] : memref<18x18x128xf32, #tpu.memory_space<vmem>>, vector<16x16x128xf32>
    %24 = vector.shape_cast %23 : vector<16x16x128xf32> to vector<256x128xf32>
    %25 = arith.truncf %24 : vector<256x128xf32> to vector<256x128xbf16>
    %c0_29 = arith.constant 0 : index
    %c128 = arith.constant 128 : index
    %26 = vector.load %arg9[%c0_29, %c128] : memref<256x1152xbf16, #tpu.memory_space<vmem>>, vector<256x128xbf16>
    tpu.vector_store %arg9[%c0_29, %c128], %25 {strides = array<i32>} : memref<256x1152xbf16, #tpu.memory_space<vmem>>, vector<256x128xbf16>,
    %c0_30 = arith.constant 0 : index
    %c2 = arith.constant 2 : index
    %c0_31 = arith.constant 0 : index
    %27 = vector.load %arg8[%c0_30, %c2, %c0_31] : memref<18x18x128xf32, #tpu.memory_space<vmem>>, vector<16x16x128xf32>
    %28 = vector.shape_cast %27 : vector<16x16x128xf32> to vector<256x128xf32>
    %29 = arith.truncf %28 : vector<256x128xf32> to vector<256x128xbf16>
    %c0_32 = arith.constant 0 : index
    %c256 = arith.constant 256 : index
    %30 = vector.load %arg9[%c0_32, %c256] : memref<256x1152xbf16, #tpu.memory_space<vmem>>, vector<256x128xbf16>
    tpu.vector_store %arg9[%c0_32, %c256], %29 {strides = array<i32>} : memref<256x1152xbf16, #tpu.memory_space<vmem>>, vector<256x128xbf16>,
    %c1_33 = arith.constant 1 : index
    %c0_34 = arith.constant 0 : index
    %c0_35 = arith.constant 0 : index
    %31 = vector.load %arg8[%c1_33, %c0_34, %c0_35] : memref<18x18x128xf32, #tpu.memory_space<vmem>>, vector<16x16x128xf32>
    %32 = vector.shape_cast %31 : vector<16x16x128xf32> to vector<256x128xf32>
    %33 = arith.truncf %32 : vector<256x128xf32> to vector<256x128xbf16>
    %c0_36 = arith.constant 0 : index
    %c384 = arith.constant 384 : index
    %34 = vector.load %arg9[%c0_36, %c384] : memref<256x1152xbf16, #tpu.memory_space<vmem>>, vector<256x128xbf16>
    tpu.vector_store %arg9[%c0_36, %c384], %33 {strides = array<i32>} : memref<256x1152xbf16, #tpu.memory_space<vmem>>, vector<256x128xbf16>,
    %c1_37 = arith.constant 1 : index
    %c1_38 = arith.constant 1 : index
    %c0_39 = arith.constant 0 : index
    %35 = vector.load %arg8[%c1_37, %c1_38, %c0_39] : memref<18x18x128xf32, #tpu.memory_space<vmem>>, vector<16x16x128xf32>
    %36 = vector.shape_cast %35 : vector<16x16x128xf32> to vector<256x128xf32>
    %37 = arith.truncf %36 : vector<256x128xf32> to vector<256x128xbf16>
    %c0_40 = arith.constant 0 : index
    %c512 = arith.constant 512 : index
    %38 = vector.load %arg9[%c0_40, %c512] : memref<256x1152xbf16, #tpu.memory_space<vmem>>, vector<256x128xbf16>
    tpu.vector_store %arg9[%c0_40, %c512], %37 {strides = array<i32>} : memref<256x1152xbf16, #tpu.memory_space<vmem>>, vector<256x128xbf16>,
    %c1_41 = arith.constant 1 : index
    %c2_42 = arith.constant 2 : index
    %c0_43 = arith.constant 0 : index
    %39 = vector.load %arg8[%c1_41, %c2_42, %c0_43] : memref<18x18x128xf32, #tpu.memory_space<vmem>>, vector<16x16x128xf32>
    %40 = vector.shape_cast %39 : vector<16x16x128xf32> to vector<256x128xf32>
    %41 = arith.truncf %40 : vector<256x128xf32> to vector<256x128xbf16>
    %c0_44 = arith.constant 0 : index
    %c640 = arith.constant 640 : index
    %42 = vector.load %arg9[%c0_44, %c640] : memref<256x1152xbf16, #tpu.memory_space<vmem>>, vector<256x128xbf16>
    tpu.vector_store %arg9[%c0_44, %c640], %41 {strides = array<i32>} : memref<256x1152xbf16, #tpu.memory_space<vmem>>, vector<256x128xbf16>,
    %c2_45 = arith.constant 2 : index
    %c0_46 = arith.constant 0 : index
    %c0_47 = arith.constant 0 : index
    %43 = vector.load %arg8[%c2_45, %c0_46, %c0_47] : memref<18x18x128xf32, #tpu.memory_space<vmem>>, vector<16x16x128xf32>
    %44 = vector.shape_cast %43 : vector<16x16x128xf32> to vector<256x128xf32>
    %45 = arith.truncf %44 : vector<256x128xf32> to vector<256x128xbf16>
    %c0_48 = arith.constant 0 : index
    %c768 = arith.constant 768 : index
    %46 = vector.load %arg9[%c0_48, %c768] : memref<256x1152xbf16, #tpu.memory_space<vmem>>, vector<256x128xbf16>
    tpu.vector_store %arg9[%c0_48, %c768], %45 {strides = array<i32>} : memref<256x1152xbf16, #tpu.memory_space<vmem>>, vector<256x128xbf16>,
    %c2_49 = arith.constant 2 : index
    %c1_50 = arith.constant 1 : index
    %c0_51 = arith.constant 0 : index
    %47 = vector.load %arg8[%c2_49, %c1_50, %c0_51] : memref<18x18x128xf32, #tpu.memory_space<vmem>>, vector<16x16x128xf32>
    %48 = vector.shape_cast %47 : vector<16x16x128xf32> to vector<256x128xf32>
    %49 = arith.truncf %48 : vector<256x128xf32> to vector<256x128xbf16>
    %c0_52 = arith.constant 0 : index
    %c896 = arith.constant 896 : index
    %50 = vector.load %arg9[%c0_52, %c896] : memref<256x1152xbf16, #tpu.memory_space<vmem>>, vector<256x128xbf16>
    tpu.vector_store %arg9[%c0_52, %c896], %49 {strides = array<i32>} : memref<256x1152xbf16, #tpu.memory_space<vmem>>, vector<256x128xbf16>,
    %c2_53 = arith.constant 2 : index
    %c2_54 = arith.constant 2 : index
    %c0_55 = arith.constant 0 : index
    %51 = vector.load %arg8[%c2_53, %c2_54, %c0_55] : memref<18x18x128xf32, #tpu.memory_space<vmem>>, vector<16x16x128xf32>
    %52 = vector.shape_cast %51 : vector<16x16x128xf32> to vector<256x128xf32>
    %53 = arith.truncf %52 : vector<256x128xf32> to vector<256x128xbf16>
    %c0_56 = arith.constant 0 : index
    %c1024 = arith.constant 1024 : index
    %54 = vector.load %arg9[%c0_56, %c1024] : memref<256x1152xbf16, #tpu.memory_space<vmem>>, vector<256x128xbf16>
    tpu.vector_store %arg9[%c0_56, %c1024], %53 {strides = array<i32>} : memref<256x1152xbf16, #tpu.memory_space<vmem>>, vector<256x128xbf16>,
    %c0_57 = arith.constant 0 : index
    %c0_58 = arith.constant 0 : index
    %55 = vector.load %arg9[%c0_57, %c0_58] : memref<256x1152xbf16, #tpu.memory_space<vmem>>, vector<256x1152xbf16>
    %c0_59 = arith.constant 0 : index
    %c0_60 = arith.constant 0 : index
    %56 = vector.load %arg4[%c0_59, %c0_60] : memref<1152x128xbf16, #tpu.memory_space<vmem>>, vector<1152x128xbf16>
    %cst_61 = arith.constant dense<0.000000e+00> : vector<256x128xf32>
    %57 = tpu.matmul %55, %56, %cst_61 {dimension_numbers = #tpu.dot_dimension_numbers<[1], [0], [0], [1], [0, 0, 1, 1], [], []>} : vector<256x1152xbf16>, vector<1152x128xbf16>, vector<256x128xf32> -> vector<256x128xf32>
    %58 = arith.truncf %57 : vector<256x128xf32> to vector<256x128xbf16>
    %c0_62 = arith.constant 0 : index
    %c0_63 = arith.constant 0 : index
    %c0_64 = arith.constant 0 : index
    %59 = vector.load %arg5[%c0_62, %c0_63, %c0_64] : memref<1x256x128xbf16, #tpu.memory_space<vmem>>, vector<1x256x128xbf16>
    %60 = vector.shape_cast %59 : vector<1x256x128xbf16> to vector<256x128xbf16>
    %61 = vector.shape_cast %58 : vector<256x128xbf16> to vector<1x256x128xbf16>
    tpu.vector_store %arg5[%c0_62, %c0_63, %c0_64], %61 {strides = array<i32>} : memref<1x256x128xbf16, #tpu.memory_space<vmem>>, vector<1x256x128xbf16>,
    %cst_65 = arith.constant dense<0.000000e+00> : vector<128xf32>
    %62 = vector.multi_reduction <add>, %57, %cst_65 [0] : vector<256x128xf32> to vector<128xf32>
    %63 = vector.shape_cast %62 : vector<128xf32> to vector<1x128xf32>
    %c0_66 = arith.constant 0 : index
    %c0_67 = arith.constant 0 : index
    %c0_68 = arith.constant 0 : index
    %64 = vector.load %arg6[%c0_66, %c0_67, %c0_68] : memref<1x1x128xf32, #tpu.memory_space<vmem>>, vector<1x1x128xf32>
    %65 = vector.shape_cast %64 : vector<1x1x128xf32> to vector<1x128xf32>
    %66 = vector.shape_cast %63 : vector<1x128xf32> to vector<1x1x128xf32>
    tpu.vector_store %arg6[%c0_66, %c0_67, %c0_68], %66 {strides = array<i32>} : memref<1x1x128xf32, #tpu.memory_space<vmem>>, vector<1x1x128xf32>,
    %67 = arith.mulf %57, %57 : vector<256x128xf32>
    %cst_69 = arith.constant dense<0.000000e+00> : vector<128xf32>
    %68 = vector.multi_reduction <add>, %67, %cst_69 [0] : vector<256x128xf32> to vector<128xf32>
    %69 = vector.shape_cast %68 : vector<128xf32> to vector<1x128xf32>
    %c0_70 = arith.constant 0 : index
    %c0_71 = arith.constant 0 : index
    %c0_72 = arith.constant 0 : index
    %70 = vector.load %arg7[%c0_70, %c0_71, %c0_72] : memref<1x1x128xf32, #tpu.memory_space<vmem>>, vector<1x1x128xf32>
    %71 = vector.shape_cast %70 : vector<1x1x128xf32> to vector<1x128xf32>
    %72 = vector.shape_cast %69 : vector<1x128xf32> to vector<1x1x128xf32>
    tpu.vector_store %arg7[%c0_70, %c0_71, %c0_72], %72 {strides = array<i32>} : memref<1x1x128xf32, #tpu.memory_space<vmem>>, vector<1x1x128xf32>,
    return
  }
  func.func @transform_0(%arg0: i32) -> (i32, i32, i32) {
    %c0_i32 = arith.constant 0 : i32
    %c0_i32_0 = arith.constant 0 : i32
    %c0_i32_1 = arith.constant 0 : i32
    return %arg0, %c0_i32, %c0_i32_0 : i32, i32, i32
  }
  func.func @transform_1(%arg0: i32) -> (i32, i32) {
    %c0_i32 = arith.constant 0 : i32
    %c0_i32_0 = arith.constant 0 : i32
    %c0_i32_1 = arith.constant 0 : i32
    return %c0_i32, %c0_i32_0 : i32, i32
  }
  func.func @transform_2(%arg0: i32) -> (i32, i32) {
    %c0_i32 = arith.constant 0 : i32
    %c0_i32_0 = arith.constant 0 : i32
    %c0_i32_1 = arith.constant 0 : i32
    return %c0_i32, %c0_i32_0 : i32, i32
  }
  func.func @transform_3(%arg0: i32) -> (i32, i32) {
    %c0_i32 = arith.constant 0 : i32
    %c0_i32_0 = arith.constant 0 : i32
    %c0_i32_1 = arith.constant 0 : i32
    return %c0_i32, %c0_i32_0 : i32, i32
  }
  func.func @transform_4(%arg0: i32) -> (i32, i32, i32) {
    %c0_i32 = arith.constant 0 : i32
    %c0_i32_0 = arith.constant 0 : i32
    %c0_i32_1 = arith.constant 0 : i32
    return %arg0, %c0_i32, %c0_i32_0 : i32, i32, i32
  }
  func.func @transform_5(%arg0: i32) -> (i32, i32, i32) {
    %c0_i32 = arith.constant 0 : i32
    %c0_i32_0 = arith.constant 0 : i32
    %c0_i32_1 = arith.constant 0 : i32
    return %arg0, %c0_i32, %c0_i32_0 : i32, i32, i32
  }
  func.func @transform_6(%arg0: i32) -> (i32, i32, i32) {
    %c0_i32 = arith.constant 0 : i32
    %c0_i32_0 = arith.constant 0 : i32
    %c0_i32_1 = arith.constant 0 : i32
    return %arg0, %c0_i32, %c0_i32_0 : i32, i32, i32
  }
}

module attributes {stable_mosaic.version = 11 : i64} {
  func.func @_conv3x3_stats_kernel(%arg0: i32, %arg1: memref<1x16x16x128xf32, #tpu.memory_space<vmem>>, %arg2: memref<1152x128xbf16, #tpu.memory_space<vmem>>, %arg3: memref<1x256x128xbf16, #tpu.memory_space<vmem>>, %arg4: memref<1x1x128xf32, #tpu.memory_space<vmem>>, %arg5: memref<1x1x128xf32, #tpu.memory_space<vmem>>, %arg6: memref<18x18x128xf32, #tpu.memory_space<vmem>>, %arg7: memref<256x1152xbf16, #tpu.memory_space<vmem>>) attributes {dimension_semantics = [#tpu.dimension_semantics<parallel>], iteration_bounds = array<i64: 2>, scalar_prefetch = 0 : i64, scratch_operands = 2 : i64, tpu.core_type = #tpu.core_type<tc>, window_params = [{transform_indices = @transform_0, window_bounds = array<i64: 1, 16, 16, 128>}, {pipeline_mode = #tpu.pipeline_mode<synchronous>, transform_indices = @transform_1, window_bounds = array<i64: 1152, 128>}, {transform_indices = @transform_2, window_bounds = array<i64: 1, 256, 128>}, {transform_indices = @transform_3, window_bounds = array<i64: 1, 1, 128>}, {transform_indices = @transform_4, window_bounds = array<i64: 1, 1, 128>}]} {
    %c0 = arith.constant 0 : index
    %c0_0 = arith.constant 0 : index
    %c0_1 = arith.constant 0 : index
    %c0_2 = arith.constant 0 : index
    %0 = vector.load %arg1[%c0, %c0_0, %c0_1, %c0_2] : memref<1x16x16x128xf32, #tpu.memory_space<vmem>>, vector<1x16x16x128xf32>
    %1 = vector.shape_cast %0 : vector<1x16x16x128xf32> to vector<16x16x128xf32>
    %c1 = arith.constant 1 : index
    %c1_3 = arith.constant 1 : index
    %c0_4 = arith.constant 0 : index
    %2 = vector.load %arg6[%c1, %c1_3, %c0_4] : memref<18x18x128xf32, #tpu.memory_space<vmem>>, vector<16x16x128xf32>
    tpu.vector_store %arg6[%c1, %c1_3, %c0_4], %1 {strides = array<i32>} : memref<18x18x128xf32, #tpu.memory_space<vmem>>, vector<16x16x128xf32>,
    %cst = arith.constant 0.000000e+00 : f32
    %3 = vector.broadcast %cst : f32 to vector<1x18x128xf32>
    %cst_5 = arith.constant 0.000000e+00 : f32
    %4 = vector.broadcast %cst_5 : f32 to vector<18x1x128xf32>
    %c0_6 = arith.constant 0 : index
    %c0_7 = arith.constant 0 : index
    %c0_8 = arith.constant 0 : index
    %5 = vector.load %arg6[%c0_6, %c0_7, %c0_8] : memref<18x18x128xf32, #tpu.memory_space<vmem>>, vector<1x18x128xf32>
    tpu.vector_store %arg6[%c0_6, %c0_7, %c0_8], %3 {strides = array<i32>} : memref<18x18x128xf32, #tpu.memory_space<vmem>>, vector<1x18x128xf32>,
    %c17 = arith.constant 17 : index
    %c0_9 = arith.constant 0 : index
    %c0_10 = arith.constant 0 : index
    %6 = vector.load %arg6[%c17, %c0_9, %c0_10] : memref<18x18x128xf32, #tpu.memory_space<vmem>>, vector<1x18x128xf32>
    tpu.vector_store %arg6[%c17, %c0_9, %c0_10], %3 {strides = array<i32>} : memref<18x18x128xf32, #tpu.memory_space<vmem>>, vector<1x18x128xf32>,
    %c0_11 = arith.constant 0 : index
    %c0_12 = arith.constant 0 : index
    %c0_13 = arith.constant 0 : index
    %7 = vector.load %arg6[%c0_11, %c0_12, %c0_13] : memref<18x18x128xf32, #tpu.memory_space<vmem>>, vector<18x1x128xf32>
    tpu.vector_store %arg6[%c0_11, %c0_12, %c0_13], %4 {strides = array<i32>} : memref<18x18x128xf32, #tpu.memory_space<vmem>>, vector<18x1x128xf32>,
    %c0_14 = arith.constant 0 : index
    %c17_15 = arith.constant 17 : index
    %c0_16 = arith.constant 0 : index
    %8 = vector.load %arg6[%c0_14, %c17_15, %c0_16] : memref<18x18x128xf32, #tpu.memory_space<vmem>>, vector<18x1x128xf32>
    tpu.vector_store %arg6[%c0_14, %c17_15, %c0_16], %4 {strides = array<i32>} : memref<18x18x128xf32, #tpu.memory_space<vmem>>, vector<18x1x128xf32>,
    %c0_17 = arith.constant 0 : index
    %c0_18 = arith.constant 0 : index
    %c0_19 = arith.constant 0 : index
    %9 = vector.load %arg6[%c0_17, %c0_18, %c0_19] : memref<18x18x128xf32, #tpu.memory_space<vmem>>, vector<16x16x128xf32>
    %10 = vector.shape_cast %9 : vector<16x16x128xf32> to vector<256x128xf32>
    %11 = arith.truncf %10 : vector<256x128xf32> to vector<256x128xbf16>
    %c0_20 = arith.constant 0 : index
    %c0_21 = arith.constant 0 : index
    %12 = vector.load %arg7[%c0_20, %c0_21] : memref<256x1152xbf16, #tpu.memory_space<vmem>>, vector<256x128xbf16>
    tpu.vector_store %arg7[%c0_20, %c0_21], %11 {strides = array<i32>} : memref<256x1152xbf16, #tpu.memory_space<vmem>>, vector<256x128xbf16>,
    %c0_22 = arith.constant 0 : index
    %c1_23 = arith.constant 1 : index
    %c0_24 = arith.constant 0 : index
    %13 = vector.load %arg6[%c0_22, %c1_23, %c0_24] : memref<18x18x128xf32, #tpu.memory_space<vmem>>, vector<16x16x128xf32>
    %14 = vector.shape_cast %13 : vector<16x16x128xf32> to vector<256x128xf32>
    %15 = arith.truncf %14 : vector<256x128xf32> to vector<256x128xbf16>
    %c0_25 = arith.constant 0 : index
    %c128 = arith.constant 128 : index
    %16 = vector.load %arg7[%c0_25, %c128] : memref<256x1152xbf16, #tpu.memory_space<vmem>>, vector<256x128xbf16>
    tpu.vector_store %arg7[%c0_25, %c128], %15 {strides = array<i32>} : memref<256x1152xbf16, #tpu.memory_space<vmem>>, vector<256x128xbf16>,
    %c0_26 = arith.constant 0 : index
    %c2 = arith.constant 2 : index
    %c0_27 = arith.constant 0 : index
    %17 = vector.load %arg6[%c0_26, %c2, %c0_27] : memref<18x18x128xf32, #tpu.memory_space<vmem>>, vector<16x16x128xf32>
    %18 = vector.shape_cast %17 : vector<16x16x128xf32> to vector<256x128xf32>
    %19 = arith.truncf %18 : vector<256x128xf32> to vector<256x128xbf16>
    %c0_28 = arith.constant 0 : index
    %c256 = arith.constant 256 : index
    %20 = vector.load %arg7[%c0_28, %c256] : memref<256x1152xbf16, #tpu.memory_space<vmem>>, vector<256x128xbf16>
    tpu.vector_store %arg7[%c0_28, %c256], %19 {strides = array<i32>} : memref<256x1152xbf16, #tpu.memory_space<vmem>>, vector<256x128xbf16>,
    %c1_29 = arith.constant 1 : index
    %c0_30 = arith.constant 0 : index
    %c0_31 = arith.constant 0 : index
    %21 = vector.load %arg6[%c1_29, %c0_30, %c0_31] : memref<18x18x128xf32, #tpu.memory_space<vmem>>, vector<16x16x128xf32>
    %22 = vector.shape_cast %21 : vector<16x16x128xf32> to vector<256x128xf32>
    %23 = arith.truncf %22 : vector<256x128xf32> to vector<256x128xbf16>
    %c0_32 = arith.constant 0 : index
    %c384 = arith.constant 384 : index
    %24 = vector.load %arg7[%c0_32, %c384] : memref<256x1152xbf16, #tpu.memory_space<vmem>>, vector<256x128xbf16>
    tpu.vector_store %arg7[%c0_32, %c384], %23 {strides = array<i32>} : memref<256x1152xbf16, #tpu.memory_space<vmem>>, vector<256x128xbf16>,
    %c1_33 = arith.constant 1 : index
    %c1_34 = arith.constant 1 : index
    %c0_35 = arith.constant 0 : index
    %25 = vector.load %arg6[%c1_33, %c1_34, %c0_35] : memref<18x18x128xf32, #tpu.memory_space<vmem>>, vector<16x16x128xf32>
    %26 = vector.shape_cast %25 : vector<16x16x128xf32> to vector<256x128xf32>
    %27 = arith.truncf %26 : vector<256x128xf32> to vector<256x128xbf16>
    %c0_36 = arith.constant 0 : index
    %c512 = arith.constant 512 : index
    %28 = vector.load %arg7[%c0_36, %c512] : memref<256x1152xbf16, #tpu.memory_space<vmem>>, vector<256x128xbf16>
    tpu.vector_store %arg7[%c0_36, %c512], %27 {strides = array<i32>} : memref<256x1152xbf16, #tpu.memory_space<vmem>>, vector<256x128xbf16>,
    %c1_37 = arith.constant 1 : index
    %c2_38 = arith.constant 2 : index
    %c0_39 = arith.constant 0 : index
    %29 = vector.load %arg6[%c1_37, %c2_38, %c0_39] : memref<18x18x128xf32, #tpu.memory_space<vmem>>, vector<16x16x128xf32>
    %30 = vector.shape_cast %29 : vector<16x16x128xf32> to vector<256x128xf32>
    %31 = arith.truncf %30 : vector<256x128xf32> to vector<256x128xbf16>
    %c0_40 = arith.constant 0 : index
    %c640 = arith.constant 640 : index
    %32 = vector.load %arg7[%c0_40, %c640] : memref<256x1152xbf16, #tpu.memory_space<vmem>>, vector<256x128xbf16>
    tpu.vector_store %arg7[%c0_40, %c640], %31 {strides = array<i32>} : memref<256x1152xbf16, #tpu.memory_space<vmem>>, vector<256x128xbf16>,
    %c2_41 = arith.constant 2 : index
    %c0_42 = arith.constant 0 : index
    %c0_43 = arith.constant 0 : index
    %33 = vector.load %arg6[%c2_41, %c0_42, %c0_43] : memref<18x18x128xf32, #tpu.memory_space<vmem>>, vector<16x16x128xf32>
    %34 = vector.shape_cast %33 : vector<16x16x128xf32> to vector<256x128xf32>
    %35 = arith.truncf %34 : vector<256x128xf32> to vector<256x128xbf16>
    %c0_44 = arith.constant 0 : index
    %c768 = arith.constant 768 : index
    %36 = vector.load %arg7[%c0_44, %c768] : memref<256x1152xbf16, #tpu.memory_space<vmem>>, vector<256x128xbf16>
    tpu.vector_store %arg7[%c0_44, %c768], %35 {strides = array<i32>} : memref<256x1152xbf16, #tpu.memory_space<vmem>>, vector<256x128xbf16>,
    %c2_45 = arith.constant 2 : index
    %c1_46 = arith.constant 1 : index
    %c0_47 = arith.constant 0 : index
    %37 = vector.load %arg6[%c2_45, %c1_46, %c0_47] : memref<18x18x128xf32, #tpu.memory_space<vmem>>, vector<16x16x128xf32>
    %38 = vector.shape_cast %37 : vector<16x16x128xf32> to vector<256x128xf32>
    %39 = arith.truncf %38 : vector<256x128xf32> to vector<256x128xbf16>
    %c0_48 = arith.constant 0 : index
    %c896 = arith.constant 896 : index
    %40 = vector.load %arg7[%c0_48, %c896] : memref<256x1152xbf16, #tpu.memory_space<vmem>>, vector<256x128xbf16>
    tpu.vector_store %arg7[%c0_48, %c896], %39 {strides = array<i32>} : memref<256x1152xbf16, #tpu.memory_space<vmem>>, vector<256x128xbf16>,
    %c2_49 = arith.constant 2 : index
    %c2_50 = arith.constant 2 : index
    %c0_51 = arith.constant 0 : index
    %41 = vector.load %arg6[%c2_49, %c2_50, %c0_51] : memref<18x18x128xf32, #tpu.memory_space<vmem>>, vector<16x16x128xf32>
    %42 = vector.shape_cast %41 : vector<16x16x128xf32> to vector<256x128xf32>
    %43 = arith.truncf %42 : vector<256x128xf32> to vector<256x128xbf16>
    %c0_52 = arith.constant 0 : index
    %c1024 = arith.constant 1024 : index
    %44 = vector.load %arg7[%c0_52, %c1024] : memref<256x1152xbf16, #tpu.memory_space<vmem>>, vector<256x128xbf16>
    tpu.vector_store %arg7[%c0_52, %c1024], %43 {strides = array<i32>} : memref<256x1152xbf16, #tpu.memory_space<vmem>>, vector<256x128xbf16>,
    %c0_53 = arith.constant 0 : index
    %c0_54 = arith.constant 0 : index
    %45 = vector.load %arg7[%c0_53, %c0_54] : memref<256x1152xbf16, #tpu.memory_space<vmem>>, vector<256x1152xbf16>
    %c0_55 = arith.constant 0 : index
    %c0_56 = arith.constant 0 : index
    %46 = vector.load %arg2[%c0_55, %c0_56] : memref<1152x128xbf16, #tpu.memory_space<vmem>>, vector<1152x128xbf16>
    %cst_57 = arith.constant dense<0.000000e+00> : vector<256x128xf32>
    %47 = tpu.matmul %45, %46, %cst_57 {dimension_numbers = #tpu.dot_dimension_numbers<[1], [0], [0], [1], [0, 0, 1, 1], [], []>} : vector<256x1152xbf16>, vector<1152x128xbf16>, vector<256x128xf32> -> vector<256x128xf32>
    %48 = arith.truncf %47 : vector<256x128xf32> to vector<256x128xbf16>
    %c0_58 = arith.constant 0 : index
    %c0_59 = arith.constant 0 : index
    %c0_60 = arith.constant 0 : index
    %49 = vector.load %arg3[%c0_58, %c0_59, %c0_60] : memref<1x256x128xbf16, #tpu.memory_space<vmem>>, vector<1x256x128xbf16>
    %50 = vector.shape_cast %49 : vector<1x256x128xbf16> to vector<256x128xbf16>
    %51 = vector.shape_cast %48 : vector<256x128xbf16> to vector<1x256x128xbf16>
    tpu.vector_store %arg3[%c0_58, %c0_59, %c0_60], %51 {strides = array<i32>} : memref<1x256x128xbf16, #tpu.memory_space<vmem>>, vector<1x256x128xbf16>,
    %cst_61 = arith.constant dense<0.000000e+00> : vector<128xf32>
    %52 = vector.multi_reduction <add>, %47, %cst_61 [0] : vector<256x128xf32> to vector<128xf32>
    %53 = vector.shape_cast %52 : vector<128xf32> to vector<1x128xf32>
    %c0_62 = arith.constant 0 : index
    %c0_63 = arith.constant 0 : index
    %c0_64 = arith.constant 0 : index
    %54 = vector.load %arg4[%c0_62, %c0_63, %c0_64] : memref<1x1x128xf32, #tpu.memory_space<vmem>>, vector<1x1x128xf32>
    %55 = vector.shape_cast %54 : vector<1x1x128xf32> to vector<1x128xf32>
    %56 = vector.shape_cast %53 : vector<1x128xf32> to vector<1x1x128xf32>
    tpu.vector_store %arg4[%c0_62, %c0_63, %c0_64], %56 {strides = array<i32>} : memref<1x1x128xf32, #tpu.memory_space<vmem>>, vector<1x1x128xf32>,
    %57 = arith.mulf %47, %47 : vector<256x128xf32>
    %cst_65 = arith.constant dense<0.000000e+00> : vector<128xf32>
    %58 = vector.multi_reduction <add>, %57, %cst_65 [0] : vector<256x128xf32> to vector<128xf32>
    %59 = vector.shape_cast %58 : vector<128xf32> to vector<1x128xf32>
    %c0_66 = arith.constant 0 : index
    %c0_67 = arith.constant 0 : index
    %c0_68 = arith.constant 0 : index
    %60 = vector.load %arg5[%c0_66, %c0_67, %c0_68] : memref<1x1x128xf32, #tpu.memory_space<vmem>>, vector<1x1x128xf32>
    %61 = vector.shape_cast %60 : vector<1x1x128xf32> to vector<1x128xf32>
    %62 = vector.shape_cast %59 : vector<1x128xf32> to vector<1x1x128xf32>
    tpu.vector_store %arg5[%c0_66, %c0_67, %c0_68], %62 {strides = array<i32>} : memref<1x1x128xf32, #tpu.memory_space<vmem>>, vector<1x1x128xf32>,
    return
  }
  func.func @transform_0(%arg0: i32) -> (i32, i32, i32, i32) {
    %c0_i32 = arith.constant 0 : i32
    %c0_i32_0 = arith.constant 0 : i32
    %c0_i32_1 = arith.constant 0 : i32
    %c0_i32_2 = arith.constant 0 : i32
    return %arg0, %c0_i32, %c0_i32_0, %c0_i32_1 : i32, i32, i32, i32
  }
  func.func @transform_1(%arg0: i32) -> (i32, i32) {
    %c0_i32 = arith.constant 0 : i32
    %c0_i32_0 = arith.constant 0 : i32
    %c0_i32_1 = arith.constant 0 : i32
    return %c0_i32, %c0_i32_0 : i32, i32
  }
  func.func @transform_2(%arg0: i32) -> (i32, i32, i32) {
    %c0_i32 = arith.constant 0 : i32
    %c0_i32_0 = arith.constant 0 : i32
    %c0_i32_1 = arith.constant 0 : i32
    return %arg0, %c0_i32, %c0_i32_0 : i32, i32, i32
  }
  func.func @transform_3(%arg0: i32) -> (i32, i32, i32) {
    %c0_i32 = arith.constant 0 : i32
    %c0_i32_0 = arith.constant 0 : i32
    %c0_i32_1 = arith.constant 0 : i32
    return %arg0, %c0_i32, %c0_i32_0 : i32, i32, i32
  }
  func.func @transform_4(%arg0: i32) -> (i32, i32, i32) {
    %c0_i32 = arith.constant 0 : i32
    %c0_i32_0 = arith.constant 0 : i32
    %c0_i32_1 = arith.constant 0 : i32
    return %arg0, %c0_i32, %c0_i32_0 : i32, i32, i32
  }
}

module attributes {stable_mosaic.version = 11 : i64} {
  func.func @_bn_add_relu_kernel(%arg0: i32, %arg1: memref<1x256x128xbf16, #tpu.memory_space<vmem>>, %arg2: memref<1x128xf32, #tpu.memory_space<vmem>>, %arg3: memref<1x128xf32, #tpu.memory_space<vmem>>, %arg4: memref<1x4x256xf32, #tpu.memory_space<vmem>>, %arg5: memref<1x4x256xf32, #tpu.memory_space<vmem>>) attributes {dimension_semantics = [#tpu.dimension_semantics<parallel>], iteration_bounds = array<i64: 2>, scalar_prefetch = 0 : i64, scratch_operands = 0 : i64, tpu.core_type = #tpu.core_type<tc>, window_params = [{transform_indices = @transform_0, window_bounds = array<i64: 1, 256, 128>}, {pipeline_mode = #tpu.pipeline_mode<synchronous>, transform_indices = @transform_1, window_bounds = array<i64: 1, 128>}, {pipeline_mode = #tpu.pipeline_mode<synchronous>, transform_indices = @transform_2, window_bounds = array<i64: 1, 128>}, {transform_indices = @transform_3, window_bounds = array<i64: 1, 4, 256>}, {transform_indices = @transform_4, window_bounds = array<i64: 1, 4, 256>}]} {
    %c0 = arith.constant 0 : index
    %c0_0 = arith.constant 0 : index
    %c0_1 = arith.constant 0 : index
    %0 = vector.load %arg1[%c0, %c0_0, %c0_1] : memref<1x256x128xbf16, #tpu.memory_space<vmem>>, vector<1x256x128xbf16>
    %1 = vector.shape_cast %0 : vector<1x256x128xbf16> to vector<256x128xbf16>
    %2 = arith.extf %1 : vector<256x128xbf16> to vector<256x128xf32>
    %c0_2 = arith.constant 0 : index
    %c0_3 = arith.constant 0 : index
    %3 = vector.load %arg2[%c0_2, %c0_3] : memref<1x128xf32, #tpu.memory_space<vmem>>, vector<1x128xf32>
    %4 = vector.broadcast %3 : vector<1x128xf32> to vector<256x128xf32>
    %5 = arith.mulf %2, %4 : vector<256x128xf32>
    %c0_4 = arith.constant 0 : index
    %c0_5 = arith.constant 0 : index
    %6 = vector.load %arg3[%c0_4, %c0_5] : memref<1x128xf32, #tpu.memory_space<vmem>>, vector<1x128xf32>
    %7 = vector.broadcast %6 : vector<1x128xf32> to vector<256x128xf32>
    %8 = arith.addf %5, %7 : vector<256x128xf32>
    %9 = tpu.transpose %8, [1, 0] : vector<256x128xf32> -> vector<128x256xf32>
    %10 = vector.extract_strided_slice %9 {offsets = [0, 0], sizes = [4, 256], strides = [1, 1]} : vector<128x256xf32> to vector<4x256xf32>
    %c0_6 = arith.constant 0 : index
    %c0_7 = arith.constant 0 : index
    %c0_8 = arith.constant 0 : index
    %11 = vector.load %arg4[%c0_6, %c0_7, %c0_8] : memref<1x4x256xf32, #tpu.memory_space<vmem>>, vector<1x4x256xf32>
    %12 = vector.shape_cast %11 : vector<1x4x256xf32> to vector<4x256xf32>
    %13 = arith.addf %10, %12 : vector<4x256xf32>
    %cst = arith.constant 0.000000e+00 : f32
    %14 = vector.broadcast %cst : f32 to vector<4x256xf32>
    %15 = arith.maximumf %13, %14 : vector<4x256xf32>
    %c0_9 = arith.constant 0 : index
    %c0_10 = arith.constant 0 : index
    %c0_11 = arith.constant 0 : index
    %16 = vector.load %arg5[%c0_9, %c0_10, %c0_11] : memref<1x4x256xf32, #tpu.memory_space<vmem>>, vector<1x4x256xf32>
    %17 = vector.shape_cast %16 : vector<1x4x256xf32> to vector<4x256xf32>
    %18 = vector.shape_cast %15 : vector<4x256xf32> to vector<1x4x256xf32>
    tpu.vector_store %arg5[%c0_9, %c0_10, %c0_11], %18 {strides = array<i32>} : memref<1x4x256xf32, #tpu.memory_space<vmem>>, vector<1x4x256xf32>,
    return
  }
  func.func @transform_0(%arg0: i32) -> (i32, i32, i32) {
    %c0_i32 = arith.constant 0 : i32
    %c0_i32_0 = arith.constant 0 : i32
    %c0_i32_1 = arith.constant 0 : i32
    return %arg0, %c0_i32, %c0_i32_0 : i32, i32, i32
  }
  func.func @transform_1(%arg0: i32) -> (i32, i32) {
    %c0_i32 = arith.constant 0 : i32
    %c0_i32_0 = arith.constant 0 : i32
    %c0_i32_1 = arith.constant 0 : i32
    return %c0_i32, %c0_i32_0 : i32, i32
  }
  func.func @transform_2(%arg0: i32) -> (i32, i32) {
    %c0_i32 = arith.constant 0 : i32
    %c0_i32_0 = arith.constant 0 : i32
    %c0_i32_1 = arith.constant 0 : i32
    return %c0_i32, %c0_i32_0 : i32, i32
  }
  func.func @transform_3(%arg0: i32) -> (i32, i32, i32) {
    %c0_i32 = arith.constant 0 : i32
    %c0_i32_0 = arith.constant 0 : i32
    %c0_i32_1 = arith.constant 0 : i32
    return %arg0, %c0_i32, %c0_i32_0 : i32, i32, i32
  }
  func.func @transform_4(%arg0: i32) -> (i32, i32, i32) {
    %c0_i32 = arith.constant 0 : i32
    %c0_i32_0 = arith.constant 0 : i32
    %c0_i32_1 = arith.constant 0 : i32
    return %arg0, %c0_i32, %c0_i32_0 : i32, i32, i32
  }
}

</mosaic_0001>

<bundles_post_ra>
// kernel: residual_block_forward.5
= control target key start
LH: loop header
LB: loop body
LE: loop exit
PB: predicated region body
PF: predicated region fallthrough
CT: control target
= control target key end

     0   :  { %s643_s15 = smov 0   ;;  %s759_s0 = inlined_call_operand.vmem [shape: bf16[2,256,128], index: 0, kind: input, shape index: {}]   ;;  %s760_s1 = inlined_call_operand.vmem [shape: f32[1,128], index: 1, kind: input, shape index: {}]   ;;  %s761_s2 = inlined_call_operand.vmem [shape: f32[1,128], index: 2, kind: input, shape index: {}]   ;;  %s762_s3 = inlined_call_operand.vmem [shape: f32[2,4,256], index: 3, kind: input, shape index: {}]   ;;  %s763_s4 = inlined_call_operand.vmem [shape: f32[2,4,256], index: 4, kind: output, shape index: {}]  }
   0x1 LB: > { %s504_s16 = sadd.s32 4294967295, %s616_s15   ;;  %p508_p0 = scmp.ge.s32.totalorder %s616_s15, 1  ;;  %s616_s15 = sphi %s643_s15, %s14_s15  }
   0x2   : > { %p172_p1 = scmp.lt.s32.totalorder %s616_s15, 3 }
   0x4   : > { %p173_p2 = pnand %p508_p0, %p172_p1 }
   0x5   : > { %p203_p3 = scmp.lt.s32.totalorder (!%p173_p2), %s504_s16, 1  ;;  %v662_v0 = vld [vmem:[%s760_s1] ss:$0 sm:$0xff] (!%p173_p2) }
   0x6   : > { %176 = sbr.rel (%p173_p2) target bundleno = 160 (0xa0), region = 36  ;;  %v671_v9 = vld [vmem:[%s761_s2] ss:$0 sm:$0xff] (!%p173_p2) }
   0xd   : > { %s765_s16 = smov (!%p203_p3, %s504_s16), 1 }
   0xe   : > { %s519_s17 = sshll.u32 %s765_s16, 7  ;;  %s520_s25 = sshll.u32 %s765_s16, 3 }
   0xf   : > { %s657_s20 = scalar_lea.vmem %s759_s0, %s519_s17  ;;  %s212_s28 = scalar_lea.vmem %s762_s3, %s520_s25 }
  0x10   : > { %v593_v1 = vld [vmem:[%s657_s20 + $0x40] sm:$0xff]   ;;  %v594_v3 = vld [vmem:[%s657_s20 + $0x48] sm:$0xff]   ;;  %v595_v24 = vld [vmem:[%s657_s20 + $0x50] sm:$0xff]   ;;  %s217_s5 = scalar_lea.vmem %s763_s4, %s520_s25 }
  0x11   : > { %v523_v2 = vld [vmem:[%s657_s20] sm:$0xff]   ;;  %v556_v4 = vunpack.c.l.bf16 %v593_v1  ;;  %v557_v6 = vunpack.c.h.bf16 %v593_v1  ;;  %v586_v8 = vld [vmem:[%s657_s20 + $0x8] sm:$0xff]   ;;  %v560_v10 = vunpack.c.l.bf16 %v594_v3  ;;  %v561_v19 = vunpack.c.h.bf16 %v594_v3  ;;  %v587_v25 = vld [vmem:[%s657_s20 + $0x10] sm:$0xff]  }
  0x12   : > { %v524_v5 = vunpack.c.l.bf16 %v523_v2  ;;  %v525_v7 = vunpack.c.h.bf16 %v523_v2  ;;  %v528_v11 = vunpack.c.l.bf16 %v586_v8  ;;  %v529_v20 = vunpack.c.h.bf16 %v586_v8  ;;  %v596_v38 = vld [vmem:[%s657_s20 + $0x58] sm:$0xff]   ;;  %v597_v52 = vld [vmem:[%s657_s20 + $0x60] sm:$0xff]   ;;  %v598_v3 = vld [vmem:[%s657_s20 + $0x68] sm:$0xff]  }
  0x13   : > { %v305_v12 = vmul.f32 %v556_v4, %v662_v0  ;;  %v306_v14 = vmul.f32 %v557_v6, %v662_v0  ;;  %v307_v18 = vmul.f32 %v560_v10, %v662_v0  ;;  %v308_v26 = vmul.f32 %v561_v19, %v662_v0  ;;  %v588_v39 = vld [vmem:[%s657_s20 + $0x18] sm:$0xff]   ;;  %v589_v53 = vld [vmem:[%s657_s20 + $0x20] sm:$0xff]   ;;  %v590_v4 = vld [vmem:[%s657_s20 + $0x28] sm:$0xff]  }
  0x14   : > { %v289_v13 = vmul.f32 %v524_v5, %v662_v0  ;;  %v290_v15 = vmul.f32 %v525_v7, %v662_v0  ;;  %v291_v23 = vmul.f32 %v528_v11, %v662_v0  ;;  %v292_v27 = vmul.f32 %v529_v20, %v662_v0  ;;  %v591_v19 = vld [vmem:[%s657_s20 + $0x30] sm:$0xff]  }
  0x15   : > { %v344_v16 = vadd.f32 %v671_v9, %v305_v12  ;;  %v345_v21 = vadd.f32 %v671_v9, %v306_v14  ;;  %v346_v28 = vadd.f32 %v671_v9, %v307_v18  ;;  %v564_v30 = vunpack.c.l.bf16 %v595_v24  ;;  %v599_v18 = vld [vmem:[%s657_s20 + $0x70] sm:$0xff]  }
  0x16   : > { %v328_v17 = vadd.f32 %v671_v9, %v289_v13  ;;  %v329_v22 = vadd.f32 %v671_v9, %v290_v15  ;;  %v330_v29 = vadd.f32 %v671_v9, %v291_v23  ;;  %v532_v31 = vunpack.c.l.bf16 %v587_v25 }
  0x17   : > { %392 = vxpose.xlu1.b32.start [1/16] (narrow) %v344_v16, 8  ;;  %v347_v32 = vadd.f32 %v671_v9, %v308_v26  ;;  %v565_v33 = vunpack.c.h.bf16 %v595_v24  ;;  %v331_v34 = vadd.f32 %v671_v9, %v292_v27  ;;  %v309_v35 = vmul.f32 %v564_v30, %v662_v0 }
  0x18   : > { %360 = vxpose.xlu0.b32.start [1/16] (narrow) %v328_v17, 8  ;;  %v293_v36 = vmul.f32 %v532_v31, %v662_v0  ;;  %v533_v37 = vunpack.c.h.bf16 %v587_v25  ;;  %v568_v41 = vunpack.c.l.bf16 %v596_v38  ;;  %v536_v45 = vunpack.c.l.bf16 %v588_v39 }
  0x19   : > { %v310_v40 = vmul.f32 %v565_v33, %v662_v0  ;;  %v348_v42 = vadd.f32 %v671_v9, %v309_v35  ;;  %v569_v47 = vunpack.c.h.bf16 %v596_v38  ;;  %v537_v51 = vunpack.c.h.bf16 %v588_v39  ;;  %v592_v33 = vld [vmem:[%s657_s20 + $0x38] sm:$0xff]  }
  0x1a   : > { %v332_v43 = vadd.f32 %v671_v9, %v293_v36  ;;  %v294_v44 = vmul.f32 %v533_v37, %v662_v0  ;;  %v311_v46 = vmul.f32 %v568_v41, %v662_v0  ;;  %v295_v50 = vmul.f32 %v536_v45, %v662_v0 }
  0x1b   : > { %393 = vxpose.xlu1.b32.cont [2/16] (narrow) %v345_v21, 8  ;;  %v349_v48 = vadd.f32 %v671_v9, %v310_v40  ;;  %v312_v54 = vmul.f32 %v569_v47, %v662_v0  ;;  %v572_v55 = vunpack.c.l.bf16 %v597_v52  ;;  %v296_v58 = vmul.f32 %v537_v51, %v662_v0 }
  0x1c   : > { %361 = vxpose.xlu0.b32.cont [2/16] (narrow) %v329_v22, 8  ;;  %v333_v49 = vadd.f32 %v671_v9, %v294_v44  ;;  %v350_v56 = vadd.f32 %v671_v9, %v311_v46  ;;  %v334_v57 = vadd.f32 %v671_v9, %v295_v50  ;;  %v540_v59 = vunpack.c.l.bf16 %v589_v53 }
  0x1d   : > { %v351_v60 = vadd.f32 %v671_v9, %v312_v54  ;;  %v313_v61 = vmul.f32 %v572_v55, %v662_v0  ;;  %v335_v62 = vadd.f32 %v671_v9, %v296_v58  ;;  %v573_v1 = vunpack.c.h.bf16 %v597_v52  ;;  %v424_v52 = vld [vmem:[%s212_s28] sm:$0xff] }
  0x1e   : > { %v297_v63 = vmul.f32 %v540_v59, %v662_v0  ;;  %v541_v2 = vunpack.c.h.bf16 %v589_v53  ;;  %v576_v6 = vunpack.c.l.bf16 %v598_v3  ;;  %v544_v11 = vunpack.c.l.bf16 %v590_v4 }
  0x1f   : > { %394 = vxpose.xlu1.b32.cont [3/16] (narrow) %v346_v28, 8  ;;  %v352_v5 = vadd.f32 %v671_v9, %v313_v61  ;;  %v314_v8 = vmul.f32 %v573_v1, %v662_v0  ;;  %v577_v13 = vunpack.c.h.bf16 %v598_v3  ;;  %v545_v17 = vunpack.c.h.bf16 %v590_v4 }
  0x20   : > { %362 = vxpose.xlu0.b32.cont [3/16] (narrow) %v330_v29, 8  ;;  %v336_v7 = vadd.f32 %v671_v9, %v297_v63  ;;  %v298_v10 = vmul.f32 %v541_v2, %v662_v0  ;;  %v315_v12 = vmul.f32 %v576_v6, %v662_v0  ;;  %v299_v16 = vmul.f32 %v544_v11, %v662_v0 }
  0x21   : > { %v353_v14 = vadd.f32 %v671_v9, %v314_v8  ;;  %v316_v20 = vmul.f32 %v577_v13, %v662_v0  ;;  %v580_v21 = vunpack.c.l.bf16 %v599_v18  ;;  %v300_v24 = vmul.f32 %v545_v17, %v662_v0 }
  0x22   : > { %v337_v15 = vadd.f32 %v671_v9, %v298_v10  ;;  %v354_v22 = vadd.f32 %v671_v9, %v315_v12  ;;  %v338_v23 = vadd.f32 %v671_v9, %v299_v16  ;;  %v548_v25 = vunpack.c.l.bf16 %v591_v19 }
  0x23   : > { %395 = vxpose.xlu1.b32.cont [4/16] (narrow) %v347_v32, 8  ;;  %v355_v26 = vadd.f32 %v671_v9, %v316_v20  ;;  %v317_v27 = vmul.f32 %v580_v21, %v662_v0  ;;  %v339_v28 = vadd.f32 %v671_v9, %v300_v24  ;;  %v581_v30 = vunpack.c.h.bf16 %v599_v18  ;;  %v600_v32 = vld [vmem:[%s657_s20 + $0x78] sm:$0xff]  }
  0x24   : > { %363 = vxpose.xlu0.b32.cont [4/16] (narrow) %v331_v34, 8  ;;  %v301_v29 = vmul.f32 %v548_v25, %v662_v0  ;;  %v549_v31 = vunpack.c.h.bf16 %v591_v19  ;;  %v584_v35 = vunpack.c.l.bf16 %v600_v32  ;;  %v552_v39 = vunpack.c.l.bf16 %v592_v33 }
  0x25   : > { %v356_v34 = vadd.f32 %v671_v9, %v317_v27  ;;  %v318_v37 = vmul.f32 %v581_v30, %v662_v0  ;;  %v585_v41 = vunpack.c.h.bf16 %v600_v32  ;;  %v553_v45 = vunpack.c.h.bf16 %v592_v33 }
  0x26   : > { %v340_v36 = vadd.f32 %v671_v9, %v301_v29  ;;  %v302_v38 = vmul.f32 %v549_v31, %v662_v0  ;;  %v319_v40 = vmul.f32 %v584_v35, %v662_v0  ;;  %v303_v44 = vmul.f32 %v552_v39, %v662_v0 }
  0x27   : > { %396 = vxpose.xlu1.b32.cont [5/16] (narrow) %v348_v42, 8  ;;  %v357_v42 = vadd.f32 %v671_v9, %v318_v37  ;;  %v320_v46 = vmul.f32 %v585_v41, %v662_v0  ;;  %v426_v53 = vcombine.high %v424_v52, %v424_v52 }
  0x28   : > { %364 = vxpose.xlu0.b32.cont [5/16] (narrow) %v332_v43, 8  ;;  %v341_v43 = vadd.f32 %v671_v9, %v302_v38  ;;  %v358_v47 = vadd.f32 %v671_v9, %v319_v40 }
  0x29   : > { %v359_v50 = vadd.f32 %v671_v9, %v320_v46 }
  0x2b   : > { %397 = vxpose.xlu1.b32.cont [6/16] (narrow) %v349_v48, 8  ;;  %v342_v48 = vadd.f32 %v671_v9, %v303_v44 }
  0x2c   : > { %365 = vxpose.xlu0.b32.cont [6/16] (narrow) %v333_v49, 8  ;;  %v304_v49 = vmul.f32 %v553_v45, %v662_v0 }
  0x2e   : > { %v343_v51 = vadd.f32 %v671_v9, %v304_v49 }
  0x2f   : > { %398 = vxpose.xlu1.b32.cont [7/16] (narrow) %v350_v56, 8 }
  0x30   : > { %366 = vxpose.xlu0.b32.cont [7/16] (narrow) %v334_v57, 8 }
  0x33   : > { %399 = vxpose.xlu1.b32.cont [8/16] (narrow) %v351_v60, 8 }
  0x34   : > { %367 = vxpose.xlu0.b32.cont [8/16] (narrow) %v335_v62, 8 }
  0x37   : > { %400 = vxpose.xlu1.b32.cont [9/16] (narrow) %v352_v5, 8 }
  0x38   : > { %368 = vxpose.xlu0.b32.cont [9/16] (narrow) %v336_v7, 8 }
  0x3b   : > { %401 = vxpose.xlu1.b32.cont [10/16] (narrow) %v353_v14, 8 }
  0x3c   : > { %369 = vxpose.xlu0.b32.cont [10/16] (narrow) %v337_v15, 8 }
  0x3f   : > { %402 = vxpose.xlu1.b32.cont [11/16] (narrow) %v354_v22, 8 }
  0x40   : > { %370 = vxpose.xlu0.b32.cont [11/16] (narrow) %v338_v23, 8 }
  0x43   : > { %403 = vxpose.xlu1.b32.cont [12/16] (narrow) %v355_v26, 8 }
  0x44   : > { %371 = vxpose.xlu0.b32.cont [12/16] (narrow) %v339_v28, 8 }
  0x47   : > { %404 = vxpose.xlu1.b32.cont [13/16] (narrow) %v356_v34, 8 }
  0x48   : > { %372 = vxpose.xlu0.b32.cont [13/16] (narrow) %v340_v36, 8 }
  0x4b   : > { %405 = vxpose.xlu1.b32.cont [14/16] (narrow) %v357_v42, 8 }
  0x4c   : > { %373 = vxpose.xlu0.b32.cont [14/16] (narrow) %v341_v43, 8 }
  0x4f   : > { %406 = vxpose.xlu1.b32.cont [15/16] (narrow) %v358_v47, 8 }
  0x50   : > { %374 = vxpose.xlu0.b32.cont [15/16] (narrow) %v342_v48, 8 }
  0x53   : > { %407 = vxpose.xlu1.b32.end [16/16] (narrow) %v359_v50, 8 }
  0x54   : > { %375 = vxpose.xlu0.b32.end [16/16] (narrow) %v343_v51, 8 }
  0x97   : > { %v408_v54 = vpop.trf.xlu1 }
  0x98   : > { %v376_v55 = vpop.trf.xlu0  ;;  %v429_v56 = vadd.f32 %v426_v53, %v408_v54 }
  0x99   : > { %v428_v57 = vadd.f32 %v424_v52, %v376_v55 }
  0x9a   : > { %v431_v0 = vmax.f32 %v429_v56, 0.0 }
  0x9b   : > { %v430_v58 = vmax.f32 %v428_v57, 0.0 }
  0x9d   : > { %v434_v9 = vcombine.low %v430_v58, %v431_v0 }
  0x9f   : > { %436 = vst [vmem:[%s217_s5] sm:$0xff] %v434_v9 }
  0xa0 PF: > { %s14_s15 = sadd.s32 1, %s616_s15  }
  0xa1   : > { %p11_p4 = scmp.ge.s32.totalorder %s14_s15, 4  }
  0xa3   :  { %13 = sbr.rel (!%p11_p4) target bundleno = 1 (0x1), region = 69 }

// kernel: residual_block_forward.4
= control target key start
LH: loop header
LB: loop body
LE: loop exit
PB: predicated region body
PF: predicated region fallthrough
CT: control target
= control target key end

     0   :  { %s3982_s21 = smov 0   ;;  %s5045_s0 = inlined_call_operand.vmem [shape: bf16[2,256,128], index: 0, kind: input, shape index: {}]   ;;  %s5046_s1 = inlined_call_operand.vmem [shape: f32[1,128], index: 1, kind: input, shape index: {}]   ;;  %s5047_s2 = inlined_call_operand.vmem [shape: f32[1,128], index: 2, kind: input, shape index: {}]   ;;  %s5048_s3 = inlined_call_operand.vmem [shape: bf16[1152,128], index: 3, kind: input, shape index: {}]   ;;  %s5049_s4 = inlined_call_operand.vmem [shape: bf16[2,256,128], index: 4, kind: output, shape index: {0}]   ;;  %s5050_s5 = inlined_call_operand.vmem [shape: f32[2,1,128], index: 5, kind: output, shape index: {1}]   ;;  %s5051_s6 = inlined_call_operand.vmem [shape: f32[2,1,128], index: 6, kind: output, shape index: {2}]  }
   0x1 LB: > { %s2995_s22 = sadd.s32 4294967295, %s3944_s21   ;;  %p2999_p0 = scmp.ge.s32.totalorder %s3944_s21, 1  ;;  %s3944_s21 = sphi %s3982_s21, %s17_s21  }
   0x2   : > { %p217_p1 = scmp.lt.s32.totalorder %s3944_s21, 3 }
   0x4   : > { %p218_p2 = pnand %p2999_p0, %p217_p1 }
   0x5   : > { %v3865_v0 = vld [vmem:[%s5048_s3 + $0x40] sm:$0xff] (!%p218_p2)   ;;  %v3946_v2 = vmov (!%p218_p2), 0.0   ;;  %v3867_v3 = vld [vmem:[%s5048_s3 + $0x48] sm:$0xff] (!%p218_p2)   ;;  %p253_p3 = scmp.lt.s32.totalorder (!%p218_p2), %s2995_s22, 1  ;;  %v3869_v5 = vld [vmem:[%s5048_s3 + $0x50] sm:$0xff] (!%p218_p2)  }
   0x6   : > { %221 = sbr.rel (%p218_p2) target bundleno = 557 (0x22d), region = 36  ;;  %v3866_v1 = vld [vmem:[%s5048_s3] sm:$0xff] (!%p218_p2)   ;;  %477 = vst [vmem:[#allocation2] sm:$0xff] (!%p218_p2), %v3946_v2  ;;  %478 = vst [vmem:[#allocation2 + $0x8] sm:$0xff] (!%p218_p2), %v3946_v2  ;;  %3320 = vmatprep.subr.bf16.mxu0 (!%p218_p2), %v3865_v0  ;;  %3840 = vmatprep.subr.bf16.mxu1 (!%p218_p2), %v3865_v0  ;;  %v3868_v4 = vld [vmem:[%s5048_s3 + $0x8] sm:$0xff] (!%p218_p2)  }
   0x7   : > { %479 = vst [vmem:[#allocation2 + $0x10] sm:$0x3] (!%p218_p2), %v3946_v2  ;;  %481 = vst [vmem:[#allocation2 + $0x198] sm:$0xff] (!%p218_p2), %v3946_v2  ;;  %3321 = vmatpush3.bf16.msra.mxu0 (!%p218_p2), %v3866_v1  ;;  %3848 = vmatpush3.bf16.msra.mxu1 (!%p218_p2), %v3866_v1  ;;  %v3870_v6 = vld [vmem:[%s5048_s3 + $0x10] sm:$0xff] (!%p218_p2)   ;;  %v3871_v7 = vld [vmem:[%s5048_s3 + $0x58] sm:$0xff] (!%p218_p2)  }
   0x8   : > { %482 = vst [vmem:[#allocation2 + $0x1a0] sm:$0xff] (!%p218_p2), %v3946_v2  ;;  %483 = vst [vmem:[#allocation2 + $0x1a8] sm:$0x3] (!%p218_p2), %v3946_v2  ;;  %3322 = vmatprep.subr.bf16.mxu0 (!%p218_p2), %v3867_v3  ;;  %3841 = vmatprep.subr.bf16.mxu1 (!%p218_p2), %v3867_v3  ;;  %v3872_v8 = vld [vmem:[%s5048_s3 + $0x18] sm:$0xff] (!%p218_p2)   ;;  %v3873_v9 = vld [vmem:[%s5048_s3 + $0x60] sm:$0xff] (!%p218_p2)  }
   0x9   : > { %485 = vst [vmem:[#allocation2 + $0x18] sm:$0x1] (!%p218_p2), %v3946_v2  ;;  %486 = vst [vmem:[#allocation2 + $0x30] sm:$0x1] (!%p218_p2), %v3946_v2  ;;  %v3874_v10 = vld [vmem:[%s5048_s3 + $0x20] sm:$0xff] (!%p218_p2)   ;;  %v3875_v11 = vld [vmem:[%s5048_s3 + $0x68] sm:$0xff] (!%p218_p2)  }
   0xa   : > { %487 = vst [vmem:[#allocation2 + $0x48] sm:$0x1] (!%p218_p2), %v3946_v2  ;;  %488 = vst [vmem:[#allocation2 + $0x60] sm:$0x1] (!%p218_p2), %v3946_v2  ;;  %v4083_v18 = vld [vmem:[%s5046_s1] ss:$0 sm:$0xff] (!%p218_p2) }
   0xb   : > { %489 = vst [vmem:[#allocation2 + $0x78] sm:$0x1] (!%p218_p2), %v3946_v2  ;;  %490 = vst [vmem:[#allocation2 + $0x90] sm:$0x1] (!%p218_p2), %v3946_v2  ;;  %3323 = vmatpush3.bf16.msra.mxu0 (!%p218_p2), %v3868_v4  ;;  %3849 = vmatpush3.bf16.msra.mxu1 (!%p218_p2), %v3868_v4  ;;  %v4088_v19 = vld [vmem:[%s5047_s2] ss:$0 sm:$0xff] (!%p218_p2) }
   0xc   : > { %491 = vst [vmem:[#allocation2 + $0xa8] sm:$0x1] (!%p218_p2), %v3946_v2  ;;  %492 = vst [vmem:[#allocation2 + $0xc0] sm:$0x1] (!%p218_p2), %v3946_v2  ;;  %3324 = vmatprep.subr.bf16.mxu0 (!%p218_p2), %v3869_v5  ;;  %3842 = vmatprep.subr.bf16.mxu1 (!%p218_p2), %v3869_v5  ;;  %v3876_v20 = vld [vmem:[%s5048_s3 + $0x28] sm:$0xff] (!%p218_p2)   ;;  %v3877_v23 = vld [vmem:[%s5048_s3 + $0x70] sm:$0xff] (!%p218_p2)  }
   0xd   : > { %493 = vst [vmem:[#allocation2 + $0xd8] sm:$0x1] %v3946_v2  ;;  %494 = vst [vmem:[#allocation2 + $0xf0] sm:$0x1] %v3946_v2  ;;  %s5053_s22 = smov (!%p253_p3, %s2995_s22), 1  ;;  %v584_v12 = vld [vmem:[#allocation2 + $0x1] sm:$0xff] }
   0xe   : > { %495 = vst [vmem:[#allocation2 + $0x108] sm:$0x1] %v3946_v2  ;;  %496 = vst [vmem:[#allocation2 + $0x120] sm:$0x1] %v3946_v2  ;;  %s3112_s13 = sshll.u32 %s5053_s22, 7  ;;  %v585_v13 = vld [vmem:[#allocation2 + $0x9] sm:$0xff]  ;;  %s265_s12 = scalar_lea.vmem %s5050_s5, %s5053_s22 }
   0xf   : > { %497 = vst [vmem:[#allocation2 + $0x138] sm:$0x1] %v3946_v2  ;;  %498 = vst [vmem:[#allocation2 + $0x150] sm:$0x1] %v3946_v2  ;;  %3325 = vmatpush3.bf16.msra.mxu0 %v3870_v6  ;;  %3850 = vmatpush3.bf16.msra.mxu1 %v3870_v6  ;;  %s4071_s20 = scalar_lea.vmem %s5045_s0, %s3112_s13  ;;  %v616_v15 = vpack.c.bf16 %v585_v13, %v584_v12  ;;  %v3878_v26 = vld [vmem:[%s5048_s3 + $0x30] sm:$0xff]   ;;  %v3879_v29 = vld [vmem:[%s5048_s3 + $0x78] sm:$0xff]   ;;  %s4969_s10 = scalar_lea.vmem %s5049_s4, %s3112_s13 }
  0x10   : > { %499 = vst [vmem:[#allocation2 + $0x168] sm:$0x1] %v3946_v2  ;;  %500 = vst [vmem:[#allocation2 + $0x180] sm:$0x1] %v3946_v2  ;;  %3326 = vmatprep.subr.bf16.mxu0 %v3871_v7  ;;  %3843 = vmatprep.subr.bf16.mxu1 %v3871_v7  ;;  %v3300_v14 = vld [vmem:[%s4071_s20 + $0x58] sm:$0xff]   ;;  %v3147_v30 = vld [vmem:[%s4071_s20] sm:$0xff]  }
  0x11   : > { %503 = vst [vmem:[#allocation2 + $0x29] sm:$0x1] %v3946_v2  ;;  %504 = vst [vmem:[#allocation2 + $0x41] sm:$0x1] %v3946_v2  ;;  %v3192_v16 = vunpack.c.l.bf16 %v3300_v14  ;;  %v3193_v17 = vunpack.c.h.bf16 %v3300_v14  ;;  %1849 = vmatprep.mubr.bf16.mxu0 %v616_v15  ;;  %v3301_v31 = vld [vmem:[%s4071_s20 + $0x60] sm:$0xff]   ;;  %v3880_v32 = vld [vmem:[%s5048_s3 + $0x38] sm:$0xff]   ;;  %v3148_v34 = vunpack.c.l.bf16 %v3147_v30  ;;  %v3149_v35 = vunpack.c.h.bf16 %v3147_v30 }
  0x12   : > { %505 = vst [vmem:[#allocation2 + $0x59] sm:$0x1] %v3946_v2  ;;  %506 = vst [vmem:[#allocation2 + $0x71] sm:$0x1] %v3946_v2  ;;  %v3196_v36 = vunpack.c.l.bf16 %v3301_v31  ;;  %v3197_v38 = vunpack.c.h.bf16 %v3301_v31  ;;  %v3881_v39 = vld [vmem:[%s5048_s3 + $0xc0] sm:$0xff]   ;;  %v3885_v52 = vld [vmem:[%s5048_s3 + $0xc8] sm:$0xff]  }
  0x13   : > { %507 = vst [vmem:[#allocation2 + $0x89] sm:$0x1] %v3946_v2  ;;  %508 = vst [vmem:[#allocation2 + $0xa1] sm:$0x1] %v3946_v2  ;;  %3327 = vmatpush3.bf16.msra.mxu0 %v3872_v8  ;;  %3851 = vmatpush3.bf16.msra.mxu1 %v3872_v8  ;;  %v363_v21 = vmul.f32 %v3192_v16, %v4083_v18  ;;  %v364_v22 = vmul.f32 %v3193_v17, %v4083_v18  ;;  %v3882_v43 = vld [vmem:[%s5048_s3 + $0x140] sm:$0xff]   ;;  %v3290_v56 = vld [vmem:[%s4071_s20 + $0x8] sm:$0xff]  }
  0x14   : > { %509 = vst [vmem:[#allocation2 + $0xb9] sm:$0x1] %v3946_v2  ;;  %510 = vst [vmem:[#allocation2 + $0xd1] sm:$0x1] %v3946_v2  ;;  %3328 = vmatprep.subr.bf16.mxu0 %v3873_v9  ;;  %3844 = vmatprep.subr.bf16.mxu1 %v3873_v9  ;;  %v341_v40 = vmul.f32 %v3148_v34, %v4083_v18  ;;  %v342_v41 = vmul.f32 %v3149_v35, %v4083_v18  ;;  %v3883_v49 = vld [vmem:[%s5048_s3 + $0x80] sm:$0xff]   ;;  %v3302_v57 = vld [vmem:[%s4071_s20 + $0x68] sm:$0xff]   ;;  %v3152_v61 = vunpack.c.l.bf16 %v3290_v56 }
  0x15   : > { %511 = vst [vmem:[#allocation2 + $0xe9] sm:$0x1] %v3946_v2  ;;  %512 = vst [vmem:[#allocation2 + $0x101] sm:$0x1] %v3946_v2  ;;  %v402_v24 = vadd.f32 %v4088_v19, %v363_v21  ;;  %v403_v25 = vadd.f32 %v4088_v19, %v364_v22  ;;  %v365_v42 = vmul.f32 %v3196_v36, %v4083_v18  ;;  %v3884_v50 = vld [vmem:[%s5048_s3 + $0x100] sm:$0xff]   ;;  %v3153_v62 = vunpack.c.h.bf16 %v3290_v56  ;;  %v3890_v4 = vld [vmem:[%s5048_s3 + $0x148] sm:$0xff]  }
  0x16   : > { %513 = vst [vmem:[#allocation2 + $0x119] sm:$0x1] %v3946_v2  ;;  %514 = vst [vmem:[#allocation2 + $0x131] sm:$0x1] %v3946_v2  ;;  %v366_v44 = vmul.f32 %v3197_v38, %v4083_v18  ;;  %v380_v45 = vadd.f32 %v4088_v19, %v341_v40  ;;  %v381_v46 = vadd.f32 %v4088_v19, %v342_v41  ;;  %v3200_v63 = vunpack.c.l.bf16 %v3302_v57  ;;  %v3892_v8 = vld [vmem:[%s5048_s3 + $0x108] sm:$0xff]   ;;  %v3291_v14 = vld [vmem:[%s4071_s20 + $0x10] sm:$0xff]  }
  0x17   : > { %515 = vst [vmem:[#allocation2 + $0x149] sm:$0x1] %v3946_v2  ;;  %516 = vst [vmem:[#allocation2 + $0x161] sm:$0x1] %v3946_v2  ;;  %3329 = vmatpush3.bf16.msra.mxu0 %v3874_v10  ;;  %3852 = vmatpush3.bf16.msra.mxu1 %v3874_v10  ;;  %v434_v27 = vmax.f32 %v402_v24, 0.0  ;;  %v435_v28 = vmax.f32 %v403_v25, 0.0  ;;  %v404_v47 = vadd.f32 %v4088_v19, %v365_v42  ;;  %v3157_v21 = vunpack.c.h.bf16 %v3291_v14 }
  0x18   : > { %517 = vst [vmem:[#allocation2 + $0x179] sm:$0x1] %v3946_v2  ;;  %518 = vst [vmem:[#allocation2 + $0x191] sm:$0x1] %v3946_v2  ;;  %3330 = vmatprep.subr.bf16.mxu0 %v3875_v11  ;;  %3845 = vmatprep.subr.bf16.mxu1 %v3875_v11  ;;  %v405_v51 = vadd.f32 %v4088_v19, %v366_v44  ;;  %v412_v53 = vmax.f32 %v380_v45, 0.0  ;;  %v413_v54 = vmax.f32 %v381_v46, 0.0 }
  0x19   : > { %502 = vst [vmem:[#allocation2 + $0x11] sm:$0x1] %v3946_v2  ;;  %484 = vst [vmem:[#allocation2] sm:$0x1] %v3946_v2  ;;  %v628_v33 = vpack.c.bf16 %v435_v28, %v434_v27  ;;  %v436_v55 = vmax.f32 %v404_v47, 0.0  ;;  %v343_v5 = vmul.f32 %v3152_v61, %v4083_v18  ;;  %v344_v6 = vmul.f32 %v3153_v62, %v4083_v18  ;;  %v3886_v10 = vld [vmem:[%s5048_s3 + $0x88] sm:$0xff]  }
  0x1a   : > { %501 = vst [vmem:[#allocation2 + $0x198] sm:$0x1] %v3946_v2  ;;  %519 = vst [vmem:[#allocation2 + $0x1a9] sm:$0x1] %v3946_v2  ;;  %v437_v60 = vmax.f32 %v405_v51, 0.0  ;;  %v4137_v1 = vpack.c.bf16 %v413_v54, %v412_v53  ;;  %v367_v7 = vmul.f32 %v3200_v63, %v4083_v18  ;;  %v3303_v15 = vld [vmem:[%s4071_s20 + $0x70] sm:$0xff]   ;;  %v346_v31 = vmul.f32 %v3157_v21, %v4083_v18 }
  0x1b   : > { %3331 = vmatpush3.bf16.msra.mxu0 %v3876_v20  ;;  %3853 = vmatpush3.bf16.msra.mxu1 %v3876_v20  ;;  %467 = vst [vmem:[#allocation2 + $0x121] sm:$0xff] %v434_v27  ;;  %468 = vst [vmem:[#allocation2 + $0x129] sm:$0xff] %v435_v28  ;;  %v382_v11 = vadd.f32 %v4088_v19, %v343_v5  ;;  %v383_v12 = vadd.f32 %v4088_v19, %v344_v6  ;;  %v3887_v16 = vld [vmem:[%s5048_s3 + $0xd0] sm:$0xff]   ;;  %v3156_v20 = vunpack.c.l.bf16 %v3291_v14  ;;  %v3889_v36 = vld [vmem:[%s5048_s3 + $0xd8] sm:$0xff]  }
  0x1c   : > { %3332 = vmatprep.subr.bf16.mxu0 %v3877_v23  ;;  %3846 = vmatprep.subr.bf16.mxu1 %v3877_v23  ;;  %445 = vst [vmem:[#allocation2 + $0x19] sm:$0xff] %v412_v53  ;;  %446 = vst [vmem:[#allocation2 + $0x21] sm:$0xff] %v413_v54  ;;  %v629_v3 = vpack.c.bf16 %v437_v60, %v436_v55  ;;  %v406_v13 = vadd.f32 %v4088_v19, %v367_v7  ;;  %v3204_v22 = vunpack.c.l.bf16 %v3303_v15  ;;  %v3898_v27 = vld [vmem:[%s5048_s3 + $0x150] sm:$0xff]   ;;  %v3292_v53 = vld [vmem:[%s4071_s20 + $0x18] sm:$0xff]  }
  0x1d   : > { %1945 = vmatprep.mubr.bf16.mxu1 %v628_v33  ;;  %469 = vst [vmem:[#allocation2 + $0x139] sm:$0xff] %v436_v55  ;;  %470 = vst [vmem:[#allocation2 + $0x141] sm:$0xff] %v437_v60  ;;  %v414_v23 = vmax.f32 %v382_v11, 0.0  ;;  %v415_v24 = vmax.f32 %v383_v12, 0.0  ;;  %v3888_v28 = vld [vmem:[%s5048_s3 + $0x90] sm:$0xff]   ;;  %v345_v30 = vmul.f32 %v3156_v20, %v4083_v18  ;;  %v3893_v54 = vld [vmem:[%s5048_s3 + $0xe0] sm:$0xff]   ;;  %v3160_v55 = vunpack.c.l.bf16 %v3292_v53 }
  0x1e   : > { %v438_v25 = vmax.f32 %v406_v13, 0.0  ;;  %v3900_v47 = vld [vmem:[%s5048_s3 + $0x110] sm:$0xff]   ;;  %v3161_v56 = vunpack.c.h.bf16 %v3292_v53  ;;  %v3894_v60 = vld [vmem:[%s5048_s3 + $0xa0] sm:$0xff]   ;;  %v3896_v11 = vld [vmem:[%s5048_s3 + $0xa8] sm:$0xff]  }
  0x1f   : > { %3333 = vmatpush3.bf16.msra.mxu0 %v3878_v26  ;;  %3854 = vmatpush3.bf16.msra.mxu1 %v3878_v26  ;;  %v3205_v26 = vunpack.c.h.bf16 %v3303_v15  ;;  %447 = vst [vmem:[#allocation2 + $0x31] sm:$0xff] %v414_v23  ;;  %448 = vst [vmem:[#allocation2 + $0x39] sm:$0xff] %v415_v24  ;;  %v384_v42 = vadd.f32 %v4088_v19, %v345_v30 }
  0x20   : > { %v520_v37 = vld [vmem:[#allocation2] sm:$0xff]  ;;  %3334 = vmatprep.subr.bf16.mxu0 %v3879_v29  ;;  %3847 = vmatprep.subr.bf16.mxu1 %v3879_v29  ;;  %471 = vst [vmem:[#allocation2 + $0x151] sm:$0xff] %v438_v25 }
  0x21   : > { %v552_v48 = vpack.c.bf16 %v3946_v2, %v520_v37  ;;  %v3201_v2 = vunpack.c.h.bf16 %v3302_v57  ;;  %v4174_v37 = vpack.c.bf16 %v415_v24, %v414_v23  ;;  %v370_v38 = vmul.f32 %v3205_v26, %v4083_v18  ;;  %v3897_v23 = vld [vmem:[%s5048_s3 + $0xf0] sm:$0xff]  }
  0x22   : > { %v544_v58 = vld [vmem:[#allocation2 + $0x120] sm:$0xff]  ;;  %v545_v59 = vld [vmem:[#allocation2 + $0x128] sm:$0xff] }
  0x23   : > { %3335 = vmatpush3.bf16.msra.mxu0 %v3880_v32  ;;  %3855 = vmatpush3.bf16.msra.mxu1 %v3880_v32  ;;  %v564_v0 = vpack.c.bf16 %v545_v59, %v544_v58  ;;  %v368_v9 = vmul.f32 %v3201_v2, %v4083_v18  ;;  %v369_v32 = vmul.f32 %v3204_v22, %v4083_v18  ;;  %v522_v33 = vld [vmem:[#allocation2 + $0x18] sm:$0xff]  ;;  %v523_v34 = vld [vmem:[#allocation2 + $0x20] sm:$0xff]  ;;  %v3294_v22 = vld [vmem:[%s4071_s20 + $0x28] sm:$0xff]  }
  0x24   : > { %3432 = vmatprep.subr.bf16.mxu1 %v3881_v39  ;;  %3544 = vmatprep.subr.bf16.mxu0 %v3882_v43  ;;  %v546_v35 = vld [vmem:[#allocation2 + $0x138] sm:$0xff]  ;;  %v4177_v39 = vpack.c.bf16 %v523_v34, %v522_v33  ;;  %v547_v40 = vld [vmem:[#allocation2 + $0x140] sm:$0xff]  ;;  %v385_v43 = vadd.f32 %v4088_v19, %v346_v31  ;;  %v409_v46 = vadd.f32 %v4088_v19, %v370_v38  ;;  %v3899_v31 = vld [vmem:[%s5048_s3 + $0xb0] sm:$0xff]  }
  0x25   : > { %v407_v17 = vadd.f32 %v4088_v19, %v368_v9  ;;  %v565_v44 = vpack.c.bf16 %v547_v40, %v546_v35  ;;  %v408_v45 = vadd.f32 %v4088_v19, %v369_v32  ;;  %v348_v2 = vmul.f32 %v3161_v56, %v4083_v18  ;;  %v3906_v9 = vld [vmem:[%s5048_s3 + $0x118] sm:$0xff]  }
  0x26   : > { %1850 = vmatmul.mubr.bf16.vlgmr.msra.gmra.mrb[0].mxu0 %v552_v48  ;;  %1946 = vmatmul.mubr.bf16.vlgmr.msra.gmra.mrb[0].mxu1 %v564_v0  ;;  %v416_v48 = vmax.f32 %v384_v42, 0.0  ;;  %v441_v51 = vmax.f32 %v409_v46, 0.0  ;;  %v524_v57 = vld [vmem:[#allocation2 + $0x30] sm:$0xff]  ;;  %v525_v58 = vld [vmem:[#allocation2 + $0x38] sm:$0xff]  ;;  %v347_v0 = vmul.f32 %v3160_v55, %v4083_v18  ;;  %v3909_v42 = vld [vmem:[%s5048_s3 + $0x120] sm:$0xff]  }
  0x27   : > { %3545 = vmatpush3.bf16.msra.mxu0 %v3884_v50  ;;  %3433 = vmatpush3.bf16.msra.mxu1 %v3883_v49  ;;  %v439_v29 = vmax.f32 %v407_v17, 0.0  ;;  %v417_v49 = vmax.f32 %v385_v43, 0.0  ;;  %v440_v50 = vmax.f32 %v408_v45, 0.0  ;;  %v548_v59 = vld [vmem:[#allocation2 + $0x150] sm:$0xff]  ;;  %v4198_v61 = vpack.c.bf16 %v525_v58, %v524_v57  ;;  %v3901_v35 = vld [vmem:[%s5048_s3 + $0xf8] sm:$0xff]   ;;  %v648_v45 = vld [vmem:[#allocation2 + $0x2] sm:$0xff] }
  0x28   : > { %1857 = vmatprep.mubr.bf16.mxu0 %v4137_v1  ;;  %3434 = vmatprep.subr.bf16.mxu1 %v3885_v52  ;;  %v3891_v52 = vld [vmem:[%s5048_s3 + $0x98] sm:$0xff]   ;;  %449 = vst [vmem:[#allocation2 + $0x49] sm:$0xff] %v416_v48  ;;  %474 = vst [vmem:[#allocation2 + $0x171] sm:$0xff] %v441_v51  ;;  %v386_v6 = vadd.f32 %v4088_v19, %v347_v0  ;;  %v387_v7 = vadd.f32 %v4088_v19, %v348_v2  ;;  %v3295_v43 = vld [vmem:[%s4071_s20 + $0x30] sm:$0xff]  }
  0x29   : > { %1953 = vmatprep.mubr.bf16.mxu1 %v629_v3  ;;  %3546 = vmatprep.subr.bf16.mxu0 %v3890_v4  ;;  %472 = vst [vmem:[#allocation2 + $0x159] sm:$0xff] %v439_v29  ;;  %v630_v41 = vpack.c.bf16 %v439_v29, %v438_v25  ;;  %450 = vst [vmem:[#allocation2 + $0x51] sm:$0xff] %v417_v49  ;;  %v4200_v63 = vpack.c.bf16 %v417_v49, %v416_v48  ;;  %v3895_v4 = vld [vmem:[%s5048_s3 + $0xe8] sm:$0xff]   ;;  %v3168_v25 = vunpack.c.l.bf16 %v3294_v22  ;;  %v3907_v29 = vld [vmem:[%s5048_s3 + $0x160] sm:$0xff]  }
  0x2a   : > { %473 = vst [vmem:[#allocation2 + $0x169] sm:$0xff] %v440_v50  ;;  %v631_v5 = vpack.c.bf16 %v441_v51, %v440_v50  ;;  %v418_v14 = vmax.f32 %v386_v6, 0.0  ;;  %v419_v15 = vmax.f32 %v387_v7, 0.0  ;;  %v649_v46 = vld [vmem:[#allocation2 + $0xa] sm:$0xff]  ;;  %v3172_v49 = vunpack.c.l.bf16 %v3295_v43  ;;  %v3903_v58 = vld [vmem:[%s5048_s3 + $0x1c0] sm:$0xff]  }
  0x2b   : > { %3547 = vmatpush3.bf16.msra.mxu0 %v3892_v8  ;;  %3435 = vmatpush3.bf16.msra.mxu1 %v3886_v10  ;;  %v3905_v8 = vld [vmem:[%s5048_s3 + $0x158] sm:$0xff]   ;;  %v3293_v10 = vld [vmem:[%s4071_s20 + $0x20] sm:$0xff]   ;;  %v351_v34 = vmul.f32 %v3168_v25, %v4083_v18  ;;  %v3173_v50 = vunpack.c.h.bf16 %v3295_v43 }
  0x2c   : > { %3548 = vmatprep.subr.bf16.mxu0 %v3898_v27  ;;  %3436 = vmatprep.subr.bf16.mxu1 %v3887_v16  ;;  %v3164_v16 = vunpack.c.l.bf16 %v3293_v10  ;;  %v3165_v17 = vunpack.c.h.bf16 %v3293_v10  ;;  %451 = vst [vmem:[#allocation2 + $0x61] sm:$0xff] %v418_v14  ;;  %452 = vst [vmem:[#allocation2 + $0x69] sm:$0xff] %v419_v15  ;;  %v4240_v32 = vpack.c.bf16 %v419_v15, %v418_v14 }
  0x2d   : > { %v353_v56 = vmul.f32 %v3172_v49, %v4083_v18  ;;  %v354_v57 = vmul.f32 %v3173_v50, %v4083_v18 }
  0x2e   : > { %1858 = vmatmul.mubr.bf16.gmra.mrb[4].mxu0 %v4177_v39  ;;  %1954 = vmatmul.mubr.bf16.gmra.mrb[4].mxu1 %v565_v44  ;;  %v349_v24 = vmul.f32 %v3164_v16, %v4083_v18  ;;  %v350_v27 = vmul.f32 %v3165_v17, %v4083_v18  ;;  %v3902_v44 = vld [vmem:[%s5048_s3 + $0xb8] sm:$0xff]   ;;  %v3915_v16 = vld [vmem:[%s5048_s3 + $0x170] sm:$0xff]  }
  0x2f   : > { %1865 = vmatprep.mubr.bf16.mxu0 %v4174_v37  ;;  %3437 = vmatpush3.bf16.msra.mxu1 %v3888_v28  ;;  %v526_v12 = vld [vmem:[#allocation2 + $0x48] sm:$0xff]  ;;  %v3169_v28 = vunpack.c.h.bf16 %v3294_v22  ;;  %v4288_v0 = vadd.f32 %v4088_v19, %v354_v57  ;;  %v650_v17 = vld [vmem:[#allocation2 + $0x1a] sm:$0xff]  ;;  %v3299_v57 = vld [vmem:[%s4071_s20 + $0x50] sm:$0xff]  }
  0x30   : > { %1961 = vmatprep.mubr.bf16.mxu1 %v630_v41  ;;  %3438 = vmatprep.subr.bf16.mxu1 %v3889_v36  ;;  %v549_v62 = vld [vmem:[#allocation2 + $0x158] sm:$0xff]  ;;  %v527_v13 = vld [vmem:[#allocation2 + $0x50] sm:$0xff]  ;;  %v388_v33 = vadd.f32 %v4088_v19, %v349_v24  ;;  %v389_v36 = vadd.f32 %v4088_v19, %v350_v27  ;;  %v4250_v41 = vadd.f32 %v4088_v19, %v351_v34  ;;  %v651_v24 = vld [vmem:[#allocation2 + $0x22] sm:$0xff] }
  0x31   : > { %3549 = vmatpush3.bf16.msra.mxu0 %v3900_v47  ;;  %v4204_v3 = vpack.c.bf16 %v549_v62, %v548_v59  ;;  %v550_v20 = vld [vmem:[#allocation2 + $0x168] sm:$0xff]  ;;  %v551_v21 = vld [vmem:[#allocation2 + $0x170] sm:$0xff]  ;;  %v4229_v26 = vpack.c.bf16 %v527_v13, %v526_v12  ;;  %v352_v38 = vmul.f32 %v3169_v28, %v4083_v18  ;;  %v3296_v59 = vld [vmem:[%s4071_s20 + $0x38] sm:$0xff]   ;;  %v4285_v62 = vadd.f32 %v4088_v19, %v353_v56 }
  0x32   : > { %3550 = vmatprep.subr.bf16.mxu0 %v3905_v8  ;;  %v4235_v30 = vpack.c.bf16 %v551_v21, %v550_v20  ;;  %v420_v40 = vmax.f32 %v388_v33, 0.0  ;;  %v421_v47 = vmax.f32 %v389_v36, 0.0  ;;  %v422_v51 = vmax.f32 %v4250_v41, 0.0  ;;  %v3908_v8 = vld [vmem:[%s5048_s3 + $0x1c8] sm:$0xff]   ;;  %v3297_v12 = vld [vmem:[%s4071_s20 + $0x40] sm:$0xff]   ;;  %v3916_v21 = vld [vmem:[%s5048_s3 + $0x130] sm:$0xff]  }
  0x33   : > { %3439 = vmatpush3.bf16.msra.mxu1 %v3891_v52  ;;  %v4261_v48 = vadd.f32 %v4088_v19, %v352_v38  ;;  %v3911_v52 = vld [vmem:[%s5048_s3 + $0x168] sm:$0xff]   ;;  %v528_v53 = vld [vmem:[#allocation2 + $0x60] sm:$0xff]  ;;  %v3176_v2 = vunpack.c.l.bf16 %v3296_v59  ;;  %v3177_v7 = vunpack.c.h.bf16 %v3296_v59  ;;  %v425_v10 = vmax.f32 %v4288_v0, 0.0  ;;  %v3919_v41 = vld [vmem:[%s5048_s3 + $0x178] sm:$0xff]  }
  0x34   : > { %3440 = vmatprep.subr.bf16.mxu1 %v3893_v54  ;;  %453 = vst [vmem:[#allocation2 + $0x79] sm:$0xff] %v420_v40  ;;  %v529_v54 = vld [vmem:[#allocation2 + $0x68] sm:$0xff]  ;;  %454 = vst [vmem:[#allocation2 + $0x81] sm:$0xff] %v421_v47  ;;  %v4293_v6 = vpack.c.bf16 %v421_v47, %v420_v40  ;;  %v3180_v14 = vunpack.c.l.bf16 %v3297_v12  ;;  %v3181_v15 = vunpack.c.h.bf16 %v3297_v12  ;;  %v3920_v56 = vld [vmem:[%s5048_s3 + $0x138] sm:$0xff]   ;;  %v3188_v59 = vunpack.c.l.bf16 %v3299_v57 }
  0x35   : > { %3551 = vmatpush3.bf16.msra.mxu0 %v3906_v9  ;;  %v423_v55 = vmax.f32 %v4261_v48, 0.0  ;;  %455 = vst [vmem:[#allocation2 + $0x91] sm:$0xff] %v422_v51  ;;  %v424_v9 = vmax.f32 %v4285_v62, 0.0  ;;  %v356_v13 = vmul.f32 %v3177_v7, %v4083_v18  ;;  %458 = vst [vmem:[#allocation2 + $0xb1] sm:$0xff] %v425_v10  ;;  %v3298_v33 = vld [vmem:[%s4071_s20 + $0x48] sm:$0xff]  }
  0x36   : > { %1866 = vmatmul.mubr.bf16.gmra.mrb[8].mxu0 %v4198_v61  ;;  %1962 = vmatmul.mubr.bf16.gmra.mrb[8].mxu1 %v4204_v3  ;;  %v357_v27 = vmul.f32 %v3180_v14, %v4083_v18  ;;  %v358_v28 = vmul.f32 %v3181_v15, %v4083_v18  ;;  %v3185_v43 = vunpack.c.h.bf16 %v3298_v33  ;;  %v361_v7 = vmul.f32 %v3188_v59, %v4083_v18  ;;  %v3924_v0 = vld [vmem:[%s5048_s3 + $0x1e8] sm:$0xff]  }
  0x37   : > { %1873 = vmatprep.mubr.bf16.mxu0 %v4200_v63  ;;  %3441 = vmatpush3.bf16.msra.mxu1 %v3894_v60  ;;  %v4282_v60 = vpack.c.bf16 %v529_v54, %v528_v53  ;;  %456 = vst [vmem:[#allocation2 + $0x99] sm:$0xff] %v423_v55  ;;  %457 = vst [vmem:[#allocation2 + $0xa9] sm:$0xff] %v424_v9  ;;  %v4319_v25 = vadd.f32 %v4088_v19, %v356_v13  ;;  %v652_v53 = vld [vmem:[#allocation2 + $0x32] sm:$0xff]  ;;  %v653_v54 = vld [vmem:[#allocation2 + $0x3a] sm:$0xff] }
  0x38   : > { %1969 = vmatprep.mubr.bf16.mxu1 %v631_v5  ;;  %3442 = vmatprep.subr.bf16.mxu1 %v3895_v4  ;;  %v680_v4 = vpack.c.bf16 %v649_v46, %v648_v45  ;;  %v3904_v5 = vld [vmem:[%s5048_s3 + $0x180] sm:$0xff]   ;;  %v4334_v36 = vadd.f32 %v4088_v19, %v357_v27  ;;  %v4337_v38 = vadd.f32 %v4088_v19, %v358_v28  ;;  %v3914_v45 = vld [vmem:[%s5048_s3 + $0x190] sm:$0xff]  }
  0x39   : > { %3552 = vmatprep.subr.bf16.mxu0 %v3907_v29  ;;  %v3910_v29 = vld [vmem:[%s5048_s3 + $0x188] sm:$0xff]   ;;  %v427_v34 = vmax.f32 %v4319_v25, 0.0  ;;  %v360_v49 = vmul.f32 %v3185_v43, %v4083_v18  ;;  %v4403_v13 = vpack.c.bf16 %v653_v54, %v652_v53  ;;  %v4409_v14 = vpack.c.bf16 %v425_v10, %v424_v9 }
  0x3a   : > { %3553 = vmatpush3.bf16.msra.mxu0 %v3909_v42  ;;  %v4341_v42 = vpack.c.bf16 %v651_v24, %v650_v17  ;;  %v428_v46 = vmax.f32 %v4334_v36, 0.0  ;;  %v429_v47 = vmax.f32 %v4337_v38, 0.0  ;;  %v4412_v15 = vadd.f32 %v4088_v19, %v361_v7  ;;  %v3923_v17 = vld [vmem:[%s5048_s3 + $0x1a0] sm:$0xff]   ;;  %v3926_v24 = vld [vmem:[%s5048_s3 + $0x1a8] sm:$0xff]  }
  0x3b   : > { %3443 = vmatpush3.bf16.msra.mxu1 %v3896_v11  ;;  %3554 = vmatprep.subr.bf16.mxu0 %v3911_v52  ;;  %v355_v11 = vmul.f32 %v3176_v2, %v4083_v18  ;;  %v530_v22 = vld [vmem:[#allocation2 + $0x78] sm:$0xff]  ;;  %460 = vst [vmem:[#allocation2 + $0xc9] sm:$0xff] %v427_v34  ;;  %v3189_v2 = vunpack.c.h.bf16 %v3299_v57  ;;  %v656_v25 = vld [vmem:[#allocation2 + $0x62] sm:$0xff] }
  0x3c   : > { %3444 = vmatprep.subr.bf16.mxu1 %v3897_v23  ;;  %v531_v23 = vld [vmem:[#allocation2 + $0x80] sm:$0xff]  ;;  %461 = vst [vmem:[#allocation2 + $0xd9] sm:$0xff] %v428_v46  ;;  %462 = vst [vmem:[#allocation2 + $0xe1] sm:$0xff] %v429_v47  ;;  %v532_v52 = vld [vmem:[#allocation2 + $0x90] sm:$0xff] }
  0x3d   : > { %v4312_v20 = vadd.f32 %v4088_v19, %v355_v11  ;;  %v4339_v40 = vpack.c.bf16 %v531_v23, %v530_v22  ;;  %v4397_v11 = vld [vmem:[%s5048_s3 + $0x200] sm:$0xff]   ;;  %v654_v22 = vld [vmem:[#allocation2 + $0x4a] sm:$0xff]  ;;  %v655_v23 = vld [vmem:[#allocation2 + $0x52] sm:$0xff] }
  0x3e   : > { %1874 = vmatmul.mubr.bf16.gmra.mrb[12].mxu0 %v4229_v26  ;;  %1970 = vmatmul.mubr.bf16.gmra.mrb[12].mxu1 %v4235_v30  ;;  %v534_v9 = vld [vmem:[#allocation2 + $0xa8] sm:$0xff]  ;;  %v535_v10 = vld [vmem:[#allocation2 + $0xb0] sm:$0xff]  ;;  %v4439_v28 = vpack.c.bf16 %v655_v23, %v654_v22 }
  0x3f   : > { %1881 = vmatprep.mubr.bf16.mxu0 %v4240_v32  ;;  %3445 = vmatpush3.bf16.msra.mxu1 %v3899_v31  ;;  %v426_v31 = vmax.f32 %v4312_v20, 0.0  ;;  %v4437_v27 = vpack.c.bf16 %v535_v10, %v534_v9  ;;  %v3929_v20 = vld [vmem:[%s5048_s3 + $0x1b0] sm:$0xff]   ;;  %v659_v54 = vld [vmem:[#allocation2 + $0x82] sm:$0xff] }
  0x40   : > { %2010 = vmatprep.mubr.bf16.mxu1 %v4177_v39  ;;  %3446 = vmatprep.subr.bf16.mxu1 %v3901_v35  ;;  %v3912_v39 = vld [vmem:[%s5048_s3 + $0x128] sm:$0xff]   ;;  %v3913_v35 = vld [vmem:[%s5048_s3 + $0x1d0] sm:$0xff]  }
  0x41   : > { %3555 = vmatpush3.bf16.msra.mxu0 %v3912_v39  ;;  %459 = vst [vmem:[#allocation2 + $0xc1] sm:$0xff] %v426_v31  ;;  %v663_v9 = vld [vmem:[#allocation2 + $0xb2] sm:$0xff]  ;;  %v3925_v23 = vld [vmem:[%s5048_s3 + $0x208] sm:$0xff]  }
  0x42   : > { %3556 = vmatprep.subr.bf16.mxu0 %v3915_v16 }
  0x43   : > { %3447 = vmatpush3.bf16.msra.mxu1 %v3902_v44  ;;  %v4347_v44 = vpack.c.bf16 %v423_v55, %v422_v51  ;;  %v3917_v51 = vld [vmem:[%s5048_s3 + $0x1d8] sm:$0xff]   ;;  %v4373_v55 = vadd.f32 %v4088_v19, %v360_v49  ;;  %v539_v53 = vld [vmem:[#allocation2 + $0xe0] sm:$0xff] }
  0x44   : > { %3656 = vmatprep.subr.bf16.mxu1 %v3903_v58  ;;  %v533_v58 = vld [vmem:[#allocation2 + $0x98] sm:$0xff] }
  0x45   : > { %3557 = vmatpush3.bf16.msra.mxu0 %v3916_v21  ;;  %v4399_v12 = vpack.c.bf16 %v533_v58, %v532_v52  ;;  %v432_v21 = vmax.f32 %v4412_v15, 0.0  ;;  %v3304_v49 = vld [vmem:[%s4071_s20 + $0x78] sm:$0xff]   ;;  %s268_s20 = scalar_lea.vmem %s5051_s6, %s5053_s22 }
  0x46   : > { %1882 = vmatmul.mubr.bf16.gmra.mrb[16].mxu0 %v4282_v60  ;;  %2011 = vmatmul.mubr.bf16.vlgmr.msra.gmra.mrb[16].mxu1 %v680_v4  ;;  %v431_v4 = vmax.f32 %v4373_v55, 0.0  ;;  %v3209_v52 = vunpack.c.h.bf16 %v3304_v49  ;;  %v538_v36 = vld [vmem:[#allocation2 + $0xd8] sm:$0xff] }
  0x47   : > { %1889 = vmatprep.mubr.bf16.mxu0 %v4293_v6  ;;  %3657 = vmatpush3.bf16.msra.mxu1 %v3904_v5  ;;  %v3918_v5 = vld [vmem:[%s5048_s3 + $0x198] sm:$0xff]   ;;  %465 = vst [vmem:[#allocation2 + $0x109] sm:$0xff] %v432_v21  ;;  %v4482_v58 = vpack.c.bf16 %v539_v53, %v538_v36 }
  0x48   : > { %2018 = vmatprep.mubr.bf16.mxu1 %v4198_v61  ;;  %3658 = vmatprep.subr.bf16.mxu1 %v3908_v8  ;;  %v3184_v61 = vunpack.c.l.bf16 %v3298_v33  ;;  %v362_v8 = vmul.f32 %v3189_v2, %v4083_v18  ;;  %464 = vst [vmem:[#allocation2 + $0xf9] sm:$0xff] %v431_v4  ;;  %v3927_v33 = vld [vmem:[%s5048_s3 + $0x1f0] sm:$0xff]  }
  0x49   : > { %3558 = vmatprep.subr.bf16.mxu0 %v3919_v41  ;;  %v3932_v41 = vld [vmem:[%s5048_s3 + $0x1b8] sm:$0xff]  }
  0x4a   : > { %v359_v48 = vmul.f32 %v3184_v61, %v4083_v18  ;;  %3559 = vmatpush3.bf16.msra.mxu0 %v3920_v56  ;;  %v4415_v16 = vadd.f32 %v4088_v19, %v362_v8  ;;  %v537_v61 = vld [vmem:[#allocation2 + $0xc8] sm:$0xff]  ;;  %v660_v8 = vld [vmem:[#allocation2 + $0x92] sm:$0xff] }
  0x4b   : > { %3659 = vmatpush3.bf16.msra.mxu1 %v3910_v29  ;;  %3792 = vmatprep.subr.bf16.mxu0 %v4397_v11  ;;  %v4445_v29 = vpack.c.bf16 %v427_v34, %v426_v31  ;;  %v657_v31 = vld [vmem:[#allocation2 + $0x6a] sm:$0xff]  ;;  %v3930_v34 = vld [vmem:[%s5048_s3 + $0x1f8] sm:$0xff]  }
  0x4c   : > { %3660 = vmatprep.subr.bf16.mxu1 %v3913_v35  ;;  %v4366_v50 = vadd.f32 %v4088_v19, %v359_v48  ;;  %v433_v62 = vmax.f32 %v4415_v16, 0.0  ;;  %v536_v35 = vld [vmem:[#allocation2 + $0xc0] sm:$0xff]  ;;  %v4468_v48 = vpack.c.bf16 %v429_v47, %v428_v46  ;;  %v372_v46 = vmul.f32 %v3209_v52, %v4083_v18  ;;  %v3935_v52 = vld [vmem:[%s5048_s3 + $0x230] sm:$0xff]  }
  0x4d   : > { %v4460_v43 = vpack.c.bf16 %v537_v61, %v536_v35  ;;  %v658_v47 = vld [vmem:[#allocation2 + $0x7a] sm:$0xff]  ;;  %v664_v16 = vld [vmem:[#allocation2 + $0xc2] sm:$0xff] }
  0x4e   : > { %1890 = vmatmul.mubr.bf16.gmra.mrb[20].mxu0 %v4339_v40  ;;  %2019 = vmatmul.mubr.bf16.gmra.mrb[20].mxu1 %v4341_v42  ;;  %v430_v39 = vmax.f32 %v4366_v50, 0.0  ;;  %466 = vst [vmem:[#allocation2 + $0x111] sm:$0xff] %v433_v62  ;;  %v411_v57 = vadd.f32 %v4088_v19, %v372_v46  ;;  %v4484_v59 = vpack.c.bf16 %v659_v54, %v658_v47  ;;  %v661_v50 = vld [vmem:[#allocation2 + $0x9a] sm:$0xff]  ;;  %v673_v46 = vld [vmem:[#allocation2 + $0x12a] sm:$0xff] }
  0x4f   : > { %1897 = vmatprep.mubr.bf16.mxu0 %v4347_v44  ;;  %2026 = vmatprep.mubr.bf16.mxu1 %v4229_v26  ;;  %v3921_v26 = vld [vmem:[%s5048_s3 + $0x1e0] sm:$0xff]   ;;  %v4498_v55 = vpack.c.bf16 %v661_v50, %v660_v8 }
  0x50   : > { %3661 = vmatpush3.bf16.msra.mxu1 %v3914_v45  ;;  %463 = vst [vmem:[#allocation2 + $0xf1] sm:$0xff] %v430_v39  ;;  %v4462_v45 = vpack.c.bf16 %v657_v31, %v656_v25  ;;  %v4490_v2 = vpack.c.bf16 %v431_v4, %v430_v39  ;;  %v4504_v39 = vpack.c.bf16 %v433_v62, %v432_v21  ;;  %v542_v4 = vld [vmem:[#allocation2 + $0x108] sm:$0xff]  ;;  %v734_v61 = vld [vmem:[#allocation2 + $0x120] sm:$0xff] }
  0x51   : > { %3662 = vmatprep.subr.bf16.mxu1 %v3917_v51  ;;  %v3208_v51 = vunpack.c.l.bf16 %v3304_v49  ;;  %v665_v21 = vld [vmem:[#allocation2 + $0xca] sm:$0xff]  ;;  %v3933_v25 = vld [vmem:[%s5048_s3 + $0x220] sm:$0xff]   ;;  %v736_v49 = vld [vmem:[#allocation2 + $0x138] sm:$0xff] }
  0x52   : > { %v4520_v62 = vpack.c.bf16 %v665_v21, %v664_v16  ;;  %v674_v54 = vld [vmem:[#allocation2 + $0x13a] sm:$0xff]  ;;  %v905_v16 = vld [vmem:[#allocation2 + $0x30] sm:$0xff] }
  0x53   : > { %v371_v38 = vmul.f32 %v3208_v51, %v4083_v18  ;;  %v443_v18 = vmax.f32 %v411_v57, 0.0  ;;  %v737_v51 = vld [vmem:[#allocation2 + $0x140] sm:$0xff]  ;;  %v906_v21 = vld [vmem:[#allocation2 + $0x38] sm:$0xff] }
  0x54   : > { %3663 = vmatpush3.bf16.msra.mxu1 %v3918_v5  ;;  %v4561_v53 = vpack.c.bf16 %v737_v51, %v736_v49 }
  0x55   : > { %3664 = vmatprep.subr.bf16.mxu1 %v3921_v26  ;;  %v410_v56 = vadd.f32 %v4088_v19, %v371_v38  ;;  %476 = vst [vmem:[#allocation2 + $0x189] sm:$0xff] %v443_v18  ;;  %v672_v38 = vld [vmem:[#allocation2 + $0x122] sm:$0xff] }
  0x56   : > { %1898 = vmatmul.mubr.bf16.gmra.mrb[24].mxu0 %v4399_v12  ;;  %2027 = vmatmul.mubr.bf16.gmra.mrb[24].mxu1 %v4403_v13  ;;  %v4570_v47 = vpack.c.bf16 %v673_v46, %v672_v38 }
  0x57   : > { %1905 = vmatprep.mubr.bf16.mxu0 %v4409_v14  ;;  %2034 = vmatprep.mubr.bf16.mxu1 %v4282_v60  ;;  %v442_v5 = vmax.f32 %v410_v56, 0.0  ;;  %v540_v19 = vld [vmem:[#allocation2 + $0xf0] sm:$0xff]  ;;  %v541_v7 = vld [vmem:[#allocation2 + $0xf8] sm:$0xff]  ;;  %v675_v56 = vld [vmem:[#allocation2 + $0x142] sm:$0xff] }
  0x58   : > { %3665 = vmatpush3.bf16.msra.mxu1 %v3923_v17  ;;  %v4496_v26 = vpack.c.bf16 %v541_v7, %v540_v19  ;;  %v543_v17 = vld [vmem:[#allocation2 + $0x110] sm:$0xff]  ;;  %v4576_v57 = vpack.c.bf16 %v675_v56, %v674_v54 }
  0x59   : > { %3666 = vmatprep.subr.bf16.mxu1 %v3924_v0  ;;  %475 = vst [vmem:[#allocation2 + $0x181] sm:$0xff] %v442_v5  ;;  %v662_v0 = vld [vmem:[#allocation2 + $0xaa] sm:$0xff]  ;;  %v4510_v10 = vpack.c.bf16 %v543_v17, %v542_v4  ;;  %v4514_v15 = vpack.c.bf16 %v443_v18, %v442_v5  ;;  %v676_v5 = vld [vmem:[#allocation2 + $0x152] sm:$0xff]  ;;  %v677_v18 = vld [vmem:[#allocation2 + $0x15a] sm:$0xff] }
  0x5a   : > { %v4512_v22 = vpack.c.bf16 %v663_v9, %v662_v0  ;;  %v4582_v8 = vpack.c.bf16 %v677_v18, %v676_v5  ;;  %v679_v4 = vld [vmem:[#allocation2 + $0x172] sm:$0xff] }
  0x5b   : > { %v969_v17 = vld [vmem:[#allocation2 + $0x31] sm:$0xff] }
  0x5c   : > { %3667 = vmatpush3.bf16.msra.mxu1 %v3926_v24  ;;  %v667_v24 = vld [vmem:[#allocation2 + $0xe2] sm:$0xff] }
  0x5d   : > { %3668 = vmatprep.subr.bf16.mxu1 %v3927_v33  ;;  %v3928_v33 = vld [vmem:[%s5048_s3 + $0x210] sm:$0xff]  }
  0x5e   : > { %1906 = vmatmul.mubr.bf16.gmra.mrb[28].mxu0 %v4437_v27  ;;  %2035 = vmatmul.mubr.bf16.gmra.mrb[28].mxu1 %v4439_v28 }
  0x5f   : > { %1913 = vmatprep.mubr.bf16.mxu0 %v4445_v29  ;;  %2042 = vmatprep.mubr.bf16.mxu1 %v4339_v40 }
  0x60   : > { %3669 = vmatpush3.bf16.msra.mxu1 %v3929_v20  ;;  %v735_v20 = vld [vmem:[#allocation2 + $0x128] sm:$0xff]  ;;  %v742_v19 = vld [vmem:[#allocation2 + $0x180] sm:$0xff] }
  0x61   : > { %3670 = vmatprep.subr.bf16.mxu1 %v3930_v34  ;;  %v4547_v34 = vpack.c.bf16 %v735_v20, %v734_v61  ;;  %v743_v7 = vld [vmem:[#allocation2 + $0x188] sm:$0xff] }
  0x62   : > { %v4584_v50 = vpack.c.bf16 %v743_v7, %v742_v19  ;;  %v798_v61 = vld [vmem:[#allocation2 + $0x121] sm:$0xff]  ;;  %v799_v20 = vld [vmem:[#allocation2 + $0x129] sm:$0xff] }
  0x63   : > { %v870_v49 = vld [vmem:[#allocation2 + $0x182] sm:$0xff] }
  0x64   : > { %3671 = vmatpush3.bf16.msra.mxu1 %v3932_v41  ;;  %v671_v41 = vld [vmem:[#allocation2 + $0x112] sm:$0xff] }
  0x66   : > { %1914 = vmatmul.mubr.bf16.gmra.mrb[32].mxu0 %v4460_v43  ;;  %2043 = vmatmul.mubr.bf16.gmra.mrb[32].mxu1 %v4462_v45 }
  0x67   : > { %1921 = vmatprep.mubr.bf16.mxu0 %v4468_v48  ;;  %2050 = vmatprep.mubr.bf16.mxu1 %v4399_v12 }
  0x6e   : > { %1922 = vmatmul.mubr.bf16.gmra.mrb[36].mxu0 %v4482_v58  ;;  %2051 = vmatmul.mubr.bf16.gmra.mrb[36].mxu1 %v4484_v59 }
  0x6f   : > { %1929 = vmatprep.mubr.bf16.mxu0 %v4490_v2  ;;  %2058 = vmatprep.mubr.bf16.mxu1 %v4437_v27 }
  0x76   : > { %1930 = vmatmul.mubr.bf16.gmra.mrb[40].mxu0 %v4496_v26  ;;  %2059 = vmatmul.mubr.bf16.gmra.mrb[40].mxu1 %v4498_v55 }
  0x77   : > { %1937 = vmatprep.mubr.bf16.mxu0 %v4504_v39  ;;  %2066 = vmatprep.mubr.bf16.mxu1 %v4460_v43 }
  0x7e   : > { %1938 = vmatmul.mubr.bf16.gmra.mrb[44].mxu0 %v4510_v10  ;;  %2067 = vmatmul.mubr.bf16.gmra.mrb[44].mxu1 %v4512_v22 }
  0x7f   : > { %2171 = vmatprep.mubr.bf16.mxu0 %v4341_v42  ;;  %2074 = vmatprep.mubr.bf16.mxu1 %v4482_v58  ;;  %v666_v42 = vld [vmem:[#allocation2 + $0xda] sm:$0xff] }
  0x80   : > { %v4533_v35 = vpack.c.bf16 %v667_v24, %v666_v42  ;;  %v972_v42 = vld [vmem:[#allocation2 + $0x51] sm:$0xff]  ;;  %v937_v24 = vpack.c.bf16 %v906_v21, %v905_v16 }
  0x86   : > { %2172 = vmatmul.mubr.bf16.vlgmr.msra.gmra.mrb[48].mxu0 %v4137_v1  ;;  %2075 = vmatmul.mubr.bf16.gmra.mrb[48].mxu1 %v4520_v62  ;;  %v3931_v1 = vld [vmem:[%s5048_s3 + $0x218] sm:$0xff]  }
  0x87   : > { %3793 = vmatpush3.bf16.msra.mxu0 %v4397_v11  ;;  %2082 = vmatprep.mubr.bf16.mxu1 %v4496_v26  ;;  %v668_v11 = vld [vmem:[#allocation2 + $0xf2] sm:$0xff] }
  0x88   : > { %2179 = vmatprep.mubr.bf16.mxu0 %v4403_v13  ;;  %3794 = vmatprep.subr.bf16.mxu0 %v3925_v23  ;;  %v669_v13 = vld [vmem:[#allocation2 + $0xfa] sm:$0xff] }
  0x89   : > { %v4545_v31 = vpack.c.bf16 %v669_v13, %v668_v11  ;;  %v908_v11 = vld [vmem:[#allocation2 + $0x50] sm:$0xff] }
  0x8b   : > { %3795 = vmatpush3.bf16.msra.mxu0 %v3925_v23  ;;  %v971_v23 = vld [vmem:[#allocation2 + $0x49] sm:$0xff] }
  0x8c   : > { %3796 = vmatprep.subr.bf16.mxu0 %v3928_v33 }
  0x8e   : > { %2180 = vmatmul.mubr.bf16.gmra.mrb[52].mxu0 %v4174_v37  ;;  %2083 = vmatmul.mubr.bf16.gmra.mrb[52].mxu1 %v4533_v35  ;;  %v3934_v37 = vld [vmem:[%s5048_s3 + $0x228] sm:$0xff]  }
  0x8f   : > { %2187 = vmatprep.mubr.bf16.mxu0 %v4439_v28  ;;  %2090 = vmatprep.mubr.bf16.mxu1 %v4510_v10  ;;  %v670_v28 = vld [vmem:[#allocation2 + $0x10a] sm:$0xff] }
  0x90   : > { %3797 = vmatpush3.bf16.msra.mxu0 %v3928_v33  ;;  %v4559_v36 = vpack.c.bf16 %v671_v41, %v670_v28  ;;  %v1002_v33 = vpack.c.bf16 %v972_v42, %v971_v23 }
  0x91   : > { %3798 = vmatprep.subr.bf16.mxu0 %v3931_v1 }
  0x94   : > { %3799 = vmatpush3.bf16.msra.mxu0 %v3931_v1  ;;  %v907_v1 = vld [vmem:[#allocation2 + $0x48] sm:$0xff] }
  0x95   : > { %3800 = vmatprep.subr.bf16.mxu0 %v3933_v25  ;;  %v938_v13 = vpack.c.bf16 %v908_v11, %v907_v1 }
  0x96   : > { %2188 = vmatmul.mubr.bf16.gmra.mrb[56].mxu0 %v4200_v63  ;;  %2091 = vmatmul.mubr.bf16.gmra.mrb[56].mxu1 %v4545_v31  ;;  %v3936_v63 = vld [vmem:[%s5048_s3 + $0x238] sm:$0xff]  }
  0x97   : > { %2195 = vmatprep.mubr.bf16.mxu0 %v4462_v45  ;;  %2098 = vmatprep.mubr.bf16.mxu1 %v4547_v34 }
  0x98   : > { %3801 = vmatpush3.bf16.msra.mxu0 %v3933_v25  ;;  %v4604_v25 = vpack.c.bf16 %v799_v20, %v798_v61 }
  0x99   : > { %3802 = vmatprep.subr.bf16.mxu0 %v3934_v37 }
  0x9c   : > { %3803 = vmatpush3.bf16.msra.mxu0 %v3934_v37  ;;  %v800_v37 = vld [vmem:[#allocation2 + $0x139] sm:$0xff] }
  0x9d   : > { %3804 = vmatprep.subr.bf16.mxu0 %v3935_v52 }
  0x9e   : > { %2196 = vmatmul.mubr.bf16.gmra.mrb[60].mxu0 %v4240_v32  ;;  %2099 = vmatmul.mubr.bf16.gmra.mrb[60].mxu1 %v4559_v36 }
  0x9f   : > { %2203 = vmatprep.mubr.bf16.mxu0 %v4484_v59  ;;  %2106 = vmatprep.mubr.bf16.mxu1 %v4561_v53 }
  0xa0   : > { %3805 = vmatpush3.bf16.msra.mxu0 %v3935_v52 }
  0xa1   : > { %3806 = vmatprep.subr.bf16.mxu0 %v3936_v63 }
  0xa4   : > { %3807 = vmatpush3.bf16.msra.mxu0 %v3936_v63  ;;  %v1034_v63 = vld [vmem:[#allocation2 + $0x3a] sm:$0xff] }
  0xa6   : > { %2204 = vmatmul.mubr.bf16.gmra.mrb[64].mxu0 %v4293_v6  ;;  %2107 = vmatmul.mubr.bf16.gmra.mrb[64].mxu1 %v4570_v47 }
  0xa7   : > { %2211 = vmatprep.mubr.bf16.mxu0 %v4498_v55  ;;  %2114 = vmatprep.mubr.bf16.mxu1 %v4204_v3  ;;  %v678_v3 = vld [vmem:[#allocation2 + $0x16a] sm:$0xff] }
  0xa8   : > { %v4590_v0 = vpack.c.bf16 %v679_v4, %v678_v3 }
  0xae   : > { %2212 = vmatmul.mubr.bf16.gmra.mrb[68].mxu0 %v4347_v44  ;;  %2115 = vmatmul.mubr.bf16.gmra.mrb[68].mxu1 %v4576_v57 }
  0xaf   : > { %2219 = vmatprep.mubr.bf16.mxu0 %v4512_v22  ;;  %2122 = vmatprep.mubr.bf16.mxu1 %v4235_v30  ;;  %v970_v30 = vld [vmem:[#allocation2 + $0x39] sm:$0xff] }
  0xb0   : > { %v1001_v9 = vpack.c.bf16 %v970_v30, %v969_v17  ;;  %v1036_v17 = vld [vmem:[#allocation2 + $0x52] sm:$0xff] }
  0xb6   : > { %2220 = vmatmul.mubr.bf16.gmra.mrb[72].mxu0 %v4409_v14  ;;  %2123 = vmatmul.mubr.bf16.gmra.mrb[72].mxu1 %v4582_v8 }
  0xb7   : > { %2227 = vmatprep.mubr.bf16.mxu0 %v4520_v62  ;;  %2130 = vmatprep.mubr.bf16.mxu1 %v4584_v50 }
  0xbe   : > { %2228 = vmatmul.mubr.bf16.gmra.mrb[76].mxu0 %v4445_v29  ;;  %2131 = vmatmul.mubr.bf16.gmra.mrb[76].mxu1 %v4590_v0 }
  0xbf   : > { %2235 = vmatprep.mubr.bf16.mxu0 %v4533_v35  ;;  %2332 = vmatprep.mubr.bf16.mxu1 %v1001_v9 }
  0xc6   : > { %2236 = vmatmul.mubr.bf16.gmra.mrb[80].mxu0 %v4468_v48  ;;  %2333 = vmatmul.mubr.bf16.vlgmr.msra.gmra.mrb[80].mxu1 %v937_v24 }
  0xc7   : > { %2243 = vmatprep.mubr.bf16.mxu0 %v4545_v31  ;;  %2340 = vmatprep.mubr.bf16.mxu1 %v1002_v33 }
  0xce   : > { %2244 = vmatmul.mubr.bf16.gmra.mrb[84].mxu0 %v4490_v2  ;;  %2341 = vmatmul.mubr.bf16.gmra.mrb[84].mxu1 %v938_v13 }
  0xcf   : > { %2251 = vmatprep.mubr.bf16.mxu0 %v4559_v36  ;;  %2348 = vmatprep.mubr.bf16.mxu1 %v4240_v32  ;;  %v801_v32 = vld [vmem:[#allocation2 + $0x141] sm:$0xff] }
  0xd0   : > { %v4610_v28 = vpack.c.bf16 %v801_v32, %v800_v37 }
  0xd6   : > { %2252 = vmatmul.mubr.bf16.gmra.mrb[88].mxu0 %v4504_v39  ;;  %2349 = vmatmul.mubr.bf16.gmra.mrb[88].mxu1 %v4282_v60  ;;  %v802_v60 = vld [vmem:[#allocation2 + $0x151] sm:$0xff] }
  0xd7   : > { %2259 = vmatprep.mubr.bf16.mxu0 %v4570_v47  ;;  %2356 = vmatprep.mubr.bf16.mxu1 %v4293_v6  ;;  %v803_v6 = vld [vmem:[#allocation2 + $0x159] sm:$0xff] }
  0xd8   : > { %v4616_v41 = vpack.c.bf16 %v803_v6, %v802_v60 }
  0xde   : > { %2260 = vmatmul.mubr.bf16.gmra.mrb[92].mxu0 %v4604_v25  ;;  %2357 = vmatmul.mubr.bf16.gmra.mrb[92].mxu1 %v4339_v40  ;;  %v804_v40 = vld [vmem:[#allocation2 + $0x169] sm:$0xff] }
  0xdf   : > { %2267 = vmatprep.mubr.bf16.mxu0 %v4576_v57  ;;  %2364 = vmatprep.mubr.bf16.mxu1 %v4347_v44  ;;  %v805_v44 = vld [vmem:[#allocation2 + $0x171] sm:$0xff] }
  0xe0   : > { %v4622_v51 = vpack.c.bf16 %v805_v44, %v804_v40 }
  0xe6   : > { %2268 = vmatmul.mubr.bf16.gmra.mrb[96].mxu0 %v4610_v28  ;;  %2365 = vmatmul.mubr.bf16.gmra.mrb[96].mxu1 %v4399_v12  ;;  %v871_v12 = vld [vmem:[#allocation2 + $0x18a] sm:$0xff] }
  0xe7   : > { %2275 = vmatprep.mubr.bf16.mxu0 %v4582_v8  ;;  %2372 = vmatprep.mubr.bf16.mxu1 %v4409_v14  ;;  %v4624_v52 = vpack.c.bf16 %v871_v12, %v870_v49 }
  0xee   : > { %2276 = vmatmul.mubr.bf16.gmra.mrb[100].mxu0 %v4616_v41  ;;  %2373 = vmatmul.mubr.bf16.gmra.mrb[100].mxu1 %v4437_v27  ;;  %v1033_v27 = vld [vmem:[#allocation2 + $0x32] sm:$0xff] }
  0xef   : > { %2283 = vmatprep.mubr.bf16.mxu0 %v4590_v0  ;;  %2380 = vmatprep.mubr.bf16.mxu1 %v4445_v29  ;;  %v1065_v7 = vpack.c.bf16 %v1034_v63, %v1033_v27 }
  0xf6   : > { %2284 = vmatmul.mubr.bf16.gmra.mrb[104].mxu0 %v4622_v51  ;;  %2381 = vmatmul.mubr.bf16.gmra.mrb[104].mxu1 %v4460_v43 }
  0xf7   : > { %2291 = vmatprep.mubr.bf16.mxu0 %v4624_v52  ;;  %2388 = vmatprep.mubr.bf16.mxu1 %v4468_v48  ;;  %v1035_v48 = vld [vmem:[#allocation2 + $0x4a] sm:$0xff] }
  0xf8   : > { %v1066_v21 = vpack.c.bf16 %v1036_v17, %v1035_v48 }
  0xf9   : > { %v3336_v14 = vpop.f32.mrb[0].mxu0  ;;  %v3408_v38 = vpop.f32.mrb[0].mxu1 }
  0xfa   : > { %v3337_v46 = vpop.f32.mrb[1].mxu0  ;;  %v3409_v54 = vpop.f32.mrb[1].mxu1 }
  0xfb   : > { %v4630_v29 = vadd.f32 %v3337_v46, %v3336_v14  ;;  %v3339_v56 = vpop.f32.mrb[2].mxu0  ;;  %v4632_v5 = vadd.f32 %v3409_v54, %v3408_v38  ;;  %v3411_v18 = vpop.f32.mrb[2].mxu1 }
  0xfc   : > { %v3340_v19 = vpop.f32.mrb[3].mxu0  ;;  %v3412_v43 = vpop.f32.mrb[3].mxu1 }
  0xfd   : > { %v4634_v3 = vadd.f32 %v3340_v19, %v3339_v56  ;;  %v4636_v4 = vadd.f32 %v3412_v43, %v3411_v18 }
  0xfe   : > { %2292 = vmatmul.mubr.bf16.gmra.mrb[108].mxu0 %v4514_v15  ;;  %2389 = vmatmul.mubr.bf16.gmra.mrb[108].mxu1 %v4482_v58 }
  0xff   : > { %3808 = vmatprep.mubr.bf16.mxu0 %v1065_v7  ;;  %2396 = vmatprep.mubr.bf16.mxu1 %v4490_v2 }
 0x101   : > { %v3342_v30 = vpop.f32.mrb[4].mxu0  ;;  %v3414_v9 = vpop.f32.mrb[4].mxu1 }
 0x102   : > { %v3343_v16 = vpop.f32.mrb[5].mxu0  ;;  %v3415_v42 = vpop.f32.mrb[5].mxu1 }
 0x103   : > { %v4641_v23 = vadd.f32 %v3343_v16, %v3342_v30  ;;  %v3345_v24 = vpop.f32.mrb[6].mxu0  ;;  %v4643_v33 = vadd.f32 %v3415_v42, %v3414_v9  ;;  %v3417_v1 = vpop.f32.mrb[6].mxu1 }
 0x104   : > { %v3346_v11 = vpop.f32.mrb[7].mxu0  ;;  %v3418_v58 = vpop.f32.mrb[7].mxu1 }
 0x105   : > { %v4645_v13 = vadd.f32 %v3346_v11, %v3345_v24  ;;  %v4647_v61 = vadd.f32 %v3418_v58, %v3417_v1  ;;  %v930_v24 = vld [vmem:[#allocation2 + $0x158] sm:$0xff] }
 0x106   : > { %3809 = vmatmul.mubr.bf16.vlgmr.msra.gmra.mrb[112].mxu0 %v1066_v21  ;;  %2397 = vmatmul.mubr.bf16.gmra.mrb[112].mxu1 %v4496_v26 }
 0x107   : > { %3812 = vmatprep.mubr.bf16.mxu0 %v4462_v45  ;;  %2404 = vmatprep.mubr.bf16.mxu1 %v4504_v39 }
 0x109   : > { %v3348_v2 = vpop.f32.mrb[8].mxu0  ;;  %v3420_v20 = vpop.f32.mrb[8].mxu1 }
 0x10a   : > { %v3349_v37 = vpop.f32.mrb[9].mxu0  ;;  %v3421_v60 = vpop.f32.mrb[9].mxu1 }
 0x10b   : > { %v4652_v32 = vadd.f32 %v3349_v37, %v3348_v2  ;;  %v3351_v6 = vpop.f32.mrb[10].mxu0  ;;  %v4654_v40 = vadd.f32 %v3421_v60, %v3420_v20  ;;  %v3423_v44 = vpop.f32.mrb[10].mxu1 }
 0x10c   : > { %v3352_v49 = vpop.f32.mrb[11].mxu0  ;;  %v3424_v14 = vpop.f32.mrb[11].mxu1 }
 0x10d   : > { %v4656_v12 = vadd.f32 %v3352_v49, %v3351_v6  ;;  %v4658_v27 = vadd.f32 %v3424_v14, %v3423_v44  ;;  %v931_v49 = vld [vmem:[#allocation2 + $0x168] sm:$0xff]  ;;  %v932_v14 = vld [vmem:[#allocation2 + $0x170] sm:$0xff] }
 0x10e   : > { %3813 = vmatmul.mubr.bf16.gmra.mrb[116].mxu0 %v4484_v59  ;;  %2405 = vmatmul.mubr.bf16.gmra.mrb[116].mxu1 %v4510_v10 }
 0x10f   : > { %3816 = vmatprep.mubr.bf16.mxu0 %v4498_v55  ;;  %2412 = vmatprep.mubr.bf16.mxu1 %v4604_v25 }
 0x111   : > { %v3354_v45 = vpop.f32.mrb[12].mxu0  ;;  %v3426_v26 = vpop.f32.mrb[12].mxu1 }
 0x112   : > { %v3355_v39 = vpop.f32.mrb[13].mxu0  ;;  %v3427_v38 = vpop.f32.mrb[13].mxu1 }
 0x113   : > { %v4664_v63 = vadd.f32 %v3355_v39, %v3354_v45  ;;  %v3357_v46 = vpop.f32.mrb[14].mxu0  ;;  %v4666_v54 = vadd.f32 %v3427_v38, %v3426_v26  ;;  %v3429_v56 = vpop.f32.mrb[14].mxu1 }
 0x114   : > { %v3358_v18 = vpop.f32.mrb[15].mxu0  ;;  %v3430_v59 = vpop.f32.mrb[15].mxu1 }
 0x115   : > { %v4668_v19 = vadd.f32 %v3358_v18, %v3357_v46  ;;  %v4670_v7 = vadd.f32 %v3430_v59, %v3429_v56  ;;  %v950_v56 = vpack.c.bf16 %v932_v14, %v931_v49 }
 0x116   : > { %3817 = vmatmul.mubr.bf16.gmra.mrb[120].mxu0 %v4512_v22  ;;  %2413 = vmatmul.mubr.bf16.gmra.mrb[120].mxu1 %v4547_v34 }
 0x117   : > { %3820 = vmatprep.mubr.bf16.mxu0 %v4520_v62  ;;  %2420 = vmatprep.mubr.bf16.mxu1 %v4610_v28  ;;  %v929_v28 = vld [vmem:[#allocation2 + $0x150] sm:$0xff] }
 0x118   : > { %v949_v37 = vpack.c.bf16 %v930_v24, %v929_v28 }
 0x119   : > { %v3360_v55 = vpop.f32.mrb[16].mxu0  ;;  %v3448_v10 = vpop.f32.mrb[16].mxu1 }
 0x11a   : > { %v3361_v25 = vpop.f32.mrb[17].mxu0  ;;  %v3449_v48 = vpop.f32.mrb[17].mxu1 }
 0x11b   : > { %v4676_v43 = vadd.f32 %v3361_v25, %v3360_v55  ;;  %v3363_v17 = vpop.f32.mrb[18].mxu0  ;;  %v3450_v30 = vadd.f32 %v3449_v48, %v3448_v10  ;;  %v3451_v9 = vpop.f32.mrb[18].mxu1  ;;  %v999_v48 = vld [vmem:[#allocation2 + $0x199] sm:$0xff] }
 0x11c   : > { %v3364_v16 = vpop.f32.mrb[19].mxu0  ;;  %v3452_v42 = vpop.f32.mrb[19].mxu1 }
 0x11d   : > { %v4678_v21 = vadd.f32 %v3364_v16, %v3363_v17  ;;  %v4681_v22 = vadd.f32 %v3450_v30, %v4630_v29  ;;  %v3453_v34 = vadd.f32 %v3452_v42, %v3451_v9  ;;  %v1000_v17 = vld [vmem:[#allocation2 + $0x1a1] sm:$0xff] }
 0x11e   : > { %3821 = vmatmul.mubr.bf16.gmra.mrb[124].mxu0 %v4533_v35  ;;  %2421 = vmatmul.mubr.bf16.gmra.mrb[124].mxu1 %v4561_v53  ;;  %v1016_v24 = vpack.c.bf16 %v1000_v17, %v999_v48 }
 0x11f   : > { %3824 = vmatprep.mubr.bf16.mxu0 %v4545_v31  ;;  %v4687_v62 = vadd.f32 %v3453_v34, %v4634_v3  ;;  %2428 = vmatprep.mubr.bf16.mxu1 %v4616_v41 }
 0x121   : > { %v3366_v1 = vpop.f32.mrb[20].mxu0  ;;  %v3454_v11 = vpop.f32.mrb[20].mxu1 }
 0x122   : > { %v3367_v58 = vpop.f32.mrb[21].mxu0  ;;  %v3455_v29 = vpop.f32.mrb[21].mxu1 }
 0x123   : > { %v4690_v2 = vadd.f32 %v3367_v58, %v3366_v1  ;;  %v3369_v20 = vpop.f32.mrb[22].mxu0  ;;  %v3456_v35 = vadd.f32 %v3455_v29, %v3454_v11  ;;  %v3457_v60 = vpop.f32.mrb[22].mxu1  ;;  %v1063_v11 = vld [vmem:[#allocation2 + $0x19a] sm:$0xff]  ;;  %v1064_v58 = vld [vmem:[#allocation2 + $0x1a2] sm:$0xff] }
 0x124   : > { %v3370_v53 = vpop.f32.mrb[23].mxu0  ;;  %v3458_v31 = vpop.f32.mrb[23].mxu1 }
 0x125   : > { %v4692_v6 = vadd.f32 %v3370_v53, %v3369_v20  ;;  %v4695_v3 = vadd.f32 %v3456_v35, %v4641_v23  ;;  %v3459_v41 = vadd.f32 %v3458_v31, %v3457_v60  ;;  %v935_v20 = vld [vmem:[#allocation2 + $0x198] sm:$0xff]  ;;  %v1080_v53 = vpack.c.bf16 %v1064_v58, %v1063_v11 }
 0x126   : > { %3825 = vmatmul.mubr.bf16.gmra.mrb[128].mxu0 %v4559_v36  ;;  %2429 = vmatmul.mubr.bf16.gmra.mrb[128].mxu1 %v949_v37 }
 0x127   : > { %3828 = vmatprep.mubr.bf16.mxu0 %v4570_v47  ;;  %v4700_v44 = vadd.f32 %v3459_v41, %v4645_v13  ;;  %2436 = vmatprep.mubr.bf16.mxu1 %v4622_v51 }
 0x129   : > { %v3372_v45 = vpop.f32.mrb[24].mxu0  ;;  %v3460_v26 = vpop.f32.mrb[24].mxu1 }
 0x12a   : > { %v3373_v39 = vpop.f32.mrb[25].mxu0  ;;  %v3461_v23 = vpop.f32.mrb[25].mxu1 }
 0x12b   : > { %v4703_v38 = vadd.f32 %v3373_v39, %v3372_v45  ;;  %v3375_v46 = vpop.f32.mrb[26].mxu0  ;;  %v3462_v18 = vadd.f32 %v3461_v23, %v3460_v26  ;;  %v3463_v36 = vpop.f32.mrb[26].mxu1 }
 0x12c   : > { %v3376_v59 = vpop.f32.mrb[27].mxu0  ;;  %v3464_v47 = vpop.f32.mrb[27].mxu1 }
 0x12d   : > { %v4705_v55 = vadd.f32 %v3376_v59, %v3375_v46  ;;  %v4708_v13 = vadd.f32 %v3462_v18, %v4652_v32  ;;  %v3465_v51 = vadd.f32 %v3464_v47, %v3463_v36 }
 0x12e   : > { %3829 = vmatmul.mubr.bf16.gmra.mrb[132].mxu0 %v4576_v57  ;;  %2437 = vmatmul.mubr.bf16.gmra.mrb[132].mxu1 %v950_v56 }
 0x12f   : > { %3832 = vmatprep.mubr.bf16.mxu0 %v4582_v8  ;;  %v4713_v10 = vadd.f32 %v3465_v51, %v4656_v12  ;;  %2444 = vmatprep.mubr.bf16.mxu1 %v4514_v15 }
 0x131   : > { %v3378_v25 = vpop.f32.mrb[28].mxu0  ;;  %v3466_v30 = vpop.f32.mrb[28].mxu1 }
 0x132   : > { %v3379_v9 = vpop.f32.mrb[29].mxu0  ;;  %v3467_v32 = vpop.f32.mrb[29].mxu1 }
 0x133   : > { %v4716_v16 = vadd.f32 %v3379_v9, %v3378_v25  ;;  %v3381_v42 = vpop.f32.mrb[30].mxu0  ;;  %v3468_v34 = vadd.f32 %v3467_v32, %v3466_v30  ;;  %v3469_v28 = vpop.f32.mrb[30].mxu1 }
 0x134   : > { %v3382_v57 = vpop.f32.mrb[31].mxu0  ;;  %v3470_v8 = vpop.f32.mrb[31].mxu1 }
 0x135   : > { %v4718_v1 = vadd.f32 %v3382_v57, %v3381_v42  ;;  %v4721_v12 = vadd.f32 %v3468_v34, %v4664_v63  ;;  %v3471_v15 = vadd.f32 %v3470_v8, %v3469_v28 }
 0x136   : > { %3833 = vmatmul.mubr.bf16.gmra.mrb[136].mxu0 %v4590_v0  ;;  %2445 = vmatmul.mubr.bf16.gmra.mrb[136].mxu1 %v4584_v50  ;;  %v3937_v0 = vld [vmem:[#allocation2 + $0x8] sm:$0xff] }
 0x137   : > { %3836 = vmatprep.mubr.bf16.mxu0 %v4624_v52  ;;  %v4727_v29 = vadd.f32 %v3471_v15, %v4668_v19  ;;  %2452 = vmatprep.mubr.bf16.mxu1 %v1016_v24  ;;  %v952_v49 = vpack.c.bf16 %v3937_v0, %v935_v20 }
 0x139   : > { %v3384_v37 = vpop.f32.mrb[32].mxu0  ;;  %v3472_v35 = vpop.f32.mrb[32].mxu1 }
 0x13a   : > { %v3385_v60 = vpop.f32.mrb[33].mxu0  ;;  %v3473_v31 = vpop.f32.mrb[33].mxu1 }
 0x13b   : > { %v4729_v63 = vadd.f32 %v3385_v60, %v3384_v37  ;;  %v3387_v41 = vpop.f32.mrb[34].mxu0  ;;  %v3474_v50 = vadd.f32 %v3473_v31, %v3472_v35  ;;  %v3475_v14 = vpop.f32.mrb[34].mxu1 }
 0x13c   : > { %v3388_v52 = vpop.f32.mrb[35].mxu0  ;;  %v3476_v26 = vpop.f32.mrb[35].mxu1 }
 0x13d   : > { %v4731_v45 = vadd.f32 %v3388_v52, %v3387_v41  ;;  %v4734_v19 = vadd.f32 %v3474_v50, %v4676_v43  ;;  %v3477_v39 = vadd.f32 %v3476_v26, %v3475_v14 }
 0x13e   : > { %3837 = vmatmul.mubr.bf16.gmra.mrb[140].mxu0 %v1080_v53  ;;  %2453 = vmatmul.mubr.bf16.gmra.mrb[140].mxu1 %v952_v49 }
 0x13f   : > { %v4737_v23 = vadd.f32 %v3477_v39, %v4678_v21 }
 0x141   : > { %v3390_v46 = vpop.f32.mrb[36].mxu0  ;;  %v3478_v56 = vpop.f32.mrb[36].mxu1 }
 0x142   : > { %v3391_v18 = vpop.f32.mrb[37].mxu0  ;;  %v3479_v59 = vpop.f32.mrb[37].mxu1 }
 0x143   : > { %v4739_v36 = vadd.f32 %v3391_v18, %v3390_v46  ;;  %v3393_v47 = vpop.f32.mrb[38].mxu0  ;;  %v3480_v51 = vadd.f32 %v3479_v59, %v3478_v56  ;;  %v3481_v25 = vpop.f32.mrb[38].mxu1 }
 0x144   : > { %v3394_v48 = vpop.f32.mrb[39].mxu0  ;;  %v3482_v43 = vpop.f32.mrb[39].mxu1 }
 0x145   : > { %v4741_v17 = vadd.f32 %v3394_v48, %v3393_v47  ;;  %v4744_v30 = vadd.f32 %v3480_v51, %v4690_v2  ;;  %v3483_v9 = vadd.f32 %v3482_v43, %v3481_v25 }
 0x147   : > { %v4747_v21 = vadd.f32 %v3483_v9, %v4692_v6 }
 0x149   : > { %v3396_v32 = vpop.f32.mrb[40].mxu0  ;;  %v3484_v42 = vpop.f32.mrb[40].mxu1 }
 0x14a   : > { %v3397_v34 = vpop.f32.mrb[41].mxu0  ;;  %v3485_v57 = vpop.f32.mrb[41].mxu1 }
 0x14b   : > { %v4749_v28 = vadd.f32 %v3397_v34, %v3396_v32  ;;  %v3399_v24 = vpop.f32.mrb[42].mxu0  ;;  %v3486_v8 = vadd.f32 %v3485_v57, %v3484_v42  ;;  %v3487_v15 = vpop.f32.mrb[42].mxu1 }
 0x14c   : > { %v3400_v11 = vpop.f32.mrb[43].mxu0  ;;  %v3488_v20 = vpop.f32.mrb[43].mxu1 }
 0x14d   : > { %v4751_v58 = vadd.f32 %v3400_v11, %v3399_v24  ;;  %v4754_v2 = vadd.f32 %v3486_v8, %v4703_v38  ;;  %v3489_v37 = vadd.f32 %v3488_v20, %v3487_v15 }
 0x14f   : > { %v4757_v6 = vadd.f32 %v3489_v37, %v4705_v55 }
 0x151   : > { %v3402_v35 = vpop.f32.mrb[44].mxu0  ;;  %v3490_v60 = vpop.f32.mrb[44].mxu1 }
 0x152   : > { %v3403_v53 = vpop.f32.mrb[45].mxu0  ;;  %v3491_v41 = vpop.f32.mrb[45].mxu1 }
 0x153   : > { %v4759_v31 = vadd.f32 %v3403_v53, %v3402_v35  ;;  %v3405_v0 = vpop.f32.mrb[46].mxu0  ;;  %v3492_v49 = vadd.f32 %v3491_v41, %v3490_v60  ;;  %v3493_v50 = vpop.f32.mrb[46].mxu1 }
 0x154   : > { %v3406_v14 = vpop.f32.mrb[47].mxu0  ;;  %v3494_v26 = vpop.f32.mrb[47].mxu1 }
 0x155   : > { %v4761_v52 = vadd.f32 %v3406_v14, %v3405_v0  ;;  %v4764_v38 = vadd.f32 %v3492_v49, %v4716_v16  ;;  %v3495_v39 = vadd.f32 %v3494_v26, %v3493_v50 }
 0x157   : > { %v4767_v55 = vadd.f32 %v3495_v39, %v4718_v1 }
 0x159   : > { %v3560_v46 = vpop.f32.mrb[48].mxu0  ;;  %v3496_v56 = vpop.f32.mrb[48].mxu1 }
 0x15a   : > { %v3561_v18 = vpop.f32.mrb[49].mxu0  ;;  %v3497_v59 = vpop.f32.mrb[49].mxu1 }
 0x15b   : > { %v3562_v47 = vadd.f32 %v3561_v18, %v3560_v46  ;;  %v3563_v51 = vpop.f32.mrb[50].mxu0  ;;  %v3498_v25 = vadd.f32 %v3497_v59, %v3496_v56  ;;  %v3499_v48 = vpop.f32.mrb[50].mxu1 }
 0x15c   : > { %v3564_v43 = vpop.f32.mrb[51].mxu0  ;;  %v3500_v32 = vpop.f32.mrb[51].mxu1 }
 0x15d   : > { %v4770_v9 = vadd.f32 %v3562_v47, %v4681_v22  ;;  %v3565_v42 = vadd.f32 %v3564_v43, %v3563_v51  ;;  %v4773_v16 = vadd.f32 %v3498_v25, %v4729_v63  ;;  %v3501_v34 = vadd.f32 %v3500_v32, %v3499_v48 }
 0x15f   : > { %v4776_v1 = vadd.f32 %v3565_v42, %v4687_v62  ;;  %v4779_v57 = vadd.f32 %v3501_v34, %v4731_v45 }
 0x161   : > { %v3566_v24 = vpop.f32.mrb[52].mxu0  ;;  %v3502_v8 = vpop.f32.mrb[52].mxu1 }
 0x162   : > { %v3567_v15 = vpop.f32.mrb[53].mxu0  ;;  %v3503_v11 = vpop.f32.mrb[53].mxu1 }
 0x163   : > { %v3568_v20 = vadd.f32 %v3567_v15, %v3566_v24  ;;  %v3569_v37 = vpop.f32.mrb[54].mxu0  ;;  %v3504_v22 = vadd.f32 %v3503_v11, %v3502_v8  ;;  %v3505_v35 = vpop.f32.mrb[54].mxu1 }
 0x164   : > { %v3570_v60 = vpop.f32.mrb[55].mxu0  ;;  %v3506_v63 = vpop.f32.mrb[55].mxu1 }
 0x165   : > { %v4782_v53 = vadd.f32 %v3568_v20, %v4695_v3  ;;  %v3571_v41 = vadd.f32 %v3570_v60, %v3569_v37  ;;  %v4785_v62 = vadd.f32 %v3504_v22, %v4739_v36  ;;  %v3507_v0 = vadd.f32 %v3506_v63, %v3505_v35 }
 0x167   : > { %v4788_v45 = vadd.f32 %v3571_v41, %v4700_v44  ;;  %v4791_v49 = vadd.f32 %v3507_v0, %v4741_v17 }
 0x169   : > { %v3572_v50 = vpop.f32.mrb[56].mxu0  ;;  %v3508_v14 = vpop.f32.mrb[56].mxu1 }
 0x16a   : > { %v3573_v26 = vpop.f32.mrb[57].mxu0  ;;  %v3509_v39 = vpop.f32.mrb[57].mxu1 }
 0x16b   : > { %v3574_v46 = vadd.f32 %v3573_v26, %v3572_v50  ;;  %v3575_v56 = vpop.f32.mrb[58].mxu0  ;;  %v3510_v3 = vadd.f32 %v3509_v39, %v3508_v14  ;;  %v3511_v18 = vpop.f32.mrb[58].mxu1 }
 0x16c   : > { %v3576_v59 = vpop.f32.mrb[59].mxu0  ;;  %v3512_v36 = vpop.f32.mrb[59].mxu1 }
 0x16d   : > { %v4794_v47 = vadd.f32 %v3574_v46, %v4708_v13  ;;  %v3577_v51 = vadd.f32 %v3576_v59, %v3575_v56  ;;  %v4797_v44 = vadd.f32 %v3510_v3, %v4749_v28  ;;  %v3513_v25 = vadd.f32 %v3512_v36, %v3511_v18 }
 0x16f   : > { %v4800_v17 = vadd.f32 %v3577_v51, %v4713_v10  ;;  %v4803_v48 = vadd.f32 %v3513_v25, %v4751_v58 }
 0x171   : > { %v3578_v43 = vpop.f32.mrb[60].mxu0  ;;  %v3514_v32 = vpop.f32.mrb[60].mxu1 }
 0x172   : > { %v3579_v42 = vpop.f32.mrb[61].mxu0  ;;  %v3515_v34 = vpop.f32.mrb[61].mxu1 }
 0x173   : > { %v3580_v24 = vadd.f32 %v3579_v42, %v3578_v43  ;;  %v3581_v8 = vpop.f32.mrb[62].mxu0  ;;  %v3516_v13 = vadd.f32 %v3515_v34, %v3514_v32  ;;  %v3517_v15 = vpop.f32.mrb[62].mxu1 }
 0x174   : > { %v3582_v11 = vpop.f32.mrb[63].mxu0  ;;  %v3518_v28 = vpop.f32.mrb[63].mxu1 }
 0x175   : > { %v4806_v20 = vadd.f32 %v3580_v24, %v4721_v12  ;;  %v3583_v37 = vadd.f32 %v3582_v11, %v3581_v8  ;;  %v4809_v10 = vadd.f32 %v3516_v13, %v4759_v31  ;;  %v3519_v22 = vadd.f32 %v3518_v28, %v3517_v15 }
 0x177   : > { %v4812_v58 = vadd.f32 %v3583_v37, %v4727_v29  ;;  %v4815_v35 = vadd.f32 %v3519_v22, %v4761_v52 }
 0x179   : > { %v3584_v60 = vpop.f32.mrb[64].mxu0  ;;  %v3520_v63 = vpop.f32.mrb[64].mxu1 }
 0x17a   : > { %v3585_v41 = vpop.f32.mrb[65].mxu0  ;;  %v3521_v0 = vpop.f32.mrb[65].mxu1 }
 0x17b   : > { %v3586_v50 = vadd.f32 %v3585_v41, %v3584_v60  ;;  %v3587_v14 = vpop.f32.mrb[66].mxu0  ;;  %v3522_v12 = vadd.f32 %v3521_v0, %v3520_v63  ;;  %v3523_v26 = vpop.f32.mrb[66].mxu1 }
 0x17c   : > { %v3588_v39 = vpop.f32.mrb[67].mxu0  ;;  %v3524_v31 = vpop.f32.mrb[67].mxu1 }
 0x17d   : > { %v4818_v46 = vadd.f32 %v3586_v50, %v4734_v19  ;;  %v3589_v56 = vadd.f32 %v3588_v39, %v3587_v14  ;;  %v4821_v29 = vadd.f32 %v3522_v12, %v4632_v5  ;;  %v3525_v3 = vadd.f32 %v3524_v31, %v3523_v26 }
 0x17f   : > { %v4824_v52 = vadd.f32 %v3589_v56, %v4737_v23  ;;  %v4827_v18 = vadd.f32 %v3525_v3, %v4636_v4 }
 0x181   : > { %v3590_v59 = vpop.f32.mrb[68].mxu0  ;;  %v3526_v36 = vpop.f32.mrb[68].mxu1 }
 0x182   : > { %v3591_v51 = vpop.f32.mrb[69].mxu0  ;;  %v3527_v25 = vpop.f32.mrb[69].mxu1 }
 0x183   : > { %v3592_v43 = vadd.f32 %v3591_v51, %v3590_v59  ;;  %v3593_v32 = vpop.f32.mrb[70].mxu0  ;;  %v3528_v19 = vadd.f32 %v3527_v25, %v3526_v36  ;;  %v3529_v42 = vpop.f32.mrb[70].mxu1 }
 0x184   : > { %v3594_v34 = vpop.f32.mrb[71].mxu0  ;;  %v3530_v5 = vpop.f32.mrb[71].mxu1 }
 0x185   : > { %v4830_v24 = vadd.f32 %v3592_v43, %v4744_v30  ;;  %v3595_v8 = vadd.f32 %v3594_v34, %v3593_v32  ;;  %v4833_v23 = vadd.f32 %v3528_v19, %v4643_v33  ;;  %v3531_v13 = vadd.f32 %v3530_v5, %v3529_v42 }
 0x187   : > { %v4836_v4 = vadd.f32 %v3595_v8, %v4747_v21  ;;  %v4839_v15 = vadd.f32 %v3531_v13, %v4647_v61 }
 0x189   : > { %v3596_v11 = vpop.f32.mrb[72].mxu0  ;;  %v3532_v28 = vpop.f32.mrb[72].mxu1 }
 0x18a   : > { %v3597_v37 = vpop.f32.mrb[73].mxu0  ;;  %v3533_v22 = vpop.f32.mrb[73].mxu1 }
 0x18b   : > { %v3598_v60 = vadd.f32 %v3597_v37, %v3596_v11  ;;  %v3599_v63 = vpop.f32.mrb[74].mxu0  ;;  %v3534_v30 = vadd.f32 %v3533_v22, %v3532_v28  ;;  %v3535_v41 = vpop.f32.mrb[74].mxu1 }
 0x18c   : > { %v3600_v0 = vpop.f32.mrb[75].mxu0  ;;  %v3536_v33 = vpop.f32.mrb[75].mxu1 }
 0x18d   : > { %v4842_v50 = vadd.f32 %v3598_v60, %v4754_v2  ;;  %v3601_v14 = vadd.f32 %v3600_v0, %v3599_v63  ;;  %v4845_v21 = vadd.f32 %v3534_v30, %v4654_v40  ;;  %v3537_v12 = vadd.f32 %v3536_v33, %v3535_v41 }
 0x18f   : > { %v4848_v61 = vadd.f32 %v3601_v14, %v4757_v6  ;;  %v4851_v26 = vadd.f32 %v3537_v12, %v4658_v27 }
 0x191   : > { %v3602_v39 = vpop.f32.mrb[76].mxu0  ;;  %v3538_v31 = vpop.f32.mrb[76].mxu1 }
 0x192   : > { %v3603_v56 = vpop.f32.mrb[77].mxu0  ;;  %v3539_v3 = vpop.f32.mrb[77].mxu1 }
 0x193   : > { %v3604_v59 = vadd.f32 %v3603_v56, %v3602_v39  ;;  %v3605_v36 = vpop.f32.mrb[78].mxu0  ;;  %v3540_v2 = vadd.f32 %v3539_v3, %v3538_v31  ;;  %v3541_v51 = vpop.f32.mrb[78].mxu1 }
 0x194   : > { %v3606_v25 = vpop.f32.mrb[79].mxu0  ;;  %v3542_v40 = vpop.f32.mrb[79].mxu1 }
 0x195   : > { %v4854_v43 = vadd.f32 %v3604_v59, %v4764_v38  ;;  %v3607_v32 = vadd.f32 %v3606_v25, %v3605_v36  ;;  %v4857_v6 = vadd.f32 %v3540_v2, %v4666_v54  ;;  %v3543_v19 = vadd.f32 %v3542_v40, %v3541_v51 }
 0x197   : > { %v4860_v27 = vadd.f32 %v3607_v32, %v4767_v55  ;;  %v4863_v42 = vadd.f32 %v3543_v19, %v4670_v7 }
 0x199   : > { %v3608_v34 = vpop.f32.mrb[80].mxu0  ;;  %v3672_v5 = vpop.f32.mrb[80].mxu1 }
 0x19a   : > { %v3609_v8 = vpop.f32.mrb[81].mxu0  ;;  %v3673_v11 = vpop.f32.mrb[81].mxu1 }
 0x19b   : > { %v3610_v13 = vadd.f32 %v3609_v8, %v3608_v34  ;;  %v3611_v28 = vpop.f32.mrb[82].mxu0  ;;  %v3674_v38 = vadd.f32 %v3673_v11, %v3672_v5  ;;  %v3675_v37 = vpop.f32.mrb[82].mxu1 }
 0x19c   : > { %v3612_v22 = vpop.f32.mrb[83].mxu0  ;;  %v3676_v63 = vpop.f32.mrb[83].mxu1 }
 0x19d   : > { %v4866_v60 = vadd.f32 %v3610_v13, %v4773_v16  ;;  %v3613_v54 = vadd.f32 %v3612_v22, %v3611_v28  ;;  %v3677_v30 = vadd.f32 %v3676_v63, %v3675_v37  ;;  %v4869_v55 = vadd.f32 %v3674_v38, %v4770_v9 }
 0x19f   : > { %v4872_v7 = vadd.f32 %v3613_v54, %v4779_v57  ;;  %v4875_v41 = vadd.f32 %v3677_v30, %v4776_v1 }
 0x1a1   : > { %v3614_v0 = vpop.f32.mrb[84].mxu0  ;;  %v3678_v33 = vpop.f32.mrb[84].mxu1 }
 0x1a2   : > { %v3615_v14 = vpop.f32.mrb[85].mxu0  ;;  %v3679_v39 = vpop.f32.mrb[85].mxu1 }
 0x1a3   : > { %v3616_v12 = vadd.f32 %v3615_v14, %v3614_v0  ;;  %v3617_v31 = vpop.f32.mrb[86].mxu0  ;;  %v3680_v16 = vadd.f32 %v3679_v39, %v3678_v33  ;;  %v3681_v56 = vpop.f32.mrb[86].mxu1 }
 0x1a4   : > { %v3618_v3 = vpop.f32.mrb[87].mxu0  ;;  %v3682_v36 = vpop.f32.mrb[87].mxu1 }
 0x1a5   : > { %v4878_v59 = vadd.f32 %v3616_v12, %v4785_v62  ;;  %v3619_v9 = vadd.f32 %v3618_v3, %v3617_v31  ;;  %v3683_v2 = vadd.f32 %v3682_v36, %v3681_v56  ;;  %v4881_v57 = vadd.f32 %v3680_v16, %v4782_v53 }
 0x1a7   : > { %v4884_v1 = vadd.f32 %v3619_v9, %v4791_v49  ;;  %v4887_v51 = vadd.f32 %v3683_v2, %v4788_v45 }
 0x1a9   : > { %v3620_v25 = vpop.f32.mrb[88].mxu0  ;;  %v3684_v40 = vpop.f32.mrb[88].mxu1 }
 0x1aa   : > { %v3621_v32 = vpop.f32.mrb[89].mxu0  ;;  %v3685_v34 = vpop.f32.mrb[89].mxu1 }
 0x1ab   : > { %v3622_v19 = vadd.f32 %v3621_v32, %v3620_v25  ;;  %v3623_v5 = vpop.f32.mrb[90].mxu0  ;;  %v3686_v62 = vadd.f32 %v3685_v34, %v3684_v40  ;;  %v3687_v8 = vpop.f32.mrb[90].mxu1 }
 0x1ac   : > { %v3624_v13 = vpop.f32.mrb[91].mxu0  ;;  %v3688_v28 = vpop.f32.mrb[91].mxu1 }
 0x1ad   : > { %v4890_v11 = vadd.f32 %v3622_v19, %v4797_v44  ;;  %v3625_v53 = vadd.f32 %v3624_v13, %v3623_v5  ;;  %v3689_v38 = vadd.f32 %v3688_v28, %v3687_v8  ;;  %v4893_v49 = vadd.f32 %v3686_v62, %v4794_v47 }
 0x1af   : > { %v4896_v45 = vadd.f32 %v3625_v53, %v4803_v48  ;;  %v4899_v37 = vadd.f32 %v3689_v38, %v4800_v17 }
 0x1b1   : > { %v3626_v22 = vpop.f32.mrb[92].mxu0  ;;  %v3690_v54 = vpop.f32.mrb[92].mxu1 }
 0x1b2   : > { %v3627_v63 = vpop.f32.mrb[93].mxu0  ;;  %v3691_v0 = vpop.f32.mrb[93].mxu1 }
 0x1b3   : > { %v3628_v30 = vadd.f32 %v3627_v63, %v3626_v22  ;;  %v3629_v33 = vpop.f32.mrb[94].mxu0  ;;  %v3692_v44 = vadd.f32 %v3691_v0, %v3690_v54  ;;  %v3693_v14 = vpop.f32.mrb[94].mxu1 }
 0x1b4   : > { %v3630_v12 = vpop.f32.mrb[95].mxu0  ;;  %v3694_v31 = vpop.f32.mrb[95].mxu1 }
 0x1b5   : > { %v4902_v39 = vadd.f32 %v3628_v30, %v4809_v10  ;;  %v3631_v47 = vadd.f32 %v3630_v12, %v3629_v33  ;;  %v3695_v16 = vadd.f32 %v3694_v31, %v3693_v14  ;;  %v4905_v48 = vadd.f32 %v3692_v44, %v4806_v20 }
 0x1b7   : > { %v4908_v17 = vadd.f32 %v3631_v47, %v4815_v35  ;;  %v4911_v56 = vadd.f32 %v3695_v16, %v4812_v58 }
 0x1b9   : > { %v3632_v3 = vpop.f32.mrb[96].mxu0  ;;  %v3696_v9 = vpop.f32.mrb[96].mxu1 }
 0x1ba   : > { %v3633_v36 = vpop.f32.mrb[97].mxu0  ;;  %v3697_v25 = vpop.f32.mrb[97].mxu1 }
 0x1bb   : > { %v3634_v2 = vadd.f32 %v3633_v36, %v3632_v3  ;;  %v3635_v40 = vpop.f32.mrb[98].mxu0  ;;  %v3698_v10 = vadd.f32 %v3697_v25, %v3696_v9  ;;  %v3699_v32 = vpop.f32.mrb[98].mxu1 }
 0x1bc   : > { %v3636_v19 = vpop.f32.mrb[99].mxu0  ;;  %v3700_v5 = vpop.f32.mrb[99].mxu1 }
 0x1bd   : > { %v4914_v34 = vadd.f32 %v3634_v2, %v4821_v29  ;;  %v3637_v20 = vadd.f32 %v3636_v19, %v3635_v40  ;;  %v3701_v62 = vadd.f32 %v3700_v5, %v3699_v32  ;;  %v4917_v35 = vadd.f32 %v3698_v10, %v4818_v46 }
 0x1bf   : > { %v4920_v58 = vadd.f32 %v3637_v20, %v4827_v18  ;;  %v4923_v8 = vadd.f32 %v3701_v62, %v4824_v52 }
 0x1c1   : > { %v3638_v13 = vpop.f32.mrb[100].mxu0  ;;  %v3702_v53 = vpop.f32.mrb[100].mxu1 }
 0x1c2   : > { %v3639_v28 = vpop.f32.mrb[101].mxu0  ;;  %v3703_v22 = vpop.f32.mrb[101].mxu1 }
 0x1c3   : > { %v3640_v38 = vadd.f32 %v3639_v28, %v3638_v13  ;;  %v3641_v54 = vpop.f32.mrb[102].mxu0  ;;  %v3704_v29 = vadd.f32 %v3703_v22, %v3702_v53  ;;  %v3705_v63 = vpop.f32.mrb[102].mxu1 }
 0x1c4   : > { %v3642_v30 = vpop.f32.mrb[103].mxu0  ;;  %v3706_v33 = vpop.f32.mrb[103].mxu1 }
 0x1c5   : > { %v4926_v0 = vadd.f32 %v3640_v38, %v4833_v23  ;;  %v3643_v46 = vadd.f32 %v3642_v30, %v3641_v54  ;;  %v3707_v44 = vadd.f32 %v3706_v33, %v3705_v63  ;;  %v4929_v18 = vadd.f32 %v3704_v29, %v4830_v24 }
 0x1c7   : > { %v4932_v52 = vadd.f32 %v3643_v46, %v4839_v15  ;;  %v4935_v14 = vadd.f32 %v3707_v44, %v4836_v4 }
 0x1c9   : > { %v3644_v12 = vpop.f32.mrb[104].mxu0  ;;  %v3708_v47 = vpop.f32.mrb[104].mxu1 }
 0x1ca   : > { %v3645_v31 = vpop.f32.mrb[105].mxu0  ;;  %v3709_v3 = vpop.f32.mrb[105].mxu1 }
 0x1cb   : > { %v3646_v16 = vadd.f32 %v3645_v31, %v3644_v12  ;;  %v3647_v9 = vpop.f32.mrb[106].mxu0  ;;  %v3710_v23 = vadd.f32 %v3709_v3, %v3708_v47  ;;  %v3711_v36 = vpop.f32.mrb[106].mxu1 }
 0x1cc   : > { %v3648_v2 = vpop.f32.mrb[107].mxu0  ;;  %v3712_v40 = vpop.f32.mrb[107].mxu1 }
 0x1cd   : > { %v4938_v25 = vadd.f32 %v3646_v16, %v4845_v21  ;;  %v3649_v24 = vadd.f32 %v3648_v2, %v3647_v9  ;;  %v3713_v10 = vadd.f32 %v3712_v40, %v3711_v36  ;;  %v4941_v15 = vadd.f32 %v3710_v23, %v4842_v50 }
 0x1cf   : > { %v4944_v4 = vadd.f32 %v3649_v24, %v4851_v26  ;;  %v4947_v32 = vadd.f32 %v3713_v10, %v4848_v61 }
 0x1d1   : > { %v3650_v19 = vpop.f32.mrb[108].mxu0  ;;  %v3714_v20 = vpop.f32.mrb[108].mxu1 }
 0x1d2   : > { %v3651_v5 = vpop.f32.mrb[109].mxu0  ;;  %v3715_v13 = vpop.f32.mrb[109].mxu1 }
 0x1d3   : > { %v3652_v62 = vadd.f32 %v3651_v5, %v3650_v19  ;;  %v3653_v53 = vpop.f32.mrb[110].mxu0  ;;  %v3716_v21 = vadd.f32 %v3715_v13, %v3714_v20  ;;  %v3717_v28 = vpop.f32.mrb[110].mxu1 }
 0x1d4   : > { %v3654_v38 = vpop.f32.mrb[111].mxu0  ;;  %v3718_v54 = vpop.f32.mrb[111].mxu1 }
 0x1d5   : > { %v4950_v22 = vadd.f32 %v3652_v62, %v4857_v6  ;;  %v3655_v50 = vadd.f32 %v3654_v38, %v3653_v53  ;;  %v3719_v26 = vadd.f32 %v3718_v54, %v3717_v28  ;;  %v4953_v29 = vadd.f32 %v3716_v21, %v4854_v43 }
 0x1d7   : > { %v4956_v61 = vadd.f32 %v3655_v50, %v4863_v42  ;;  %v4959_v63 = vadd.f32 %v3719_v26, %v4860_v27 }
 0x1d9   : > { %v3810_v30 = vpop.f32.mrb[112].mxu0  ;;  %v3720_v46 = vpop.f32.mrb[112].mxu1 }
 0x1da   : > { %v2504_v33 = vadd.f32 %v3810_v30, %v4881_v57  ;;  %v2495_v44 = vpop.f32.mrb[113].mxu0  ;;  %v3721_v6 = vpop.f32.mrb[113].mxu1 }
 0x1db   : > { %v2496_v12 = vadd.f32 %v2495_v44, %v4869_v55  ;;  %v3811_v47 = vpop.f32.mrb[114].mxu0  ;;  %v3722_v31 = vadd.f32 %v3721_v6, %v3720_v46  ;;  %v3723_v16 = vpop.f32.mrb[114].mxu1 }
 0x1dc   : > { %v2507_v43 = vadd.f32 %v3811_v47, %v4887_v51  ;;  %v2498_v3 = vpop.f32.mrb[115].mxu0  ;;  %v3724_v27 = vpop.f32.mrb[115].mxu1  ;;  %v2822_v40 = vmul.f32 %v2504_v33, %v2504_v33 }
 0x1dd   : > { %v2499_v42 = vadd.f32 %v2498_v3, %v4875_v41  ;;  %v3725_v9 = vadd.f32 %v3724_v27, %v3723_v16  ;;  %v4973_v55 = vadd.f32 %v3722_v31, %v4866_v60  ;;  %v2820_v23 = vmul.f32 %v2496_v12, %v2496_v12 }
 0x1de   : > { %v3218_v57 = vpack.c.bf16 %v2507_v43, %v2504_v33  ;;  %v2823_v13 = vmul.f32 %v2507_v43, %v2507_v43 }
 0x1df   : > { %v3213_v36 = vpack.c.bf16 %v2499_v42, %v2496_v12  ;;  %v2782_v51 = vadd.f32 %v2499_v42, %v2496_v12  ;;  %v2821_v2 = vmul.f32 %v2499_v42, %v2499_v42  ;;  %v4977_v24 = vadd.f32 %v3725_v9, %v4872_v7 }
 0x1e0   : > { %3305 = vst [vmem:[%s4969_s10 + $0x8] sm:$0xff] %v3218_v57  }
 0x1e1   : > { %3214 = vst [vmem:[%s4969_s10] sm:$0xff] %v3213_v36   ;;  %v2783_v10 = vadd.f32 %v2782_v51, %v2504_v33  ;;  %v2852_v19 = vadd.f32 %v2821_v2, %v2820_v23  ;;  %v3814_v20 = vpop.f32.mrb[116].mxu0  ;;  %v3726_v5 = vpop.f32.mrb[116].mxu1 }
 0x1e2   : > { %v2520_v41 = vadd.f32 %v3814_v20, %v4905_v48  ;;  %v2511_v62 = vpop.f32.mrb[117].mxu0  ;;  %v3727_v53 = vpop.f32.mrb[117].mxu1 }
 0x1e3   : > { %v2853_v60 = vadd.f32 %v2852_v19, %v2822_v40  ;;  %v2512_v21 = vadd.f32 %v2511_v62, %v4893_v49  ;;  %v2784_v28 = vadd.f32 %v2783_v10, %v2507_v43  ;;  %v3815_v38 = vpop.f32.mrb[118].mxu0  ;;  %v3728_v50 = vadd.f32 %v3727_v53, %v3726_v5  ;;  %v3729_v7 = vpop.f32.mrb[118].mxu1 }
 0x1e4   : > { %v2523_v54 = vadd.f32 %v3815_v38, %v4911_v56  ;;  %v2514_v26 = vpop.f32.mrb[119].mxu0  ;;  %v3730_v44 = vpop.f32.mrb[119].mxu1  ;;  %v2826_v3 = vmul.f32 %v2520_v41, %v2520_v41 }
 0x1e5   : > { %v2785_v30 = vadd.f32 %v2784_v28, %v2512_v21  ;;  %v2824_v46 = vmul.f32 %v2512_v21, %v2512_v21  ;;  %v2854_v33 = vadd.f32 %v2853_v60, %v2823_v13  ;;  %v2515_v48 = vadd.f32 %v2514_v26, %v4899_v37 }
 0x1e6   : > { %v3228_v6 = vpack.c.bf16 %v2523_v54, %v2520_v41  ;;  %v3731_v12 = vadd.f32 %v3730_v44, %v3729_v7  ;;  %v4985_v47 = vadd.f32 %v3728_v50, %v4878_v59  ;;  %v2827_v36 = vmul.f32 %v2523_v54, %v2523_v54 }
 0x1e7   : > { %v2855_v49 = vadd.f32 %v2854_v33, %v2824_v46  ;;  %v3223_v31 = vpack.c.bf16 %v2515_v48, %v2512_v21  ;;  %v2786_v16 = vadd.f32 %v2785_v30, %v2515_v48  ;;  %v2825_v43 = vmul.f32 %v2515_v48, %v2515_v48 }
 0x1e8   : > { %3307 = vst [vmem:[%s4969_s10 + $0x18] sm:$0xff] %v3228_v6   ;;  %v4989_v56 = vadd.f32 %v3731_v12, %v4884_v1 }
 0x1e9   : > { %3306 = vst [vmem:[%s4969_s10 + $0x10] sm:$0xff] %v3223_v31   ;;  %v2787_v27 = vadd.f32 %v2786_v16, %v2520_v41  ;;  %v2856_v42 = vadd.f32 %v2855_v49, %v2825_v43  ;;  %v3818_v57 = vpop.f32.mrb[120].mxu0  ;;  %v3732_v9 = vpop.f32.mrb[120].mxu1 }
 0x1ea   : > { %v2536_v37 = vadd.f32 %v3818_v57, %v4929_v18  ;;  %v2527_v23 = vpop.f32.mrb[121].mxu0  ;;  %v3733_v51 = vpop.f32.mrb[121].mxu1 }
 0x1eb   : > { %v2857_v59 = vadd.f32 %v2856_v42, %v2826_v3  ;;  %v2528_v2 = vadd.f32 %v2527_v23, %v4917_v35  ;;  %v2788_v40 = vadd.f32 %v2787_v27, %v2523_v54  ;;  %v3819_v10 = vpop.f32.mrb[122].mxu0  ;;  %v3734_v19 = vadd.f32 %v3733_v51, %v3732_v9  ;;  %v3735_v1 = vpop.f32.mrb[122].mxu1 }
 0x1ec   : > { %v2539_v20 = vadd.f32 %v3819_v10, %v4935_v14  ;;  %v2530_v5 = vpop.f32.mrb[123].mxu0  ;;  %v3736_v60 = vpop.f32.mrb[123].mxu1  ;;  %v2830_v54 = vmul.f32 %v2536_v37, %v2536_v37 }
 0x1ed   : > { %v2789_v41 = vadd.f32 %v2788_v40, %v2528_v2  ;;  %v2828_v62 = vmul.f32 %v2528_v2, %v2528_v2  ;;  %v2858_v13 = vadd.f32 %v2857_v59, %v2827_v36  ;;  %v2531_v18 = vadd.f32 %v2530_v5, %v4923_v8 }
 0x1ee   : > { %v3238_v53 = vpack.c.bf16 %v2539_v20, %v2536_v37  ;;  %v3737_v21 = vadd.f32 %v3736_v60, %v3735_v1  ;;  %v4997_v28 = vadd.f32 %v3734_v19, %v4890_v11  ;;  %v2831_v48 = vmul.f32 %v2539_v20, %v2539_v20 }
 0x1ef   : > { %v2859_v35 = vadd.f32 %v2858_v13, %v2828_v62  ;;  %v3233_v38 = vpack.c.bf16 %v2531_v18, %v2528_v2  ;;  %v2790_v50 = vadd.f32 %v2789_v41, %v2531_v18  ;;  %v2829_v7 = vmul.f32 %v2531_v18, %v2531_v18 }
 0x1f0   : > { %3309 = vst [vmem:[%s4969_s10 + $0x28] sm:$0xff] %v3238_v53   ;;  %v5001_v14 = vadd.f32 %v3737_v21, %v4896_v45 }
 0x1f1   : > { %3308 = vst [vmem:[%s4969_s10 + $0x20] sm:$0xff] %v3233_v38   ;;  %v2791_v26 = vadd.f32 %v2790_v50, %v2536_v37  ;;  %v2860_v30 = vadd.f32 %v2859_v35, %v2829_v7  ;;  %v3822_v46 = vpop.f32.mrb[124].mxu0  ;;  %v3738_v33 = vpop.f32.mrb[124].mxu1 }
 0x1f2   : > { %v2552_v8 = vadd.f32 %v3822_v46, %v4953_v29  ;;  %v2543_v44 = vpop.f32.mrb[125].mxu0  ;;  %v3739_v6 = vpop.f32.mrb[125].mxu1 }
 0x1f3   : > { %v2861_v11 = vadd.f32 %v2860_v30, %v2830_v54  ;;  %v2544_v12 = vadd.f32 %v2543_v44, %v4941_v15  ;;  %v2792_v49 = vadd.f32 %v2791_v26, %v2539_v20  ;;  %v3823_v31 = vpop.f32.mrb[126].mxu0  ;;  %v3740_v16 = vadd.f32 %v3739_v6, %v3738_v33  ;;  %v3741_v45 = vpop.f32.mrb[126].mxu1 }
 0x1f4   : > { %v2555_v43 = vadd.f32 %v3823_v31, %v4959_v63  ;;  %v2546_v3 = vpop.f32.mrb[127].mxu0  ;;  %v3742_v9 = vpop.f32.mrb[127].mxu1  ;;  %v2834_v63 = vmul.f32 %v2552_v8, %v2552_v8 }
 0x1f5   : > { %v2793_v27 = vadd.f32 %v2792_v49, %v2544_v12  ;;  %v2832_v42 = vmul.f32 %v2544_v12, %v2544_v12  ;;  %v2862_v57 = vadd.f32 %v2861_v11, %v2831_v48  ;;  %v2547_v29 = vadd.f32 %v2546_v3, %v4947_v32 }
 0x1f6   : > { %v3248_v37 = vpack.c.bf16 %v2555_v43, %v2552_v8  ;;  %v3743_v23 = vadd.f32 %v3742_v9, %v3741_v45  ;;  %v2423_v36 = vadd.f32 %v3740_v16, %v4902_v39  ;;  %v2835_v41 = vmul.f32 %v2555_v43, %v2555_v43 }
 0x1f7   : > { %v2863_v15 = vadd.f32 %v2862_v57, %v2832_v42  ;;  %v3243_v59 = vpack.c.bf16 %v2547_v29, %v2544_v12  ;;  %v2794_v51 = vadd.f32 %v2793_v27, %v2547_v29  ;;  %v2833_v2 = vmul.f32 %v2547_v29, %v2547_v29 }
 0x1f8   : > { %3311 = vst [vmem:[%s4969_s10 + $0x38] sm:$0xff] %v3248_v37   ;;  %v2426_v40 = vadd.f32 %v3743_v23, %v4908_v17 }
 0x1f9   : > { %3310 = vst [vmem:[%s4969_s10 + $0x30] sm:$0xff] %v3243_v59   ;;  %v2795_v10 = vadd.f32 %v2794_v51, %v2552_v8  ;;  %v2864_v19 = vadd.f32 %v2863_v15, %v2833_v2  ;;  %v3826_v1 = vpop.f32.mrb[128].mxu0  ;;  %v3744_v20 = vpop.f32.mrb[128].mxu1 }
 0x1fa   : > { %v2568_v5 = vadd.f32 %v3826_v1, %v4985_v47  ;;  %v2559_v32 = vpop.f32.mrb[129].mxu0  ;;  %v3745_v13 = vpop.f32.mrb[129].mxu1 }
 0x1fb   : > { %v2865_v62 = vadd.f32 %v2864_v19, %v2834_v63  ;;  %v2560_v39 = vadd.f32 %v2559_v32, %v4973_v55  ;;  %v2796_v60 = vadd.f32 %v2795_v10, %v2555_v43  ;;  %v3827_v18 = vpop.f32.mrb[130].mxu0  ;;  %v3746_v53 = vadd.f32 %v3745_v13, %v3744_v20  ;;  %v3747_v21 = vpop.f32.mrb[130].mxu1 }
 0x1fc   : > { %v2571_v17 = vadd.f32 %v3827_v18, %v4989_v56  ;;  %v2562_v35 = vpop.f32.mrb[131].mxu0  ;;  %v3748_v54 = vpop.f32.mrb[131].mxu1  ;;  %v2838_v56 = vmul.f32 %v2568_v5, %v2568_v5 }
 0x1fd   : > { %v2797_v38 = vadd.f32 %v2796_v60, %v2560_v39  ;;  %v2836_v50 = vmul.f32 %v2560_v39, %v2560_v39  ;;  %v2866_v7 = vadd.f32 %v2865_v62, %v2835_v41  ;;  %v2563_v47 = vadd.f32 %v2562_v35, %v4977_v24 }
 0x1fe   : > { %v3258_v26 = vpack.c.bf16 %v2571_v17, %v2568_v5  ;;  %v3749_v30 = vadd.f32 %v3748_v54, %v3747_v21  ;;  %v2431_v46 = vadd.f32 %v3746_v53, %v4914_v34  ;;  %v2839_v24 = vmul.f32 %v2571_v17, %v2571_v17 }
 0x1ff   : > { %v2867_v55 = vadd.f32 %v2866_v7, %v2836_v50  ;;  %v3253_v33 = vpack.c.bf16 %v2563_v47, %v2560_v39  ;;  %v2798_v8 = vadd.f32 %v2797_v38, %v2563_v47  ;;  %v2837_v44 = vmul.f32 %v2563_v47, %v2563_v47 }
 0x200   : > { %3313 = vst [vmem:[%s4969_s10 + $0x48] sm:$0xff] %v3258_v26   ;;  %v2434_v48 = vadd.f32 %v3749_v30, %v4920_v58 }
 0x201   : > { %3312 = vst [vmem:[%s4969_s10 + $0x40] sm:$0xff] %v3253_v33   ;;  %v2799_v11 = vadd.f32 %v2798_v8, %v2568_v5  ;;  %v2868_v6 = vadd.f32 %v2867_v55, %v2837_v44  ;;  %v3830_v12 = vpop.f32.mrb[132].mxu0  ;;  %v3750_v49 = vpop.f32.mrb[132].mxu1 }
 0x202   : > { %v2584_v31 = vadd.f32 %v3830_v12, %v2423_v36  ;;  %v2575_v16 = vpop.f32.mrb[133].mxu0  ;;  %v3751_v43 = vpop.f32.mrb[133].mxu1 }
 0x203   : > { %v2869_v45 = vadd.f32 %v2868_v6, %v2838_v56  ;;  %v2576_v34 = vadd.f32 %v2575_v16, %v4997_v28  ;;  %v2800_v3 = vadd.f32 %v2799_v11, %v2571_v17  ;;  %v3831_v27 = vpop.f32.mrb[134].mxu0  ;;  %v3752_v42 = vadd.f32 %v3751_v43, %v3750_v49  ;;  %v3753_v57 = vpop.f32.mrb[134].mxu1 }
 0x204   : > { %v2587_v9 = vadd.f32 %v3831_v27, %v2426_v40  ;;  %v2578_v58 = vpop.f32.mrb[135].mxu0  ;;  %v3754_v15 = vpop.f32.mrb[135].mxu1  ;;  %v2842_v40 = vmul.f32 %v2584_v31, %v2584_v31 }
 0x205   : > { %v2801_v29 = vadd.f32 %v2800_v3, %v2576_v34  ;;  %v2840_v37 = vmul.f32 %v2576_v34, %v2576_v34  ;;  %v2870_v23 = vadd.f32 %v2869_v45, %v2839_v24  ;;  %v2579_v36 = vadd.f32 %v2578_v58, %v5001_v14 }
 0x206   : > { %v3268_v59 = vpack.c.bf16 %v2587_v9, %v2584_v31  ;;  %v3755_v51 = vadd.f32 %v3754_v15, %v3753_v57  ;;  %v2439_v2 = vadd.f32 %v3752_v42, %v4926_v0  ;;  %v2843_v14 = vmul.f32 %v2587_v9, %v2587_v9 }
 0x207   : > { %v2871_v63 = vadd.f32 %v2870_v23, %v2840_v37  ;;  %v3263_v28 = vpack.c.bf16 %v2579_v36, %v2576_v34  ;;  %v2802_v10 = vadd.f32 %v2801_v29, %v2579_v36  ;;  %v2841_v19 = vmul.f32 %v2579_v36, %v2579_v36 }
 0x208   : > { %3315 = vst [vmem:[%s4969_s10 + $0x58] sm:$0xff] %v3268_v59   ;;  %v2442_v1 = vadd.f32 %v3755_v51, %v4932_v52 }
 0x209   : > { %3314 = vst [vmem:[%s4969_s10 + $0x50] sm:$0xff] %v3263_v28   ;;  %v2803_v20 = vadd.f32 %v2802_v10, %v2584_v31  ;;  %v2872_v5 = vadd.f32 %v2871_v63, %v2841_v19  ;;  %v3834_v32 = vpop.f32.mrb[136].mxu0  ;;  %v3756_v41 = vpop.f32.mrb[136].mxu1 }
 0x20a   : > { %v2600_v62 = vadd.f32 %v3834_v32, %v2439_v2  ;;  %v2591_v13 = vpop.f32.mrb[137].mxu0  ;;  %v3757_v60 = vpop.f32.mrb[137].mxu1 }
 0x20b   : > { %v2873_v39 = vadd.f32 %v2872_v5, %v2842_v40  ;;  %v2592_v18 = vadd.f32 %v2591_v13, %v2431_v46  ;;  %v2804_v0 = vadd.f32 %v2803_v20, %v2587_v9  ;;  %v3835_v53 = vpop.f32.mrb[138].mxu0  ;;  %v3758_v21 = vadd.f32 %v3757_v60, %v3756_v41  ;;  %v3759_v17 = vpop.f32.mrb[138].mxu1 }
 0x20c   : > { %v2603_v35 = vadd.f32 %v3835_v53, %v2442_v1  ;;  %v2594_v38 = vpop.f32.mrb[139].mxu0  ;;  %v3760_v54 = vpop.f32.mrb[139].mxu1  ;;  %v2846_v11 = vmul.f32 %v2600_v62, %v2600_v62 }
 0x20d   : > { %v2805_v52 = vadd.f32 %v2804_v0, %v2592_v18  ;;  %v2844_v50 = vmul.f32 %v2592_v18, %v2592_v18  ;;  %v2874_v7 = vadd.f32 %v2873_v39, %v2843_v14  ;;  %v2595_v47 = vadd.f32 %v2594_v38, %v2434_v48 }
 0x20e   : > { %v3278_v26 = vpack.c.bf16 %v2603_v35, %v2600_v62  ;;  %v3761_v30 = vadd.f32 %v3760_v54, %v3759_v17  ;;  %v2447_v55 = vadd.f32 %v3758_v21, %v4938_v25  ;;  %v2847_v24 = vmul.f32 %v2603_v35, %v2603_v35 }
 0x20f   : > { %v2875_v33 = vadd.f32 %v2874_v7, %v2844_v50  ;;  %v3273_v8 = vpack.c.bf16 %v2595_v47, %v2592_v18  ;;  %v2806_v46 = vadd.f32 %v2805_v52, %v2595_v47  ;;  %v2845_v44 = vmul.f32 %v2595_v47, %v2595_v47 }
 0x210   : > { %3317 = vst [vmem:[%s4969_s10 + $0x68] sm:$0xff] %v3278_v26   ;;  %v2450_v56 = vadd.f32 %v3761_v30, %v4944_v4 }
 0x211   : > { %3316 = vst [vmem:[%s4969_s10 + $0x60] sm:$0xff] %v3273_v8   ;;  %v2807_v6 = vadd.f32 %v2806_v46, %v2600_v62  ;;  %v2876_v12 = vadd.f32 %v2875_v33, %v2845_v44  ;;  %v3838_v49 = vpop.f32.mrb[140].mxu0  ;;  %v3762_v31 = vpop.f32.mrb[140].mxu1 }
 0x212   : > { %v2607_v16 = vpop.f32.mrb[141].mxu0  ;;  %v3763_v45 = vpop.f32.mrb[141].mxu1 }
 0x213   : > { %v2877_v48 = vadd.f32 %v2876_v12, %v2846_v11  ;;  %v2608_v43 = vadd.f32 %v2607_v16, %v2447_v55  ;;  %v2808_v34 = vadd.f32 %v2807_v6, %v2603_v35  ;;  %v3839_v25 = vpop.f32.mrb[142].mxu0  ;;  %v3764_v3 = vadd.f32 %v3763_v45, %v3762_v31  ;;  %v3765_v27 = vpop.f32.mrb[142].mxu1 }
 0x214   : > { %v2610_v42 = vpop.f32.mrb[143].mxu0  ;;  %v3766_v58 = vpop.f32.mrb[143].mxu1 }
 0x215   : > { %v2809_v57 = vadd.f32 %v2808_v34, %v2608_v43  ;;  %v2848_v9 = vmul.f32 %v2608_v43, %v2608_v43  ;;  %v2878_v4 = vadd.f32 %v2877_v48, %v2847_v24  ;;  %v2611_v29 = vadd.f32 %v2610_v42, %v2450_v56 }
 0x216   : > { %v2455_v37 = vadd.f32 %v3764_v3, %v4950_v22  ;;  %v3767_v23 = vadd.f32 %v3766_v58, %v3765_v27 }
 0x217   : > { %v2879_v15 = vadd.f32 %v2878_v4, %v2848_v9  ;;  %v3283_v36 = vpack.c.bf16 %v2611_v29, %v2608_v43  ;;  %v2810_v59 = vadd.f32 %v2809_v57, %v2611_v29  ;;  %v2849_v51 = vmul.f32 %v2611_v29, %v2611_v29 }
 0x218   : > { %v2616_v2 = vadd.f32 %v3838_v49, %v2455_v37  ;;  %v2458_v63 = vadd.f32 %v3767_v23, %v4956_v61 }
 0x219   : > { %3318 = vst [vmem:[%s4969_s10 + $0x70] sm:$0xff] %v3283_v36   ;;  %v2880_v28 = vadd.f32 %v2879_v15, %v2849_v51 }
 0x21a   : > { %v2850_v10 = vmul.f32 %v2616_v2, %v2616_v2  ;;  %v2619_v19 = vadd.f32 %v3839_v25, %v2458_v63  ;;  %v2811_v1 = vadd.f32 %v2810_v59, %v2616_v2 }
 0x21c   : > { %v3288_v40 = vpack.c.bf16 %v2619_v19, %v2616_v2  ;;  %v2851_v20 = vmul.f32 %v2619_v19, %v2619_v19  ;;  %v2812_v5 = vadd.f32 %v2811_v1, %v2619_v19  ;;  %v2881_v22 = vadd.f32 %v2880_v28, %v2850_v10 }
 0x21e   : > { %3319 = vst [vmem:[%s4969_s10 + $0x78] sm:$0xff] %v3288_v40   ;;  %v2813_v32 = vrot.slane %v2812_v5, 4  ;;  %v2882_v41 = vadd.f32 %v2881_v22, %v2851_v20 }
 0x220   : > { %v2814_v62 = vadd.f32 %v2813_v32, %v2812_v5  ;;  %v2883_v13 = vrot.slane %v2882_v41, 4 }
 0x222   : > { %v2815_v14 = vrot.slane %v2814_v62, 2  ;;  %v2884_v39 = vadd.f32 %v2883_v13, %v2882_v41 }
 0x224   : > { %v2816_v60 = vadd.f32 %v2815_v14, %v2814_v62  ;;  %v2885_v61 = vrot.slane %v2884_v39, 2 }
 0x226   : > { %v2817_v18 = vrot.slane %v2816_v60, 1  ;;  %v2886_v0 = vadd.f32 %v2885_v61, %v2884_v39 }
 0x228   : > { %v2818_v53 = vadd.f32 %v2817_v18, %v2816_v60  ;;  %v2887_v21 = vrot.slane %v2886_v0, 1 }
 0x22a   : > { %2819 = vst [vmem:[%s265_s12] sm:$0x1] %v2818_v53  ;;  %v2888_v17 = vadd.f32 %v2887_v21, %v2886_v0 }
 0x22c   : > { %2889 = vst [vmem:[%s268_s20] sm:$0x1] %v2888_v17 }
 0x22d PF: > { %s17_s21 = sadd.s32 1, %s3944_s21  }
 0x22e   : > { %p14_p4 = scmp.ge.s32.totalorder %s17_s21, 4  }
 0x230   :  { %16 = sbr.rel (!%p14_p4) target bundleno = 1 (0x1), region = 93 }

// kernel: residual_block_forward.3
= control target key start
LH: loop header
LB: loop body
LE: loop exit
PB: predicated region body
PF: predicated region fallthrough
CT: control target
= control target key end

     0   :  { %s3695_s15 = smov 0   ;;  %s4656_s0 = inlined_call_operand.vmem [shape: f32[2,16,16,128], index: 0, kind: input, shape index: {}]   ;;  %s4657_s1 = inlined_call_operand.vmem [shape: bf16[1152,128], index: 1, kind: input, shape index: {}]   ;;  %s4658_s2 = inlined_call_operand.vmem [shape: bf16[2,256,128], index: 2, kind: output, shape index: {0}]   ;;  %s4659_s3 = inlined_call_operand.vmem [shape: f32[2,1,128], index: 3, kind: output, shape index: {1}]   ;;  %s4660_s4 = inlined_call_operand.vmem [shape: f32[2,1,128], index: 4, kind: output, shape index: {2}]  }
   0x1 LB: > { %s2799_s16 = sadd.s32 4294967295, %s3667_s15   ;;  %p2803_p0 = scmp.ge.s32.totalorder %s3667_s15, 1  ;;  %s3667_s15 = sphi %s3695_s15, %s15_s15  }
   0x2   : > { %p167_p1 = scmp.lt.s32.totalorder %s3667_s15, 3 }
   0x4   : > { %p168_p2 = pnand %p2803_p0, %p167_p1 }
   0x5   : > { %v3588_v0 = vld [vmem:[%s4657_s1 + $0x40] sm:$0xff] (!%p168_p2)   ;;  %v3669_v2 = vmov (!%p168_p2), 0.0   ;;  %v3590_v3 = vld [vmem:[%s4657_s1 + $0x48] sm:$0xff] (!%p168_p2)   ;;  %p199_p3 = scmp.lt.s32.totalorder (!%p168_p2), %s2799_s16, 1  ;;  %v3592_v5 = vld [vmem:[%s4657_s1 + $0x50] sm:$0xff] (!%p168_p2)  }
   0x6   : > { %171 = sbr.rel (%p168_p2) target bundleno = 557 (0x22d), region = 28  ;;  %v3589_v1 = vld [vmem:[%s4657_s1] sm:$0xff] (!%p168_p2)   ;;  %281 = vst [vmem:[#allocation2] sm:$0xff] (!%p168_p2), %v3669_v2  ;;  %282 = vst [vmem:[#allocation2 + $0x8] sm:$0xff] (!%p168_p2), %v3669_v2  ;;  %3043 = vmatprep.subr.bf16.mxu0 (!%p168_p2), %v3588_v0  ;;  %3563 = vmatprep.subr.bf16.mxu1 (!%p168_p2), %v3588_v0  ;;  %v3591_v4 = vld [vmem:[%s4657_s1 + $0x8] sm:$0xff] (!%p168_p2)  }
   0x7   : > { %283 = vst [vmem:[#allocation2 + $0x10] sm:$0x3] (!%p168_p2), %v3669_v2  ;;  %285 = vst [vmem:[#allocation2 + $0x198] sm:$0xff] (!%p168_p2), %v3669_v2  ;;  %3044 = vmatpush3.bf16.msra.mxu0 (!%p168_p2), %v3589_v1  ;;  %3571 = vmatpush3.bf16.msra.mxu1 (!%p168_p2), %v3589_v1  ;;  %v3593_v6 = vld [vmem:[%s4657_s1 + $0x10] sm:$0xff] (!%p168_p2)   ;;  %v3594_v7 = vld [vmem:[%s4657_s1 + $0x58] sm:$0xff] (!%p168_p2)  }
   0x8   : > { %286 = vst [vmem:[#allocation2 + $0x1a0] sm:$0xff] (!%p168_p2), %v3669_v2  ;;  %287 = vst [vmem:[#allocation2 + $0x1a8] sm:$0x3] (!%p168_p2), %v3669_v2  ;;  %3045 = vmatprep.subr.bf16.mxu0 (!%p168_p2), %v3590_v3  ;;  %3564 = vmatprep.subr.bf16.mxu1 (!%p168_p2), %v3590_v3  ;;  %v3595_v8 = vld [vmem:[%s4657_s1 + $0x18] sm:$0xff] (!%p168_p2)   ;;  %v3596_v9 = vld [vmem:[%s4657_s1 + $0x60] sm:$0xff] (!%p168_p2)  }
   0x9   : > { %289 = vst [vmem:[#allocation2 + $0x18] sm:$0x1] (!%p168_p2), %v3669_v2  ;;  %290 = vst [vmem:[#allocation2 + $0x30] sm:$0x1] (!%p168_p2), %v3669_v2  ;;  %v3597_v10 = vld [vmem:[%s4657_s1 + $0x20] sm:$0xff] (!%p168_p2)   ;;  %v3598_v11 = vld [vmem:[%s4657_s1 + $0x68] sm:$0xff] (!%p168_p2)  }
   0xa   : > { %291 = vst [vmem:[#allocation2 + $0x48] sm:$0x1] (!%p168_p2), %v3669_v2  ;;  %292 = vst [vmem:[#allocation2 + $0x60] sm:$0x1] (!%p168_p2), %v3669_v2  ;;  %v3599_v18 = vld [vmem:[%s4657_s1 + $0x28] sm:$0xff] (!%p168_p2)   ;;  %v3600_v19 = vld [vmem:[%s4657_s1 + $0x70] sm:$0xff] (!%p168_p2)  }
   0xb   : > { %293 = vst [vmem:[#allocation2 + $0x78] sm:$0x1] (!%p168_p2), %v3669_v2  ;;  %294 = vst [vmem:[#allocation2 + $0x90] sm:$0x1] (!%p168_p2), %v3669_v2  ;;  %3046 = vmatpush3.bf16.msra.mxu0 (!%p168_p2), %v3591_v4  ;;  %3572 = vmatpush3.bf16.msra.mxu1 (!%p168_p2), %v3591_v4  ;;  %v3601_v20 = vld [vmem:[%s4657_s1 + $0x30] sm:$0xff] (!%p168_p2)   ;;  %v3602_v22 = vld [vmem:[%s4657_s1 + $0x78] sm:$0xff] (!%p168_p2)  }
   0xc   : > { %295 = vst [vmem:[#allocation2 + $0xa8] sm:$0x1] (!%p168_p2), %v3669_v2  ;;  %296 = vst [vmem:[#allocation2 + $0xc0] sm:$0x1] (!%p168_p2), %v3669_v2  ;;  %3047 = vmatprep.subr.bf16.mxu0 (!%p168_p2), %v3592_v5  ;;  %3565 = vmatprep.subr.bf16.mxu1 (!%p168_p2), %v3592_v5  ;;  %v3603_v25 = vld [vmem:[%s4657_s1 + $0x38] sm:$0xff] (!%p168_p2)   ;;  %v3604_v29 = vld [vmem:[%s4657_s1 + $0xc0] sm:$0xff] (!%p168_p2)  }
   0xd   : > { %297 = vst [vmem:[#allocation2 + $0xd8] sm:$0x1] %v3669_v2  ;;  %298 = vst [vmem:[#allocation2 + $0xf0] sm:$0x1] %v3669_v2  ;;  %s4662_s16 = smov (!%p199_p3, %s2799_s16), 1  ;;  %v388_v12 = vld [vmem:[#allocation2 + $0x1] sm:$0xff] }
   0xe   : > { %299 = vst [vmem:[#allocation2 + $0x108] sm:$0x1] %v3669_v2  ;;  %300 = vst [vmem:[#allocation2 + $0x120] sm:$0x1] %v3669_v2  ;;  %s2914_s5 = sshll.u32 %s4662_s16, 8  ;;  %v389_v13 = vld [vmem:[#allocation2 + $0x9] sm:$0xff]  ;;  %s214_s8 = scalar_lea.vmem %s4660_s4, %s4662_s16 }
   0xf   : > { %301 = vst [vmem:[#allocation2 + $0x138] sm:$0x1] %v3669_v2  ;;  %302 = vst [vmem:[#allocation2 + $0x150] sm:$0x1] %v3669_v2  ;;  %3048 = vmatpush3.bf16.msra.mxu0 %v3593_v6  ;;  %3573 = vmatpush3.bf16.msra.mxu1 %v3593_v6  ;;  %s3782_s12 = scalar_lea.vmem %s4656_s0, %s2914_s5  ;;  %v420_v15 = vpack.c.bf16 %v389_v13, %v388_v12  ;;  %v3605_v31 = vld [vmem:[%s4657_s1 + $0x140] sm:$0xff]   ;;  %v3608_v36 = vld [vmem:[%s4657_s1 + $0xc8] sm:$0xff]   ;;  %s211_s5 = scalar_lea.vmem %s4659_s3, %s4662_s16 }
  0x10   : > { %303 = vst [vmem:[#allocation2 + $0x168] sm:$0x1] %v3669_v2  ;;  %304 = vst [vmem:[#allocation2 + $0x180] sm:$0x1] %v3669_v2  ;;  %3049 = vmatprep.subr.bf16.mxu0 %v3594_v7  ;;  %3566 = vmatprep.subr.bf16.mxu1 %v3594_v7  ;;  %v238_v14 = vld [vmem:[%s3782_s12 + $0xb0] sm:$0xff]  ;;  %v239_v16 = vld [vmem:[%s3782_s12 + $0xb8] sm:$0xff] }
  0x11   : > { %307 = vst [vmem:[#allocation2 + $0x29] sm:$0x1] %v3669_v2  ;;  %308 = vst [vmem:[#allocation2 + $0x41] sm:$0x1] %v3669_v2  ;;  %v432_v17 = vpack.c.bf16 %v239_v16, %v238_v14  ;;  %1653 = vmatprep.mubr.bf16.mxu0 %v420_v15  ;;  %v216_v21 = vld [vmem:[%s3782_s12] sm:$0xff]  ;;  %v217_v23 = vld [vmem:[%s3782_s12 + $0x8] sm:$0xff] }
  0x12   : > { %309 = vst [vmem:[#allocation2 + $0x59] sm:$0x1] %v3669_v2  ;;  %310 = vst [vmem:[#allocation2 + $0x71] sm:$0x1] %v3669_v2  ;;  %v240_v24 = vld [vmem:[%s3782_s12 + $0xc0] sm:$0xff]  ;;  %v241_v27 = vld [vmem:[%s3782_s12 + $0xc8] sm:$0xff]  ;;  %v3829_v37 = vpack.c.bf16 %v217_v23, %v216_v21 }
  0x13   : > { %311 = vst [vmem:[#allocation2 + $0x89] sm:$0x1] %v3669_v2  ;;  %312 = vst [vmem:[#allocation2 + $0xa1] sm:$0x1] %v3669_v2  ;;  %3050 = vmatpush3.bf16.msra.mxu0 %v3595_v8  ;;  %3574 = vmatpush3.bf16.msra.mxu1 %v3595_v8  ;;  %v3606_v34 = vld [vmem:[%s4657_s1 + $0x80] sm:$0xff]   ;;  %v3613_v38 = vld [vmem:[%s4657_s1 + $0x148] sm:$0xff]   ;;  %v433_v41 = vpack.c.bf16 %v241_v27, %v240_v24 }
  0x14   : > { %313 = vst [vmem:[#allocation2 + $0xb9] sm:$0x1] %v3669_v2  ;;  %314 = vst [vmem:[#allocation2 + $0xd1] sm:$0x1] %v3669_v2  ;;  %3051 = vmatprep.subr.bf16.mxu0 %v3596_v9  ;;  %3567 = vmatprep.subr.bf16.mxu1 %v3596_v9  ;;  %v3607_v35 = vld [vmem:[%s4657_s1 + $0x100] sm:$0xff]   ;;  %v218_v39 = vld [vmem:[%s3782_s12 + $0x10] sm:$0xff] }
  0x15   : > { %315 = vst [vmem:[#allocation2 + $0xe9] sm:$0x1] %v3669_v2  ;;  %316 = vst [vmem:[#allocation2 + $0x101] sm:$0x1] %v3669_v2  ;;  %1749 = vmatprep.mubr.bf16.mxu1 %v432_v17  ;;  %v3609_v40 = vld [vmem:[%s4657_s1 + $0x88] sm:$0xff]   ;;  %v219_v46 = vld [vmem:[%s3782_s12 + $0x18] sm:$0xff] }
  0x16   : > { %317 = vst [vmem:[#allocation2 + $0x119] sm:$0x1] %v3669_v2  ;;  %318 = vst [vmem:[#allocation2 + $0x131] sm:$0x1] %v3669_v2  ;;  %v3615_v45 = vld [vmem:[%s4657_s1 + $0x108] sm:$0xff]   ;;  %v242_v47 = vld [vmem:[%s3782_s12 + $0xd0] sm:$0xff]  ;;  %v3858_v56 = vpack.c.bf16 %v219_v46, %v218_v39 }
  0x17   : > { %319 = vst [vmem:[#allocation2 + $0x149] sm:$0x1] %v3669_v2  ;;  %320 = vst [vmem:[#allocation2 + $0x161] sm:$0x1] %v3669_v2  ;;  %3052 = vmatpush3.bf16.msra.mxu0 %v3597_v10  ;;  %3575 = vmatpush3.bf16.msra.mxu1 %v3597_v10  ;;  %v243_v48 = vld [vmem:[%s3782_s12 + $0xd8] sm:$0xff]  ;;  %v3610_v50 = vld [vmem:[%s4657_s1 + $0xd0] sm:$0xff]  }
  0x18   : > { %321 = vst [vmem:[#allocation2 + $0x179] sm:$0x1] %v3669_v2  ;;  %322 = vst [vmem:[#allocation2 + $0x191] sm:$0x1] %v3669_v2  ;;  %3053 = vmatprep.subr.bf16.mxu0 %v3598_v11  ;;  %3568 = vmatprep.subr.bf16.mxu1 %v3598_v11  ;;  %v3611_v53 = vld [vmem:[%s4657_s1 + $0x90] sm:$0xff]   ;;  %v220_v54 = vld [vmem:[%s3782_s12 + $0x20] sm:$0xff]  ;;  %v434_v60 = vpack.c.bf16 %v243_v48, %v242_v47 }
  0x19   : > { %306 = vst [vmem:[#allocation2 + $0x11] sm:$0x1] %v3669_v2  ;;  %288 = vst [vmem:[#allocation2] sm:$0x1] %v3669_v2  ;;  %v221_v55 = vld [vmem:[%s3782_s12 + $0x28] sm:$0xff]  ;;  %v244_v57 = vld [vmem:[%s3782_s12 + $0xe0] sm:$0xff] }
  0x1a   : > { %305 = vst [vmem:[#allocation2 + $0x198] sm:$0x1] %v3669_v2  ;;  %323 = vst [vmem:[#allocation2 + $0x1a9] sm:$0x1] %v3669_v2  ;;  %v245_v58 = vld [vmem:[%s3782_s12 + $0xe8] sm:$0xff]  ;;  %v3612_v59 = vld [vmem:[%s4657_s1 + $0xd8] sm:$0xff]   ;;  %v3887_v8 = vpack.c.bf16 %v221_v55, %v220_v54 }
  0x1b   : > { %271 = vst [vmem:[#allocation2 + $0x121] sm:$0xff] %v238_v14  ;;  %272 = vst [vmem:[#allocation2 + $0x129] sm:$0xff] %v239_v16  ;;  %3054 = vmatpush3.bf16.msra.mxu0 %v3599_v18  ;;  %3576 = vmatpush3.bf16.msra.mxu1 %v3599_v18  ;;  %v3614_v61 = vld [vmem:[%s4657_s1 + $0x98] sm:$0xff]   ;;  %v3616_v1 = vld [vmem:[%s4657_s1 + $0xe0] sm:$0xff]   ;;  %v435_v10 = vpack.c.bf16 %v245_v58, %v244_v57  ;;  %s2915_s25 = sshll.u32 %s4662_s16, 7 }
  0x1c   : > { %3055 = vmatprep.subr.bf16.mxu0 %v3600_v19  ;;  %3569 = vmatprep.subr.bf16.mxu1 %v3600_v19  ;;  %249 = vst [vmem:[#allocation2 + $0x19] sm:$0xff] %v216_v21  ;;  %250 = vst [vmem:[#allocation2 + $0x21] sm:$0xff] %v217_v23  ;;  %v3623_v4 = vld [vmem:[%s4657_s1 + $0x110] sm:$0xff]   ;;  %v3617_v7 = vld [vmem:[%s4657_s1 + $0xa0] sm:$0xff]   ;;  %s4580_s28 = scalar_lea.vmem %s4658_s2, %s2915_s25 }
  0x1d   : > { %273 = vst [vmem:[#allocation2 + $0x139] sm:$0xff] %v240_v24  ;;  %274 = vst [vmem:[#allocation2 + $0x141] sm:$0xff] %v241_v27  ;;  %v3618_v9 = vld [vmem:[%s4657_s1 + $0xe8] sm:$0xff]   ;;  %v222_v11 = vld [vmem:[%s3782_s12 + $0x30] sm:$0xff] }
  0x1e   : > { %251 = vst [vmem:[#allocation2 + $0x31] sm:$0xff] %v218_v39  ;;  %252 = vst [vmem:[#allocation2 + $0x39] sm:$0xff] %v219_v46  ;;  %v223_v12 = vld [vmem:[%s3782_s12 + $0x38] sm:$0xff]  ;;  %v3619_v13 = vld [vmem:[%s4657_s1 + $0xa8] sm:$0xff]  }
  0x1f   : > { %3056 = vmatpush3.bf16.msra.mxu0 %v3601_v20  ;;  %3577 = vmatpush3.bf16.msra.mxu1 %v3601_v20  ;;  %275 = vst [vmem:[#allocation2 + $0x151] sm:$0xff] %v242_v47  ;;  %276 = vst [vmem:[#allocation2 + $0x159] sm:$0xff] %v243_v48  ;;  %v3620_v17 = vld [vmem:[%s4657_s1 + $0xf0] sm:$0xff]   ;;  %v3628_v19 = vld [vmem:[%s4657_s1 + $0x158] sm:$0xff]  }
  0x20   : > { %v324_v26 = vld [vmem:[#allocation2] sm:$0xff]  ;;  %3057 = vmatprep.subr.bf16.mxu0 %v3602_v22  ;;  %3570 = vmatprep.subr.bf16.mxu1 %v3602_v22  ;;  %253 = vst [vmem:[#allocation2 + $0x49] sm:$0xff] %v220_v54  ;;  %254 = vst [vmem:[#allocation2 + $0x51] sm:$0xff] %v221_v55  ;;  %v3629_v20 = vld [vmem:[%s4657_s1 + $0x118] sm:$0xff]  }
  0x21   : > { %v356_v32 = vpack.c.bf16 %v3669_v2, %v324_v26  ;;  %277 = vst [vmem:[#allocation2 + $0x169] sm:$0xff] %v244_v57  ;;  %278 = vst [vmem:[#allocation2 + $0x171] sm:$0xff] %v245_v58  ;;  %v3621_v2 = vld [vmem:[%s4657_s1 + $0x150] sm:$0xff]   ;;  %v224_v21 = vld [vmem:[%s3782_s12 + $0x40] sm:$0xff]  ;;  %v3918_v26 = vpack.c.bf16 %v223_v12, %v222_v11 }
  0x22   : > { %v348_v28 = vld [vmem:[#allocation2 + $0x120] sm:$0xff]  ;;  %v349_v30 = vld [vmem:[#allocation2 + $0x128] sm:$0xff]  ;;  %255 = vst [vmem:[#allocation2 + $0x61] sm:$0xff] %v222_v11  ;;  %256 = vst [vmem:[#allocation2 + $0x69] sm:$0xff] %v223_v12 }
  0x23   : > { %v3818_v33 = vpack.c.bf16 %v349_v30, %v348_v28  ;;  %3058 = vmatpush3.bf16.msra.mxu0 %v3603_v25  ;;  %3578 = vmatpush3.bf16.msra.mxu1 %v3603_v25  ;;  %v326_v42 = vld [vmem:[#allocation2 + $0x18] sm:$0xff]  ;;  %v327_v43 = vld [vmem:[#allocation2 + $0x20] sm:$0xff]  ;;  %v225_v24 = vld [vmem:[%s3782_s12 + $0x48] sm:$0xff]  ;;  %257 = vst [vmem:[#allocation2 + $0x79] sm:$0xff] %v224_v21 }
  0x24   : > { %3155 = vmatprep.subr.bf16.mxu1 %v3604_v29  ;;  %3267 = vmatprep.subr.bf16.mxu0 %v3605_v31  ;;  %v350_v44 = vld [vmem:[#allocation2 + $0x138] sm:$0xff]  ;;  %v351_v49 = vld [vmem:[#allocation2 + $0x140] sm:$0xff]  ;;  %v3849_v51 = vpack.c.bf16 %v327_v43, %v326_v42  ;;  %v3622_v25 = vld [vmem:[%s4657_s1 + $0xb0] sm:$0xff]   ;;  %258 = vst [vmem:[#allocation2 + $0x81] sm:$0xff] %v225_v24 }
  0x25   : > { %v3851_v52 = vpack.c.bf16 %v351_v49, %v350_v44  ;;  %v328_v62 = vld [vmem:[#allocation2 + $0x30] sm:$0xff]  ;;  %v329_v63 = vld [vmem:[#allocation2 + $0x38] sm:$0xff]  ;;  %v3626_v39 = vld [vmem:[%s4657_s1 + $0x1c0] sm:$0xff]  }
  0x26   : > { %1654 = vmatmul.mubr.bf16.vlgmr.msra.gmra.mrb[0].mxu0 %v356_v32  ;;  %1750 = vmatmul.mubr.bf16.vlgmr.msra.gmra.mrb[0].mxu1 %v3818_v33  ;;  %v352_v0 = vld [vmem:[#allocation2 + $0x150] sm:$0xff]  ;;  %v353_v3 = vld [vmem:[#allocation2 + $0x158] sm:$0xff]  ;;  %v3880_v5 = vpack.c.bf16 %v329_v63, %v328_v62  ;;  %v452_v32 = vld [vmem:[#allocation2 + $0x2] sm:$0xff] }
  0x27   : > { %3156 = vmatpush3.bf16.msra.mxu1 %v3606_v34  ;;  %3268 = vmatpush3.bf16.msra.mxu0 %v3607_v35  ;;  %v3882_v6 = vpack.c.bf16 %v353_v3, %v352_v0  ;;  %v330_v14 = vld [vmem:[#allocation2 + $0x48] sm:$0xff]  ;;  %v331_v15 = vld [vmem:[#allocation2 + $0x50] sm:$0xff]  ;;  %v227_v28 = vld [vmem:[%s3782_s12 + $0x58] sm:$0xff] }
  0x28   : > { %3157 = vmatprep.subr.bf16.mxu1 %v3608_v36  ;;  %1661 = vmatprep.mubr.bf16.mxu0 %v3829_v37  ;;  %v354_v16 = vld [vmem:[#allocation2 + $0x168] sm:$0xff]  ;;  %v355_v18 = vld [vmem:[#allocation2 + $0x170] sm:$0xff]  ;;  %v3910_v22 = vpack.c.bf16 %v331_v15, %v330_v14  ;;  %v3624_v29 = vld [vmem:[%s4657_s1 + $0xf8] sm:$0xff]   ;;  %260 = vst [vmem:[#allocation2 + $0x99] sm:$0xff] %v227_v28 }
  0x29   : > { %1757 = vmatprep.mubr.bf16.mxu1 %v433_v41  ;;  %3269 = vmatprep.subr.bf16.mxu0 %v3613_v38  ;;  %v3912_v23 = vpack.c.bf16 %v355_v18, %v354_v16  ;;  %v226_v27 = vld [vmem:[%s3782_s12 + $0x50] sm:$0xff]  ;;  %v3625_v30 = vld [vmem:[%s4657_s1 + $0xb8] sm:$0xff]   ;;  %v332_v31 = vld [vmem:[#allocation2 + $0x60] sm:$0xff] }
  0x2a   : > { %259 = vst [vmem:[#allocation2 + $0x91] sm:$0xff] %v226_v27  ;;  %v453_v34 = vld [vmem:[#allocation2 + $0xa] sm:$0xff]  ;;  %v3630_v35 = vld [vmem:[%s4657_s1 + $0x160] sm:$0xff]   ;;  %v3973_v55 = vld [vmem:[%s3782_s12 + $0x78] sm:$0xff]  ;;  %v3996_v0 = vpack.c.bf16 %v227_v28, %v226_v27 }
  0x2b   : > { %3158 = vmatpush3.bf16.msra.mxu1 %v3609_v40  ;;  %3270 = vmatpush3.bf16.msra.mxu0 %v3615_v45  ;;  %v333_v36 = vld [vmem:[#allocation2 + $0x68] sm:$0xff]  ;;  %v3632_v38 = vld [vmem:[%s4657_s1 + $0x120] sm:$0xff]   ;;  %v484_v43 = vpack.c.bf16 %v453_v34, %v452_v32  ;;  %v3954_v45 = vpack.c.bf16 %v225_v24, %v224_v21  ;;  %264 = vst [vmem:[#allocation2 + $0xc9] sm:$0xff] %v3973_v55  ;;  %v3636_v58 = vld [vmem:[%s4657_s1 + $0x1d0] sm:$0xff]  }
  0x2c   : > { %3159 = vmatprep.subr.bf16.mxu1 %v3610_v50  ;;  %3271 = vmatprep.subr.bf16.mxu0 %v3621_v2  ;;  %v3942_v40 = vld [vmem:[%s3782_s12 + $0x60] sm:$0xff]  ;;  %v3945_v41 = vld [vmem:[%s3782_s12 + $0x68] sm:$0xff]  ;;  %v3947_v42 = vpack.c.bf16 %v333_v36, %v332_v31  ;;  %v3637_v62 = vld [vmem:[%s4657_s1 + $0x190] sm:$0xff]  }
  0x2d   : > { %261 = vst [vmem:[#allocation2 + $0xa9] sm:$0xff] %v3942_v40  ;;  %262 = vst [vmem:[#allocation2 + $0xb1] sm:$0xff] %v3945_v41  ;;  %v3627_v44 = vld [vmem:[%s4657_s1 + $0x180] sm:$0xff]   ;;  %v3631_v46 = vld [vmem:[%s4657_s1 + $0x1c8] sm:$0xff]  }
  0x2e   : > { %1662 = vmatmul.mubr.bf16.gmra.mrb[4].mxu0 %v3849_v51  ;;  %1758 = vmatmul.mubr.bf16.gmra.mrb[4].mxu1 %v3851_v52  ;;  %v454_v47 = vld [vmem:[#allocation2 + $0x1a] sm:$0xff]  ;;  %v455_v48 = vld [vmem:[#allocation2 + $0x22] sm:$0xff]  ;;  %v3639_v2 = vld [vmem:[%s4657_s1 + $0x130] sm:$0xff]  }
  0x2f   : > { %3160 = vmatpush3.bf16.msra.mxu1 %v3611_v53  ;;  %1669 = vmatprep.mubr.bf16.mxu0 %v3858_v56  ;;  %v3633_v49 = vld [vmem:[%s4657_s1 + $0x188] sm:$0xff]   ;;  %v334_v53 = vld [vmem:[#allocation2 + $0x78] sm:$0xff]  ;;  %v335_v57 = vld [vmem:[#allocation2 + $0x80] sm:$0xff] }
  0x30   : > { %3161 = vmatprep.subr.bf16.mxu1 %v3612_v59  ;;  %1765 = vmatprep.mubr.bf16.mxu1 %v434_v60  ;;  %v3634_v50 = vld [vmem:[%s4657_s1 + $0x168] sm:$0xff]   ;;  %v3983_v59 = vld [vmem:[%s3782_s12 + $0x80] sm:$0xff]  ;;  %v3985_v60 = vpack.c.bf16 %v335_v57, %v334_v53  ;;  %v456_v3 = vld [vmem:[#allocation2 + $0x32] sm:$0xff] }
  0x31   : > { %3272 = vmatpush3.bf16.msra.mxu0 %v3623_v4  ;;  %v3635_v54 = vld [vmem:[%s4657_s1 + $0x128] sm:$0xff]   ;;  %265 = vst [vmem:[#allocation2 + $0xd9] sm:$0xff] %v3983_v59  ;;  %v4006_v4 = vld [vmem:[%s3782_s12 + $0x90] sm:$0xff]  ;;  %v457_v11 = vld [vmem:[#allocation2 + $0x3a] sm:$0xff] }
  0x32   : > { %3273 = vmatprep.subr.bf16.mxu0 %v3628_v19  ;;  %v3993_v63 = vld [vmem:[%s3782_s12 + $0x88] sm:$0xff]  ;;  %267 = vst [vmem:[#allocation2 + $0xf1] sm:$0xff] %v4006_v4  ;;  %v3640_v12 = vld [vmem:[%s4657_s1 + $0x1d8] sm:$0xff]   ;;  %v4025_v15 = vpack.c.bf16 %v457_v11, %v456_v3  ;;  %v4038_v19 = vld [vmem:[%s3782_s12 + $0xa0] sm:$0xff] }
  0x33   : > { %3162 = vmatpush3.bf16.msra.mxu1 %v3614_v61  ;;  %v3987_v61 = vpack.c.bf16 %v455_v48, %v454_v47  ;;  %266 = vst [vmem:[#allocation2 + $0xe1] sm:$0xff] %v3993_v63  ;;  %v3642_v16 = vld [vmem:[%s4657_s1 + $0x178] sm:$0xff]   ;;  %269 = vst [vmem:[#allocation2 + $0x109] sm:$0xff] %v4038_v19  ;;  %v458_v24 = vld [vmem:[#allocation2 + $0x4a] sm:$0xff]  ;;  %v4091_v48 = vpack.c.bf16 %v3993_v63, %v3983_v59 }
  0x34   : > { %3163 = vmatprep.subr.bf16.mxu1 %v3616_v1  ;;  %v3638_v1 = vld [vmem:[%s4657_s1 + $0x170] sm:$0xff]   ;;  %v3643_v18 = vld [vmem:[%s4657_s1 + $0x138] sm:$0xff]   ;;  %v338_v21 = vld [vmem:[#allocation2 + $0xa8] sm:$0xff] }
  0x35   : > { %3274 = vmatpush3.bf16.msra.mxu0 %v3629_v20  ;;  %v4041_v20 = vld [vmem:[%s3782_s12 + $0xa8] sm:$0xff]  ;;  %v339_v27 = vld [vmem:[#allocation2 + $0xb0] sm:$0xff]  ;;  %v3644_v28 = vld [vmem:[%s4657_s1 + $0x1e0] sm:$0xff]  }
  0x36   : > { %1670 = vmatmul.mubr.bf16.gmra.mrb[8].mxu0 %v3880_v5  ;;  %1766 = vmatmul.mubr.bf16.gmra.mrb[8].mxu1 %v3882_v6  ;;  %270 = vst [vmem:[#allocation2 + $0x111] sm:$0xff] %v4041_v20  ;;  %v4060_v31 = vpack.c.bf16 %v339_v27, %v338_v21  ;;  %v460_v36 = vld [vmem:[#allocation2 + $0x62] sm:$0xff]  ;;  %v3652_v47 = vld [vmem:[%s4657_s1 + $0x1b0] sm:$0xff]  }
  0x37   : > { %3164 = vmatpush3.bf16.msra.mxu1 %v3617_v7  ;;  %1677 = vmatprep.mubr.bf16.mxu0 %v3887_v8  ;;  %v4009_v7 = vld [vmem:[%s3782_s12 + $0x98] sm:$0xff]  ;;  %v463_v53 = vld [vmem:[#allocation2 + $0x82] sm:$0xff]  ;;  %v246_v57 = vld [vmem:[%s3782_s12 + $0xf0] sm:$0xff] }
  0x38   : > { %3165 = vmatprep.subr.bf16.mxu1 %v3618_v9  ;;  %1773 = vmatprep.mubr.bf16.mxu1 %v435_v10  ;;  %v336_v9 = vld [vmem:[#allocation2 + $0x90] sm:$0xff]  ;;  %v337_v10 = vld [vmem:[#allocation2 + $0x98] sm:$0xff]  ;;  %268 = vst [vmem:[#allocation2 + $0xf9] sm:$0xff] %v4009_v7  ;;  %279 = vst [vmem:[#allocation2 + $0x181] sm:$0xff] %v246_v57  ;;  %v4111_v63 = vpack.c.bf16 %v4009_v7, %v4006_v4  ;;  %v4123_v4 = vpack.c.bf16 %v4041_v20, %v4038_v19 }
  0x39   : > { %3275 = vmatprep.subr.bf16.mxu0 %v3630_v35  ;;  %v4023_v14 = vpack.c.bf16 %v337_v10, %v336_v9  ;;  %v3647_v35 = vld [vmem:[%s4657_s1 + $0x1e8] sm:$0xff]   ;;  %v465_v9 = vld [vmem:[#allocation2 + $0x9a] sm:$0xff] }
  0x3a   : > { %3276 = vmatpush3.bf16.msra.mxu0 %v3632_v38  ;;  %v461_v38 = vld [vmem:[#allocation2 + $0x6a] sm:$0xff] }
  0x3b   : > { %3166 = vmatpush3.bf16.msra.mxu1 %v3619_v13  ;;  %3277 = vmatprep.subr.bf16.mxu0 %v3634_v50  ;;  %v3641_v13 = vld [vmem:[%s4657_s1 + $0x198] sm:$0xff]   ;;  %v466_v7 = vld [vmem:[#allocation2 + $0xaa] sm:$0xff] }
  0x3c   : > { %3167 = vmatprep.subr.bf16.mxu1 %v3620_v17  ;;  %v4032_v17 = vpack.c.bf16 %v3945_v41, %v3942_v40  ;;  %v342_v50 = vld [vmem:[#allocation2 + $0xd8] sm:$0xff]  ;;  %v469_v20 = vld [vmem:[#allocation2 + $0xca] sm:$0xff] }
  0x3d   : > { %v3648_v27 = vld [vmem:[%s4657_s1 + $0x208] sm:$0xff]  }
  0x3e   : > { %1678 = vmatmul.mubr.bf16.gmra.mrb[12].mxu0 %v3910_v22  ;;  %1774 = vmatmul.mubr.bf16.gmra.mrb[12].mxu1 %v3912_v23 }
  0x3f   : > { %3168 = vmatpush3.bf16.msra.mxu1 %v3622_v25  ;;  %1685 = vmatprep.mubr.bf16.mxu0 %v3918_v26  ;;  %v459_v25 = vld [vmem:[#allocation2 + $0x52] sm:$0xff] }
  0x40   : > { %3169 = vmatprep.subr.bf16.mxu1 %v3624_v29  ;;  %1814 = vmatprep.mubr.bf16.mxu1 %v3849_v51  ;;  %v3966_v51 = vld [vmem:[%s3782_s12 + $0x70] sm:$0xff]  ;;  %v4055_v29 = vld [vmem:[%s4657_s1 + $0x200] sm:$0xff]   ;;  %v4062_v32 = vpack.c.bf16 %v459_v25, %v458_v24  ;;  %v345_v3 = vld [vmem:[#allocation2 + $0xf8] sm:$0xff] }
  0x41   : > { %263 = vst [vmem:[#allocation2 + $0xc1] sm:$0xff] %v3966_v51  ;;  %3278 = vmatpush3.bf16.msra.mxu0 %v3635_v54  ;;  %v4067_v34 = vpack.c.bf16 %v3973_v55, %v3966_v51  ;;  %v462_v51 = vld [vmem:[#allocation2 + $0x7a] sm:$0xff] }
  0x42   : > { %3279 = vmatprep.subr.bf16.mxu0 %v3638_v1  ;;  %v3655_v54 = vld [vmem:[%s4657_s1 + $0x1b8] sm:$0xff]   ;;  %v343_v55 = vld [vmem:[#allocation2 + $0xe0] sm:$0xff] }
  0x43   : > { %3170 = vmatpush3.bf16.msra.mxu1 %v3625_v30  ;;  %v3646_v30 = vld [vmem:[%s4657_s1 + $0x1a0] sm:$0xff]   ;;  %v4105_v59 = vpack.c.bf16 %v343_v55, %v342_v50  ;;  %v464_v1 = vld [vmem:[#allocation2 + $0x92] sm:$0xff]  ;;  %v477_v50 = vld [vmem:[#allocation2 + $0x12a] sm:$0xff] }
  0x44   : > { %3379 = vmatprep.subr.bf16.mxu1 %v3626_v39  ;;  %v3649_v39 = vld [vmem:[%s4657_s1 + $0x1a8] sm:$0xff]   ;;  %v4119_v11 = vpack.c.bf16 %v465_v9, %v464_v1  ;;  %v480_v55 = vld [vmem:[#allocation2 + $0x152] sm:$0xff] }
  0x45   : > { %3280 = vmatpush3.bf16.msra.mxu0 %v3639_v2  ;;  %v344_v2 = vld [vmem:[#allocation2 + $0xf0] sm:$0xff] }
  0x46   : > { %1686 = vmatmul.mubr.bf16.gmra.mrb[16].mxu0 %v3947_v42  ;;  %1815 = vmatmul.mubr.bf16.vlgmr.msra.gmra.mrb[16].mxu1 %v484_v43  ;;  %v3650_v43 = vld [vmem:[%s4657_s1 + $0x1f0] sm:$0xff]   ;;  %v4117_v10 = vpack.c.bf16 %v345_v3, %v344_v2 }
  0x47   : > { %3380 = vmatpush3.bf16.msra.mxu1 %v3627_v44  ;;  %1693 = vmatprep.mubr.bf16.mxu0 %v3954_v45  ;;  %v482_v3 = vld [vmem:[#allocation2 + $0x16a] sm:$0xff] }
  0x48   : > { %1822 = vmatprep.mubr.bf16.mxu1 %v3880_v5  ;;  %3381 = vmatprep.subr.bf16.mxu1 %v3631_v46  ;;  %v340_v40 = vld [vmem:[#allocation2 + $0xc0] sm:$0xff]  ;;  %v341_v41 = vld [vmem:[#allocation2 + $0xc8] sm:$0xff]  ;;  %v4084_v46 = vpack.c.bf16 %v461_v38, %v460_v36 }
  0x49   : > { %3281 = vmatprep.subr.bf16.mxu0 %v3642_v16  ;;  %v4082_v44 = vpack.c.bf16 %v341_v41, %v340_v40  ;;  %v467_v16 = vld [vmem:[#allocation2 + $0xb2] sm:$0xff]  ;;  %v468_v19 = vld [vmem:[#allocation2 + $0xc2] sm:$0xff]  ;;  %v474_v40 = vld [vmem:[#allocation2 + $0x10a] sm:$0xff] }
  0x4a   : > { %3282 = vmatpush3.bf16.msra.mxu0 %v3643_v18  ;;  %v4131_v21 = vpack.c.bf16 %v467_v16, %v466_v7  ;;  %v4139_v25 = vpack.c.bf16 %v469_v20, %v468_v19  ;;  %v3656_v36 = vld [vmem:[%s4657_s1 + $0x220] sm:$0xff]   ;;  %v475_v41 = vld [vmem:[#allocation2 + $0x112] sm:$0xff] }
  0x4b   : > { %3382 = vmatpush3.bf16.msra.mxu1 %v3633_v49  ;;  %3515 = vmatprep.subr.bf16.mxu0 %v4055_v29  ;;  %v3653_v49 = vld [vmem:[%s4657_s1 + $0x1f8] sm:$0xff]  }
  0x4c   : > { %3383 = vmatprep.subr.bf16.mxu1 %v3636_v58  ;;  %v247_v58 = vld [vmem:[%s3782_s12 + $0xf8] sm:$0xff] }
  0x4d   : > { %280 = vst [vmem:[#allocation2 + $0x189] sm:$0xff] %v247_v58  ;;  %v4133_v24 = vpack.c.bf16 %v247_v58, %v246_v57  ;;  %v481_v57 = vld [vmem:[#allocation2 + $0x15a] sm:$0xff] }
  0x4e   : > { %1694 = vmatmul.mubr.bf16.gmra.mrb[20].mxu0 %v3985_v60  ;;  %1823 = vmatmul.mubr.bf16.gmra.mrb[20].mxu1 %v3987_v61  ;;  %v546_v58 = vld [vmem:[#allocation2 + $0x180] sm:$0xff]  ;;  %v4197_v2 = vpack.c.bf16 %v481_v57, %v480_v55 }
  0x4f   : > { %1701 = vmatprep.mubr.bf16.mxu0 %v3996_v0  ;;  %1830 = vmatprep.mubr.bf16.mxu1 %v3910_v22 }
  0x50   : > { %3384 = vmatpush3.bf16.msra.mxu1 %v3637_v62  ;;  %v4107_v62 = vpack.c.bf16 %v463_v53, %v462_v51  ;;  %v478_v53 = vld [vmem:[#allocation2 + $0x13a] sm:$0xff] }
  0x51   : > { %3385 = vmatprep.subr.bf16.mxu1 %v3640_v12  ;;  %v346_v12 = vld [vmem:[#allocation2 + $0x108] sm:$0xff] }
  0x54   : > { %3386 = vmatpush3.bf16.msra.mxu1 %v3641_v13  ;;  %v347_v13 = vld [vmem:[#allocation2 + $0x110] sm:$0xff]  ;;  %v547_v1 = vld [vmem:[#allocation2 + $0x188] sm:$0xff] }
  0x55   : > { %3387 = vmatprep.subr.bf16.mxu1 %v3644_v28  ;;  %v4129_v18 = vpack.c.bf16 %v347_v13, %v346_v12  ;;  %v470_v28 = vld [vmem:[#allocation2 + $0xda] sm:$0xff]  ;;  %v674_v13 = vld [vmem:[#allocation2 + $0x182] sm:$0xff] }
  0x56   : > { %1702 = vmatmul.mubr.bf16.gmra.mrb[24].mxu0 %v4023_v14  ;;  %1831 = vmatmul.mubr.bf16.gmra.mrb[24].mxu1 %v4025_v15 }
  0x57   : > { %1709 = vmatprep.mubr.bf16.mxu0 %v4032_v17  ;;  %1838 = vmatprep.mubr.bf16.mxu1 %v3947_v42 }
  0x58   : > { %3388 = vmatpush3.bf16.msra.mxu1 %v3646_v30  ;;  %v471_v30 = vld [vmem:[#allocation2 + $0xe2] sm:$0xff] }
  0x59   : > { %3389 = vmatprep.subr.bf16.mxu1 %v3647_v35  ;;  %v4152_v35 = vpack.c.bf16 %v471_v30, %v470_v28 }
  0x5c   : > { %3390 = vmatpush3.bf16.msra.mxu1 %v3649_v39  ;;  %v3657_v39 = vld [vmem:[%s4657_s1 + $0x228] sm:$0xff]  }
  0x5d   : > { %3391 = vmatprep.subr.bf16.mxu1 %v3650_v43  ;;  %v3658_v43 = vld [vmem:[%s4657_s1 + $0x230] sm:$0xff]  }
  0x5e   : > { %1710 = vmatmul.mubr.bf16.gmra.mrb[28].mxu0 %v4060_v31  ;;  %1839 = vmatmul.mubr.bf16.gmra.mrb[28].mxu1 %v4062_v32 }
  0x5f   : > { %1717 = vmatprep.mubr.bf16.mxu0 %v4067_v34  ;;  %1846 = vmatprep.mubr.bf16.mxu1 %v3985_v60 }
  0x60   : > { %3392 = vmatpush3.bf16.msra.mxu1 %v3652_v47  ;;  %v4176_v47 = vpack.c.bf16 %v475_v41, %v474_v40 }
  0x61   : > { %3393 = vmatprep.subr.bf16.mxu1 %v3653_v49  ;;  %v3659_v49 = vld [vmem:[%s4657_s1 + $0x238] sm:$0xff]  }
  0x64   : > { %3394 = vmatpush3.bf16.msra.mxu1 %v3655_v54  ;;  %v479_v54 = vld [vmem:[#allocation2 + $0x142] sm:$0xff] }
  0x66   : > { %1718 = vmatmul.mubr.bf16.gmra.mrb[32].mxu0 %v4082_v44  ;;  %1847 = vmatmul.mubr.bf16.gmra.mrb[32].mxu1 %v4084_v46 }
  0x67   : > { %1725 = vmatprep.mubr.bf16.mxu0 %v4091_v48  ;;  %1854 = vmatprep.mubr.bf16.mxu1 %v4023_v14 }
  0x6e   : > { %1726 = vmatmul.mubr.bf16.gmra.mrb[36].mxu0 %v4105_v59  ;;  %1855 = vmatmul.mubr.bf16.gmra.mrb[36].mxu1 %v4107_v62 }
  0x6f   : > { %1733 = vmatprep.mubr.bf16.mxu0 %v4111_v63  ;;  %1862 = vmatprep.mubr.bf16.mxu1 %v4060_v31 }
  0x76   : > { %1734 = vmatmul.mubr.bf16.gmra.mrb[40].mxu0 %v4117_v10  ;;  %1863 = vmatmul.mubr.bf16.gmra.mrb[40].mxu1 %v4119_v11 }
  0x77   : > { %1741 = vmatprep.mubr.bf16.mxu0 %v4123_v4  ;;  %1870 = vmatprep.mubr.bf16.mxu1 %v4082_v44 }
  0x7e   : > { %1742 = vmatmul.mubr.bf16.gmra.mrb[44].mxu0 %v4129_v18  ;;  %1871 = vmatmul.mubr.bf16.gmra.mrb[44].mxu1 %v4131_v21 }
  0x7f   : > { %1878 = vmatprep.mubr.bf16.mxu1 %v4105_v59  ;;  %1975 = vmatprep.mubr.bf16.mxu0 %v3987_v61  ;;  %v3651_v61 = vld [vmem:[%s4657_s1 + $0x210] sm:$0xff]  }
  0x86   : > { %1879 = vmatmul.mubr.bf16.gmra.mrb[48].mxu1 %v4139_v25  ;;  %1976 = vmatmul.mubr.bf16.vlgmr.msra.gmra.mrb[48].mxu0 %v3829_v37  ;;  %v3654_v37 = vld [vmem:[%s4657_s1 + $0x218] sm:$0xff]  }
  0x87   : > { %3516 = vmatpush3.bf16.msra.mxu0 %v4055_v29  ;;  %1886 = vmatprep.mubr.bf16.mxu1 %v4117_v10  ;;  %v473_v29 = vld [vmem:[#allocation2 + $0xfa] sm:$0xff] }
  0x88   : > { %1983 = vmatprep.mubr.bf16.mxu0 %v4025_v15  ;;  %3517 = vmatprep.subr.bf16.mxu0 %v3648_v27  ;;  %v472_v15 = vld [vmem:[#allocation2 + $0xf2] sm:$0xff] }
  0x89   : > { %v4164_v38 = vpack.c.bf16 %v473_v29, %v472_v15 }
  0x8b   : > { %3518 = vmatpush3.bf16.msra.mxu0 %v3648_v27 }
  0x8c   : > { %3519 = vmatprep.subr.bf16.mxu0 %v3651_v61 }
  0x8e   : > { %1887 = vmatmul.mubr.bf16.gmra.mrb[52].mxu1 %v4152_v35  ;;  %1984 = vmatmul.mubr.bf16.gmra.mrb[52].mxu0 %v3858_v56 }
  0x8f   : > { %1894 = vmatprep.mubr.bf16.mxu1 %v4129_v18  ;;  %1991 = vmatprep.mubr.bf16.mxu0 %v4062_v32 }
  0x90   : > { %3520 = vmatpush3.bf16.msra.mxu0 %v3651_v61 }
  0x91   : > { %3521 = vmatprep.subr.bf16.mxu0 %v3654_v37 }
  0x94   : > { %3522 = vmatpush3.bf16.msra.mxu0 %v3654_v37 }
  0x95   : > { %3523 = vmatprep.subr.bf16.mxu0 %v3656_v36 }
  0x96   : > { %1895 = vmatmul.mubr.bf16.gmra.mrb[56].mxu1 %v4164_v38  ;;  %1992 = vmatmul.mubr.bf16.gmra.mrb[56].mxu0 %v3887_v8 }
  0x97   : > { %1902 = vmatprep.mubr.bf16.mxu1 %v3818_v33  ;;  %1999 = vmatprep.mubr.bf16.mxu0 %v4084_v46  ;;  %v476_v33 = vld [vmem:[#allocation2 + $0x122] sm:$0xff] }
  0x98   : > { %3524 = vmatpush3.bf16.msra.mxu0 %v3656_v36  ;;  %v4185_v51 = vpack.c.bf16 %v477_v50, %v476_v33 }
  0x99   : > { %3525 = vmatprep.subr.bf16.mxu0 %v3657_v39 }
  0x9c   : > { %3526 = vmatpush3.bf16.msra.mxu0 %v3657_v39 }
  0x9d   : > { %3527 = vmatprep.subr.bf16.mxu0 %v3658_v43 }
  0x9e   : > { %1903 = vmatmul.mubr.bf16.gmra.mrb[60].mxu1 %v4176_v47  ;;  %2000 = vmatmul.mubr.bf16.gmra.mrb[60].mxu0 %v3918_v26 }
  0x9f   : > { %1910 = vmatprep.mubr.bf16.mxu1 %v3851_v52  ;;  %2007 = vmatprep.mubr.bf16.mxu0 %v4107_v62  ;;  %v4191_v52 = vpack.c.bf16 %v479_v54, %v478_v53 }
  0xa0   : > { %3528 = vmatpush3.bf16.msra.mxu0 %v3658_v43 }
  0xa1   : > { %3529 = vmatprep.subr.bf16.mxu0 %v3659_v49 }
  0xa4   : > { %3530 = vmatpush3.bf16.msra.mxu0 %v3659_v49 }
  0xa6   : > { %1911 = vmatmul.mubr.bf16.gmra.mrb[64].mxu1 %v4185_v51  ;;  %2008 = vmatmul.mubr.bf16.gmra.mrb[64].mxu0 %v3954_v45 }
  0xa7   : > { %1918 = vmatprep.mubr.bf16.mxu1 %v3882_v6  ;;  %2015 = vmatprep.mubr.bf16.mxu0 %v4119_v11  ;;  %v4199_v6 = vpack.c.bf16 %v547_v1, %v546_v58 }
  0xae   : > { %1919 = vmatmul.mubr.bf16.gmra.mrb[68].mxu1 %v4191_v52  ;;  %2016 = vmatmul.mubr.bf16.gmra.mrb[68].mxu0 %v3996_v0 }
  0xaf   : > { %1926 = vmatprep.mubr.bf16.mxu1 %v3912_v23  ;;  %2023 = vmatprep.mubr.bf16.mxu0 %v4131_v21  ;;  %v483_v23 = vld [vmem:[#allocation2 + $0x172] sm:$0xff] }
  0xb0   : > { %v4205_v9 = vpack.c.bf16 %v483_v23, %v482_v3 }
  0xb6   : > { %1927 = vmatmul.mubr.bf16.gmra.mrb[72].mxu1 %v4197_v2  ;;  %2024 = vmatmul.mubr.bf16.gmra.mrb[72].mxu0 %v4032_v17 }
  0xb7   : > { %1934 = vmatprep.mubr.bf16.mxu1 %v4199_v6  ;;  %2031 = vmatprep.mubr.bf16.mxu0 %v4139_v25 }
  0xbe   : > { %1935 = vmatmul.mubr.bf16.gmra.mrb[76].mxu1 %v4205_v9  ;;  %2032 = vmatmul.mubr.bf16.gmra.mrb[76].mxu0 %v4067_v34 }
  0xbf   : > { %2039 = vmatprep.mubr.bf16.mxu0 %v4152_v35  ;;  %2136 = vmatprep.mubr.bf16.mxu1 %v3858_v56  ;;  %v602_v56 = vld [vmem:[#allocation2 + $0x121] sm:$0xff] }
  0xc6   : > { %2040 = vmatmul.mubr.bf16.gmra.mrb[80].mxu0 %v4091_v48  ;;  %2137 = vmatmul.mubr.bf16.vlgmr.msra.gmra.mrb[80].mxu1 %v3880_v5  ;;  %v603_v5 = vld [vmem:[#allocation2 + $0x129] sm:$0xff] }
  0xc7   : > { %2047 = vmatprep.mubr.bf16.mxu0 %v4164_v38  ;;  %2144 = vmatprep.mubr.bf16.mxu1 %v3887_v8  ;;  %v4223_v7 = vpack.c.bf16 %v603_v5, %v602_v56  ;;  %v604_v8 = vld [vmem:[#allocation2 + $0x139] sm:$0xff] }
  0xce   : > { %2048 = vmatmul.mubr.bf16.gmra.mrb[84].mxu0 %v4111_v63  ;;  %2145 = vmatmul.mubr.bf16.gmra.mrb[84].mxu1 %v3910_v22  ;;  %v605_v22 = vld [vmem:[#allocation2 + $0x141] sm:$0xff] }
  0xcf   : > { %2055 = vmatprep.mubr.bf16.mxu0 %v4176_v47  ;;  %2152 = vmatprep.mubr.bf16.mxu1 %v3918_v26  ;;  %v4229_v26 = vpack.c.bf16 %v605_v22, %v604_v8 }
  0xd6   : > { %2056 = vmatmul.mubr.bf16.gmra.mrb[88].mxu0 %v4123_v4  ;;  %2153 = vmatmul.mubr.bf16.gmra.mrb[88].mxu1 %v3947_v42  ;;  %v606_v42 = vld [vmem:[#allocation2 + $0x151] sm:$0xff] }
  0xd7   : > { %2063 = vmatprep.mubr.bf16.mxu0 %v4185_v51  ;;  %2160 = vmatprep.mubr.bf16.mxu1 %v3954_v45  ;;  %v607_v45 = vld [vmem:[#allocation2 + $0x159] sm:$0xff] }
  0xd8   : > { %v4235_v12 = vpack.c.bf16 %v607_v45, %v606_v42 }
  0xde   : > { %2064 = vmatmul.mubr.bf16.gmra.mrb[92].mxu0 %v4223_v7  ;;  %2161 = vmatmul.mubr.bf16.gmra.mrb[92].mxu1 %v3985_v60  ;;  %v608_v60 = vld [vmem:[#allocation2 + $0x169] sm:$0xff] }
  0xdf   : > { %2071 = vmatprep.mubr.bf16.mxu0 %v4191_v52  ;;  %2168 = vmatprep.mubr.bf16.mxu1 %v3996_v0  ;;  %v609_v0 = vld [vmem:[#allocation2 + $0x171] sm:$0xff] }
  0xe0   : > { %v4241_v16 = vpack.c.bf16 %v609_v0, %v608_v60 }
  0xe6   : > { %2072 = vmatmul.mubr.bf16.gmra.mrb[96].mxu0 %v4229_v26  ;;  %2169 = vmatmul.mubr.bf16.gmra.mrb[96].mxu1 %v4023_v14  ;;  %v675_v14 = vld [vmem:[#allocation2 + $0x18a] sm:$0xff] }
  0xe7   : > { %2079 = vmatprep.mubr.bf16.mxu0 %v4197_v2  ;;  %2176 = vmatprep.mubr.bf16.mxu1 %v4032_v17  ;;  %v4243_v19 = vpack.c.bf16 %v675_v14, %v674_v13  ;;  %v837_v17 = vld [vmem:[#allocation2 + $0x32] sm:$0xff] }
  0xee   : > { %2080 = vmatmul.mubr.bf16.gmra.mrb[100].mxu0 %v4235_v12  ;;  %2177 = vmatmul.mubr.bf16.gmra.mrb[100].mxu1 %v4060_v31  ;;  %v838_v31 = vld [vmem:[#allocation2 + $0x3a] sm:$0xff] }
  0xef   : > { %2087 = vmatprep.mubr.bf16.mxu0 %v4205_v9  ;;  %2184 = vmatprep.mubr.bf16.mxu1 %v4067_v34  ;;  %v869_v29 = vpack.c.bf16 %v838_v31, %v837_v17 }
  0xf6   : > { %2088 = vmatmul.mubr.bf16.gmra.mrb[104].mxu0 %v4241_v16  ;;  %2185 = vmatmul.mubr.bf16.gmra.mrb[104].mxu1 %v4082_v44 }
  0xf7   : > { %2095 = vmatprep.mubr.bf16.mxu0 %v4243_v19  ;;  %2192 = vmatprep.mubr.bf16.mxu1 %v4091_v48 }
  0xf9   : > { %v3059_v20 = vpop.f32.mrb[0].mxu0  ;;  %v3131_v34 = vpop.f32.mrb[0].mxu1 }
  0xfa   : > { %v3060_v27 = vpop.f32.mrb[1].mxu0  ;;  %v3132_v28 = vpop.f32.mrb[1].mxu1 }
  0xfb   : > { %v4249_v30 = vadd.f32 %v3060_v27, %v3059_v20  ;;  %v4251_v61 = vadd.f32 %v3132_v28, %v3131_v34  ;;  %v3062_v37 = vpop.f32.mrb[2].mxu0  ;;  %v3134_v15 = vpop.f32.mrb[2].mxu1 }
  0xfc   : > { %v3063_v36 = vpop.f32.mrb[3].mxu0  ;;  %v3135_v39 = vpop.f32.mrb[3].mxu1 }
  0xfd   : > { %v4253_v44 = vadd.f32 %v3063_v36, %v3062_v37  ;;  %v4255_v40 = vadd.f32 %v3135_v39, %v3134_v15  ;;  %v732_v37 = vld [vmem:[#allocation2 + $0x140] sm:$0xff] }
  0xfe   : > { %2096 = vmatmul.mubr.bf16.gmra.mrb[108].mxu0 %v4133_v24  ;;  %2193 = vmatmul.mubr.bf16.gmra.mrb[108].mxu1 %v4105_v59 }
  0xff   : > { %2200 = vmatprep.mubr.bf16.mxu1 %v4111_v63  ;;  %3531 = vmatprep.mubr.bf16.mxu0 %v869_v29 }
 0x101   : > { %v3065_v48 = vpop.f32.mrb[4].mxu0  ;;  %v3137_v41 = vpop.f32.mrb[4].mxu1 }
 0x102   : > { %v3066_v43 = vpop.f32.mrb[5].mxu0  ;;  %v3138_v49 = vpop.f32.mrb[5].mxu1 }
 0x103   : > { %v4260_v33 = vadd.f32 %v3066_v43, %v3065_v48  ;;  %v4262_v50 = vadd.f32 %v3138_v49, %v3137_v41  ;;  %v3068_v53 = vpop.f32.mrb[6].mxu0  ;;  %v3140_v54 = vpop.f32.mrb[6].mxu1 }
 0x104   : > { %v3069_v55 = vpop.f32.mrb[7].mxu0  ;;  %v3141_v57 = vpop.f32.mrb[7].mxu1 }
 0x105   : > { %v4264_v58 = vadd.f32 %v3069_v55, %v3068_v53  ;;  %v4266_v1 = vadd.f32 %v3141_v57, %v3140_v54 }
 0x106   : > { %2201 = vmatmul.mubr.bf16.gmra.mrb[112].mxu1 %v4117_v10  ;;  %3532 = vmatmul.mubr.bf16.vlgmr.msra.gmra.mrb[112].mxu0 %v4062_v32  ;;  %v729_v32 = vld [vmem:[#allocation2 + $0x120] sm:$0xff] }
 0x107   : > { %2208 = vmatprep.mubr.bf16.mxu1 %v4123_v4  ;;  %3535 = vmatprep.mubr.bf16.mxu0 %v4084_v46  ;;  %v730_v46 = vld [vmem:[#allocation2 + $0x128] sm:$0xff] }
 0x108   : > { %v751_v17 = vpack.c.bf16 %v730_v46, %v729_v32 }
 0x109   : > { %v3071_v59 = vpop.f32.mrb[8].mxu0  ;;  %v3143_v63 = vpop.f32.mrb[8].mxu1 }
 0x10a   : > { %v3072_v3 = vpop.f32.mrb[9].mxu0  ;;  %v3144_v23 = vpop.f32.mrb[9].mxu1 }
 0x10b   : > { %v4272_v56 = vadd.f32 %v3072_v3, %v3071_v59  ;;  %v4274_v5 = vadd.f32 %v3144_v23, %v3143_v63  ;;  %v3074_v8 = vpop.f32.mrb[10].mxu0  ;;  %v3146_v22 = vpop.f32.mrb[10].mxu1  ;;  %v733_v59 = vld [vmem:[#allocation2 + $0x150] sm:$0xff]  ;;  %v734_v63 = vld [vmem:[#allocation2 + $0x158] sm:$0xff] }
 0x10c   : > { %v3075_v42 = vpop.f32.mrb[11].mxu0  ;;  %v3147_v45 = vpop.f32.mrb[11].mxu1 }
 0x10d   : > { %v4276_v60 = vadd.f32 %v3075_v42, %v3074_v8  ;;  %v4278_v10 = vadd.f32 %v3147_v45, %v3146_v22  ;;  %v753_v22 = vpack.c.bf16 %v734_v63, %v733_v59 }
 0x10e   : > { %2209 = vmatmul.mubr.bf16.gmra.mrb[116].mxu1 %v4129_v18  ;;  %3536 = vmatmul.mubr.bf16.gmra.mrb[116].mxu0 %v4107_v62 }
 0x10f   : > { %2216 = vmatprep.mubr.bf16.mxu1 %v4223_v7  ;;  %3539 = vmatprep.mubr.bf16.mxu0 %v4119_v11  ;;  %v731_v11 = vld [vmem:[#allocation2 + $0x138] sm:$0xff] }
 0x110   : > { %v752_v48 = vpack.c.bf16 %v732_v37, %v731_v11 }
 0x111   : > { %v3077_v4 = vpop.f32.mrb[12].mxu0  ;;  %v3149_v0 = vpop.f32.mrb[12].mxu1 }
 0x112   : > { %v3078_v13 = vpop.f32.mrb[13].mxu0  ;;  %v3150_v14 = vpop.f32.mrb[13].mxu1 }
 0x113   : > { %v4284_v31 = vadd.f32 %v3078_v13, %v3077_v4  ;;  %v4286_v20 = vadd.f32 %v3150_v14, %v3149_v0  ;;  %v3080_v34 = vpop.f32.mrb[14].mxu0  ;;  %v3152_v27 = vpop.f32.mrb[14].mxu1  ;;  %v735_v13 = vld [vmem:[#allocation2 + $0x168] sm:$0xff]  ;;  %v736_v14 = vld [vmem:[#allocation2 + $0x170] sm:$0xff] }
 0x114   : > { %v3081_v18 = vpop.f32.mrb[15].mxu0  ;;  %v3153_v28 = vpop.f32.mrb[15].mxu1 }
 0x115   : > { %v4288_v62 = vadd.f32 %v3081_v18, %v3080_v34  ;;  %v4290_v7 = vadd.f32 %v3153_v28, %v3152_v27  ;;  %v754_v18 = vpack.c.bf16 %v736_v14, %v735_v13 }
 0x116   : > { %2217 = vmatmul.mubr.bf16.gmra.mrb[120].mxu1 %v751_v17  ;;  %3540 = vmatmul.mubr.bf16.gmra.mrb[120].mxu0 %v4131_v21 }
 0x117   : > { %2224 = vmatprep.mubr.bf16.mxu1 %v4229_v26  ;;  %3543 = vmatprep.mubr.bf16.mxu0 %v4139_v25 }
 0x119   : > { %v3083_v15 = vpop.f32.mrb[16].mxu0  ;;  %v3171_v29 = vpop.f32.mrb[16].mxu1 }
 0x11a   : > { %v3084_v36 = vpop.f32.mrb[17].mxu0  ;;  %v3172_v39 = vpop.f32.mrb[17].mxu1 }
 0x11b   : > { %v4295_v41 = vadd.f32 %v3084_v36, %v3083_v15  ;;  %v3173_v43 = vadd.f32 %v3172_v39, %v3171_v29  ;;  %v3086_v49 = vpop.f32.mrb[18].mxu0  ;;  %v3174_v53 = vpop.f32.mrb[18].mxu1  ;;  %v803_v39 = vld [vmem:[#allocation2 + $0x199] sm:$0xff] }
 0x11c   : > { %v3087_v54 = vpop.f32.mrb[19].mxu0  ;;  %v3175_v55 = vpop.f32.mrb[19].mxu1 }
 0x11d   : > { %v4298_v21 = vadd.f32 %v3173_v43, %v4249_v30  ;;  %v4300_v26 = vadd.f32 %v3087_v54, %v3086_v49  ;;  %v3176_v25 = vadd.f32 %v3175_v55, %v3174_v53 }
 0x11e   : > { %2225 = vmatmul.mubr.bf16.gmra.mrb[124].mxu1 %v752_v48  ;;  %3544 = vmatmul.mubr.bf16.gmra.mrb[124].mxu0 %v4152_v35  ;;  %v804_v48 = vld [vmem:[#allocation2 + $0x1a1] sm:$0xff] }
 0x11f   : > { %v4304_v57 = vadd.f32 %v3176_v25, %v4253_v44  ;;  %2232 = vmatprep.mubr.bf16.mxu1 %v4235_v12  ;;  %3547 = vmatprep.mubr.bf16.mxu0 %v4164_v38  ;;  %v820_v63 = vpack.c.bf16 %v804_v48, %v803_v39 }
 0x121   : > { %v3089_v3 = vpop.f32.mrb[20].mxu0  ;;  %v3177_v23 = vpop.f32.mrb[20].mxu1 }
 0x122   : > { %v3090_v8 = vpop.f32.mrb[21].mxu0  ;;  %v3178_v30 = vpop.f32.mrb[21].mxu1 }
 0x123   : > { %v4308_v42 = vadd.f32 %v3090_v8, %v3089_v3  ;;  %v3179_v45 = vadd.f32 %v3178_v30, %v3177_v23  ;;  %v3092_v32 = vpop.f32.mrb[22].mxu0  ;;  %v3180_v46 = vpop.f32.mrb[22].mxu1  ;;  %v739_v8 = vld [vmem:[#allocation2 + $0x198] sm:$0xff] }
 0x124   : > { %v3093_v35 = vpop.f32.mrb[23].mxu0  ;;  %v3181_v4 = vpop.f32.mrb[23].mxu1  ;;  %v867_v30 = vld [vmem:[#allocation2 + $0x19a] sm:$0xff] }
 0x125   : > { %v4311_v44 = vadd.f32 %v3179_v45, %v4260_v33  ;;  %v4313_v12 = vadd.f32 %v3093_v35, %v3092_v32  ;;  %v3182_v38 = vadd.f32 %v3181_v4, %v3180_v46  ;;  %v3660_v35 = vld [vmem:[#allocation2 + $0x8] sm:$0xff] }
 0x126   : > { %2233 = vmatmul.mubr.bf16.gmra.mrb[128].mxu1 %v753_v22  ;;  %3548 = vmatmul.mubr.bf16.gmra.mrb[128].mxu0 %v4176_v47  ;;  %v868_v22 = vld [vmem:[#allocation2 + $0x1a2] sm:$0xff]  ;;  %v756_v4 = vpack.c.bf16 %v3660_v35, %v739_v8 }
 0x127   : > { %v4317_v0 = vadd.f32 %v3182_v38, %v4264_v58  ;;  %2240 = vmatprep.mubr.bf16.mxu1 %v4241_v16  ;;  %3551 = vmatprep.mubr.bf16.mxu0 %v4185_v51  ;;  %v884_v38 = vpack.c.bf16 %v868_v22, %v867_v30 }
 0x129   : > { %v3095_v17 = vpop.f32.mrb[24].mxu0  ;;  %v3183_v34 = vpop.f32.mrb[24].mxu1 }
 0x12a   : > { %v3096_v27 = vpop.f32.mrb[25].mxu0  ;;  %v3184_v33 = vpop.f32.mrb[25].mxu1 }
 0x12b   : > { %v4321_v28 = vadd.f32 %v3096_v27, %v3095_v17  ;;  %v3185_v11 = vadd.f32 %v3184_v33, %v3183_v34  ;;  %v3098_v37 = vpop.f32.mrb[26].mxu0  ;;  %v3186_v15 = vpop.f32.mrb[26].mxu1 }
 0x12c   : > { %v3099_v47 = vpop.f32.mrb[27].mxu0  ;;  %v3187_v29 = vpop.f32.mrb[27].mxu1 }
 0x12d   : > { %v4324_v58 = vadd.f32 %v3185_v11, %v4272_v56  ;;  %v4326_v16 = vadd.f32 %v3099_v47, %v3098_v37  ;;  %v3188_v51 = vadd.f32 %v3187_v29, %v3186_v15 }
 0x12e   : > { %2241 = vmatmul.mubr.bf16.gmra.mrb[132].mxu1 %v754_v18  ;;  %3552 = vmatmul.mubr.bf16.gmra.mrb[132].mxu0 %v4191_v52 }
 0x12f   : > { %v4330_v36 = vadd.f32 %v3188_v51, %v4276_v60  ;;  %2248 = vmatprep.mubr.bf16.mxu1 %v4133_v24  ;;  %3555 = vmatprep.mubr.bf16.mxu0 %v4197_v2 }
 0x131   : > { %v3101_v43 = vpop.f32.mrb[28].mxu0  ;;  %v3189_v49 = vpop.f32.mrb[28].mxu1 }
 0x132   : > { %v3102_v53 = vpop.f32.mrb[29].mxu0  ;;  %v3190_v56 = vpop.f32.mrb[29].mxu1 }
 0x133   : > { %v4334_v54 = vadd.f32 %v3102_v53, %v3101_v43  ;;  %v3191_v55 = vadd.f32 %v3190_v56, %v3189_v49  ;;  %v3104_v25 = vpop.f32.mrb[30].mxu0  ;;  %v3192_v59 = vpop.f32.mrb[30].mxu1 }
 0x134   : > { %v3105_v52 = vpop.f32.mrb[31].mxu0  ;;  %v3193_v3 = vpop.f32.mrb[31].mxu1 }
 0x135   : > { %v4337_v60 = vadd.f32 %v3191_v55, %v4284_v31  ;;  %v4339_v24 = vadd.f32 %v3105_v52, %v3104_v25  ;;  %v3194_v2 = vadd.f32 %v3193_v3, %v3192_v59 }
 0x136   : > { %2249 = vmatmul.mubr.bf16.gmra.mrb[136].mxu1 %v4199_v6  ;;  %3556 = vmatmul.mubr.bf16.gmra.mrb[136].mxu0 %v4205_v9 }
 0x137   : > { %v4344_v23 = vadd.f32 %v3194_v2, %v4288_v62  ;;  %2256 = vmatprep.mubr.bf16.mxu1 %v820_v63  ;;  %3559 = vmatprep.mubr.bf16.mxu0 %v4243_v19 }
 0x139   : > { %v3107_v45 = vpop.f32.mrb[32].mxu0  ;;  %v3195_v32 = vpop.f32.mrb[32].mxu1 }
 0x13a   : > { %v3108_v31 = vpop.f32.mrb[33].mxu0  ;;  %v3196_v46 = vpop.f32.mrb[33].mxu1 }
 0x13b   : > { %v4347_v13 = vadd.f32 %v3108_v31, %v3107_v45  ;;  %v3197_v6 = vadd.f32 %v3196_v46, %v3195_v32  ;;  %v3110_v9 = vpop.f32.mrb[34].mxu0  ;;  %v3198_v14 = vpop.f32.mrb[34].mxu1 }
 0x13c   : > { %v3111_v62 = vpop.f32.mrb[35].mxu0  ;;  %v3199_v17 = vpop.f32.mrb[35].mxu1 }
 0x13d   : > { %v4350_v34 = vadd.f32 %v3197_v6, %v4295_v41  ;;  %v3112_v19 = vadd.f32 %v3111_v62, %v3110_v9  ;;  %v3200_v27 = vadd.f32 %v3199_v17, %v3198_v14 }
 0x13e   : > { %2257 = vmatmul.mubr.bf16.gmra.mrb[140].mxu1 %v756_v4  ;;  %3560 = vmatmul.mubr.bf16.gmra.mrb[140].mxu0 %v884_v38 }
 0x13f   : > { %v4353_v33 = vadd.f32 %v3200_v27, %v4300_v26 }
 0x141   : > { %v3113_v18 = vpop.f32.mrb[36].mxu0  ;;  %v3201_v11 = vpop.f32.mrb[36].mxu1 }
 0x142   : > { %v3114_v37 = vpop.f32.mrb[37].mxu0  ;;  %v3202_v15 = vpop.f32.mrb[37].mxu1 }
 0x143   : > { %v4355_v47 = vadd.f32 %v3114_v37, %v3113_v18  ;;  %v3203_v29 = vadd.f32 %v3202_v15, %v3201_v11  ;;  %v3116_v51 = vpop.f32.mrb[38].mxu0  ;;  %v3204_v39 = vpop.f32.mrb[38].mxu1 }
 0x144   : > { %v3117_v48 = vpop.f32.mrb[39].mxu0  ;;  %v3205_v43 = vpop.f32.mrb[39].mxu1 }
 0x145   : > { %v4358_v41 = vadd.f32 %v3203_v29, %v4308_v42  ;;  %v3118_v49 = vadd.f32 %v3117_v48, %v3116_v51  ;;  %v3206_v53 = vadd.f32 %v3205_v43, %v3204_v39 }
 0x147   : > { %v4361_v56 = vadd.f32 %v3206_v53, %v4313_v12 }
 0x149   : > { %v3119_v26 = vpop.f32.mrb[40].mxu0  ;;  %v3207_v55 = vpop.f32.mrb[40].mxu1 }
 0x14a   : > { %v3120_v25 = vpop.f32.mrb[41].mxu0  ;;  %v3208_v59 = vpop.f32.mrb[41].mxu1 }
 0x14b   : > { %v4363_v63 = vadd.f32 %v3120_v25, %v3119_v26  ;;  %v3209_v52 = vadd.f32 %v3208_v59, %v3207_v55  ;;  %v3122_v3 = vpop.f32.mrb[42].mxu0  ;;  %v3210_v2 = vpop.f32.mrb[42].mxu1 }
 0x14c   : > { %v3123_v8 = vpop.f32.mrb[43].mxu0  ;;  %v3211_v30 = vpop.f32.mrb[43].mxu1 }
 0x14d   : > { %v4366_v22 = vadd.f32 %v3209_v52, %v4321_v28  ;;  %v4368_v42 = vadd.f32 %v3123_v8, %v3122_v3  ;;  %v3212_v45 = vadd.f32 %v3211_v30, %v3210_v2 }
 0x14f   : > { %v4371_v12 = vadd.f32 %v3212_v45, %v4326_v16 }
 0x151   : > { %v3125_v32 = vpop.f32.mrb[44].mxu0  ;;  %v3213_v31 = vpop.f32.mrb[44].mxu1 }
 0x152   : > { %v3126_v46 = vpop.f32.mrb[45].mxu0  ;;  %v3214_v35 = vpop.f32.mrb[45].mxu1 }
 0x153   : > { %v4373_v4 = vadd.f32 %v3126_v46, %v3125_v32  ;;  %v3215_v38 = vadd.f32 %v3214_v35, %v3213_v31  ;;  %v3128_v6 = vpop.f32.mrb[46].mxu0  ;;  %v3216_v9 = vpop.f32.mrb[46].mxu1 }
 0x154   : > { %v3129_v14 = vpop.f32.mrb[47].mxu0  ;;  %v3217_v62 = vpop.f32.mrb[47].mxu1 }
 0x155   : > { %v4376_v28 = vadd.f32 %v3215_v38, %v4334_v54  ;;  %v4378_v17 = vadd.f32 %v3129_v14, %v3128_v6  ;;  %v3218_v27 = vadd.f32 %v3217_v62, %v3216_v9 }
 0x157   : > { %v4381_v16 = vadd.f32 %v3218_v27, %v4339_v24 }
 0x159   : > { %v3219_v18 = vpop.f32.mrb[48].mxu1  ;;  %v3283_v11 = vpop.f32.mrb[48].mxu0 }
 0x15a   : > { %v3220_v37 = vpop.f32.mrb[49].mxu1  ;;  %v3284_v15 = vpop.f32.mrb[49].mxu0 }
 0x15b   : > { %v3221_v29 = vadd.f32 %v3220_v37, %v3219_v18  ;;  %v3285_v51 = vadd.f32 %v3284_v15, %v3283_v11  ;;  %v3222_v39 = vpop.f32.mrb[50].mxu1  ;;  %v3286_v48 = vpop.f32.mrb[50].mxu0 }
 0x15c   : > { %v3223_v43 = vpop.f32.mrb[51].mxu1  ;;  %v3287_v53 = vpop.f32.mrb[51].mxu0 }
 0x15d   : > { %v4384_v26 = vadd.f32 %v3221_v29, %v4347_v13  ;;  %v4387_v54 = vadd.f32 %v3285_v51, %v4298_v21  ;;  %v3224_v55 = vadd.f32 %v3223_v43, %v3222_v39  ;;  %v3288_v25 = vadd.f32 %v3287_v53, %v3286_v48 }
 0x15f   : > { %v4389_v24 = vadd.f32 %v3224_v55, %v3112_v19  ;;  %v4392_v59 = vadd.f32 %v3288_v25, %v4304_v57 }
 0x161   : > { %v3225_v52 = vpop.f32.mrb[52].mxu1  ;;  %v3289_v3 = vpop.f32.mrb[52].mxu0 }
 0x162   : > { %v3226_v2 = vpop.f32.mrb[53].mxu1  ;;  %v3290_v8 = vpop.f32.mrb[53].mxu0 }
 0x163   : > { %v3227_v30 = vadd.f32 %v3226_v2, %v3225_v52  ;;  %v3291_v45 = vadd.f32 %v3290_v8, %v3289_v3  ;;  %v3228_v32 = vpop.f32.mrb[54].mxu1  ;;  %v3292_v31 = vpop.f32.mrb[54].mxu0 }
 0x164   : > { %v3229_v13 = vpop.f32.mrb[55].mxu1  ;;  %v3293_v46 = vpop.f32.mrb[55].mxu0 }
 0x165   : > { %v4395_v21 = vadd.f32 %v3227_v30, %v4355_v47  ;;  %v4398_v35 = vadd.f32 %v3291_v45, %v4311_v44  ;;  %v3230_v19 = vadd.f32 %v3229_v13, %v3228_v32  ;;  %v3294_v38 = vadd.f32 %v3293_v46, %v3292_v31 }
 0x167   : > { %v4400_v57 = vadd.f32 %v3230_v19, %v3118_v49  ;;  %v4403_v6 = vadd.f32 %v3294_v38, %v4317_v0 }
 0x169   : > { %v3231_v9 = vpop.f32.mrb[56].mxu1  ;;  %v3295_v14 = vpop.f32.mrb[56].mxu0 }
 0x16a   : > { %v3232_v62 = vpop.f32.mrb[57].mxu1  ;;  %v3296_v27 = vpop.f32.mrb[57].mxu0 }
 0x16b   : > { %v3233_v18 = vadd.f32 %v3232_v62, %v3231_v9  ;;  %v3297_v11 = vadd.f32 %v3296_v27, %v3295_v14  ;;  %v3234_v37 = vpop.f32.mrb[58].mxu1  ;;  %v3298_v15 = vpop.f32.mrb[58].mxu0 }
 0x16c   : > { %v3235_v47 = vpop.f32.mrb[59].mxu1  ;;  %v3299_v29 = vpop.f32.mrb[59].mxu0 }
 0x16d   : > { %v4406_v44 = vadd.f32 %v3233_v18, %v4363_v63  ;;  %v4409_v51 = vadd.f32 %v3297_v11, %v4324_v58  ;;  %v3236_v49 = vadd.f32 %v3235_v47, %v3234_v37  ;;  %v3300_v39 = vadd.f32 %v3299_v29, %v3298_v15 }
 0x16f   : > { %v4412_v0 = vadd.f32 %v3236_v49, %v4368_v42  ;;  %v4415_v48 = vadd.f32 %v3300_v39, %v4330_v36 }
 0x171   : > { %v3237_v43 = vpop.f32.mrb[60].mxu1  ;;  %v3301_v53 = vpop.f32.mrb[60].mxu0 }
 0x172   : > { %v3238_v55 = vpop.f32.mrb[61].mxu1  ;;  %v3302_v25 = vpop.f32.mrb[61].mxu0 }
 0x173   : > { %v3239_v52 = vadd.f32 %v3238_v55, %v3237_v43  ;;  %v3303_v3 = vadd.f32 %v3302_v25, %v3301_v53  ;;  %v3240_v2 = vpop.f32.mrb[62].mxu1  ;;  %v3304_v63 = vpop.f32.mrb[62].mxu0 }
 0x174   : > { %v3241_v8 = vpop.f32.mrb[63].mxu1  ;;  %v3305_v30 = vpop.f32.mrb[63].mxu0 }
 0x175   : > { %v4418_v58 = vadd.f32 %v3239_v52, %v4373_v4  ;;  %v4421_v45 = vadd.f32 %v3303_v3, %v4337_v60  ;;  %v3242_v42 = vadd.f32 %v3241_v8, %v3240_v2  ;;  %v3306_v32 = vadd.f32 %v3305_v30, %v3304_v63 }
 0x177   : > { %v4424_v36 = vadd.f32 %v3242_v42, %v4378_v17  ;;  %v4427_v31 = vadd.f32 %v3306_v32, %v4344_v23 }
 0x179   : > { %v3243_v13 = vpop.f32.mrb[64].mxu1  ;;  %v3307_v46 = vpop.f32.mrb[64].mxu0 }
 0x17a   : > { %v3244_v19 = vpop.f32.mrb[65].mxu1  ;;  %v3308_v38 = vpop.f32.mrb[65].mxu0 }
 0x17b   : > { %v3245_v9 = vadd.f32 %v3244_v19, %v3243_v13  ;;  %v3309_v14 = vadd.f32 %v3308_v38, %v3307_v46  ;;  %v3246_v62 = vpop.f32.mrb[66].mxu1  ;;  %v3310_v4 = vpop.f32.mrb[66].mxu0 }
 0x17c   : > { %v3247_v27 = vpop.f32.mrb[67].mxu1  ;;  %v3311_v18 = vpop.f32.mrb[67].mxu0 }
 0x17d   : > { %v4430_v60 = vadd.f32 %v3245_v9, %v4251_v61  ;;  %v4433_v11 = vadd.f32 %v3309_v14, %v4350_v34  ;;  %v3248_v17 = vadd.f32 %v3247_v27, %v3246_v62  ;;  %v3312_v37 = vadd.f32 %v3311_v18, %v3310_v4 }
 0x17f   : > { %v4436_v23 = vadd.f32 %v3248_v17, %v4255_v40  ;;  %v4439_v15 = vadd.f32 %v3312_v37, %v4353_v33 }
 0x181   : > { %v3249_v47 = vpop.f32.mrb[68].mxu1  ;;  %v3313_v29 = vpop.f32.mrb[68].mxu0 }
 0x182   : > { %v3250_v49 = vpop.f32.mrb[69].mxu1  ;;  %v3314_v39 = vpop.f32.mrb[69].mxu0 }
 0x183   : > { %v3251_v43 = vadd.f32 %v3250_v49, %v3249_v47  ;;  %v3315_v53 = vadd.f32 %v3314_v39, %v3313_v29  ;;  %v3252_v55 = vpop.f32.mrb[70].mxu1  ;;  %v3316_v61 = vpop.f32.mrb[70].mxu0 }
 0x184   : > { %v3253_v25 = vpop.f32.mrb[71].mxu1  ;;  %v3317_v52 = vpop.f32.mrb[71].mxu0 }
 0x185   : > { %v4442_v34 = vadd.f32 %v3251_v43, %v4262_v50  ;;  %v4445_v3 = vadd.f32 %v3315_v53, %v4358_v41  ;;  %v3254_v40 = vadd.f32 %v3253_v25, %v3252_v55  ;;  %v3318_v2 = vadd.f32 %v3317_v52, %v3316_v61 }
 0x187   : > { %v4448_v33 = vadd.f32 %v3254_v40, %v4266_v1  ;;  %v4451_v63 = vadd.f32 %v3318_v2, %v4361_v56 }
 0x189   : > { %v3255_v8 = vpop.f32.mrb[72].mxu1  ;;  %v3319_v30 = vpop.f32.mrb[72].mxu0 }
 0x18a   : > { %v3256_v42 = vpop.f32.mrb[73].mxu1  ;;  %v3320_v32 = vpop.f32.mrb[73].mxu0 }
 0x18b   : > { %v3257_v13 = vadd.f32 %v3256_v42, %v3255_v8  ;;  %v3321_v46 = vadd.f32 %v3320_v32, %v3319_v30  ;;  %v3258_v19 = vpop.f32.mrb[74].mxu1  ;;  %v3322_v50 = vpop.f32.mrb[74].mxu0 }
 0x18c   : > { %v3259_v38 = vpop.f32.mrb[75].mxu1  ;;  %v3323_v9 = vpop.f32.mrb[75].mxu0 }
 0x18d   : > { %v4454_v41 = vadd.f32 %v3257_v13, %v4274_v5  ;;  %v4457_v14 = vadd.f32 %v3321_v46, %v4366_v22  ;;  %v3260_v1 = vadd.f32 %v3259_v38, %v3258_v19  ;;  %v3324_v62 = vadd.f32 %v3323_v9, %v3322_v50 }
 0x18f   : > { %v4460_v56 = vadd.f32 %v3260_v1, %v4278_v10  ;;  %v4463_v4 = vadd.f32 %v3324_v62, %v4371_v12 }
 0x191   : > { %v3261_v27 = vpop.f32.mrb[76].mxu1  ;;  %v3325_v18 = vpop.f32.mrb[76].mxu0 }
 0x192   : > { %v3262_v17 = vpop.f32.mrb[77].mxu1  ;;  %v3326_v37 = vpop.f32.mrb[77].mxu0 }
 0x193   : > { %v3263_v47 = vadd.f32 %v3262_v17, %v3261_v27  ;;  %v3327_v29 = vadd.f32 %v3326_v37, %v3325_v18  ;;  %v3264_v49 = vpop.f32.mrb[78].mxu1  ;;  %v3328_v5 = vpop.f32.mrb[78].mxu0 }
 0x194   : > { %v3265_v39 = vpop.f32.mrb[79].mxu1  ;;  %v3329_v43 = vpop.f32.mrb[79].mxu0 }
 0x195   : > { %v4466_v22 = vadd.f32 %v3263_v47, %v4286_v20  ;;  %v4469_v53 = vadd.f32 %v3327_v29, %v4376_v28  ;;  %v3266_v10 = vadd.f32 %v3265_v39, %v3264_v49  ;;  %v3330_v55 = vadd.f32 %v3329_v43, %v3328_v5 }
 0x197   : > { %v4472_v12 = vadd.f32 %v3266_v10, %v4290_v7  ;;  %v4475_v61 = vadd.f32 %v3330_v55, %v4381_v16 }
 0x199   : > { %v3331_v25 = vpop.f32.mrb[80].mxu0  ;;  %v3395_v52 = vpop.f32.mrb[80].mxu1 }
 0x19a   : > { %v3332_v40 = vpop.f32.mrb[81].mxu0  ;;  %v3396_v2 = vpop.f32.mrb[81].mxu1 }
 0x19b   : > { %v3333_v8 = vadd.f32 %v3332_v40, %v3331_v25  ;;  %v3397_v30 = vadd.f32 %v3396_v2, %v3395_v52  ;;  %v3334_v42 = vpop.f32.mrb[82].mxu0  ;;  %v3398_v20 = vpop.f32.mrb[82].mxu1 }
 0x19c   : > { %v3335_v32 = vpop.f32.mrb[83].mxu0  ;;  %v3399_v13 = vpop.f32.mrb[83].mxu1 }
 0x19d   : > { %v4478_v28 = vadd.f32 %v3333_v8, %v4384_v26  ;;  %v3336_v46 = vadd.f32 %v3335_v32, %v3334_v42  ;;  %v3400_v19 = vadd.f32 %v3399_v13, %v3398_v20  ;;  %v4481_v7 = vadd.f32 %v3397_v30, %v4387_v54 }
 0x19f   : > { %v4484_v16 = vadd.f32 %v3336_v46, %v4389_v24  ;;  %v4487_v50 = vadd.f32 %v3400_v19, %v4392_v59 }
 0x1a1   : > { %v3337_v38 = vpop.f32.mrb[84].mxu0  ;;  %v3401_v9 = vpop.f32.mrb[84].mxu1 }
 0x1a2   : > { %v3338_v1 = vpop.f32.mrb[85].mxu0  ;;  %v3402_v62 = vpop.f32.mrb[85].mxu1 }
 0x1a3   : > { %v3339_v27 = vadd.f32 %v3338_v1, %v3337_v38  ;;  %v3403_v18 = vadd.f32 %v3402_v62, %v3401_v9  ;;  %v3340_v17 = vpop.f32.mrb[86].mxu0  ;;  %v3404_v26 = vpop.f32.mrb[86].mxu1 }
 0x1a4   : > { %v3341_v37 = vpop.f32.mrb[87].mxu0  ;;  %v3405_v47 = vpop.f32.mrb[87].mxu1 }
 0x1a5   : > { %v4490_v29 = vadd.f32 %v3339_v27, %v4395_v21  ;;  %v3342_v54 = vadd.f32 %v3341_v37, %v3340_v17  ;;  %v3406_v49 = vadd.f32 %v3405_v47, %v3404_v26  ;;  %v4493_v24 = vadd.f32 %v3403_v18, %v4398_v35 }
 0x1a7   : > { %v4496_v59 = vadd.f32 %v3342_v54, %v4400_v57  ;;  %v4499_v5 = vadd.f32 %v3406_v49, %v4403_v6 }
 0x1a9   : > { %v3343_v39 = vpop.f32.mrb[88].mxu0  ;;  %v3407_v43 = vpop.f32.mrb[88].mxu1 }
 0x1aa   : > { %v3344_v10 = vpop.f32.mrb[89].mxu0  ;;  %v3408_v55 = vpop.f32.mrb[89].mxu1 }
 0x1ab   : > { %v3345_v25 = vadd.f32 %v3344_v10, %v3343_v39  ;;  %v3409_v52 = vadd.f32 %v3408_v55, %v3407_v43  ;;  %v3346_v40 = vpop.f32.mrb[90].mxu0  ;;  %v3410_v21 = vpop.f32.mrb[90].mxu1 }
 0x1ac   : > { %v3347_v2 = vpop.f32.mrb[91].mxu0  ;;  %v3411_v8 = vpop.f32.mrb[91].mxu1 }
 0x1ad   : > { %v4502_v30 = vadd.f32 %v3345_v25, %v4406_v44  ;;  %v3348_v35 = vadd.f32 %v3347_v2, %v3346_v40  ;;  %v3412_v42 = vadd.f32 %v3411_v8, %v3410_v21  ;;  %v4505_v57 = vadd.f32 %v3409_v52, %v4409_v51 }
 0x1af   : > { %v4508_v6 = vadd.f32 %v3348_v35, %v4412_v0  ;;  %v4511_v20 = vadd.f32 %v3412_v42, %v4415_v48 }
 0x1b1   : > { %v3349_v32 = vpop.f32.mrb[92].mxu0  ;;  %v3413_v13 = vpop.f32.mrb[92].mxu1 }
 0x1b2   : > { %v3350_v46 = vpop.f32.mrb[93].mxu0  ;;  %v3414_v19 = vpop.f32.mrb[93].mxu1 }
 0x1b3   : > { %v3351_v38 = vadd.f32 %v3350_v46, %v3349_v32  ;;  %v3415_v9 = vadd.f32 %v3414_v19, %v3413_v13  ;;  %v3352_v1 = vpop.f32.mrb[94].mxu0  ;;  %v3416_v44 = vpop.f32.mrb[94].mxu1 }
 0x1b4   : > { %v3353_v62 = vpop.f32.mrb[95].mxu0  ;;  %v3417_v27 = vpop.f32.mrb[95].mxu1 }
 0x1b5   : > { %v4514_v18 = vadd.f32 %v3351_v38, %v4418_v58  ;;  %v3354_v51 = vadd.f32 %v3353_v62, %v3352_v1  ;;  %v3418_v17 = vadd.f32 %v3417_v27, %v3416_v44  ;;  %v4517_v0 = vadd.f32 %v3415_v9, %v4421_v45 }
 0x1b7   : > { %v4520_v48 = vadd.f32 %v3354_v51, %v4424_v36  ;;  %v4523_v26 = vadd.f32 %v3418_v17, %v4427_v31 }
 0x1b9   : > { %v3355_v37 = vpop.f32.mrb[96].mxu0  ;;  %v3419_v47 = vpop.f32.mrb[96].mxu1 }
 0x1ba   : > { %v3356_v54 = vpop.f32.mrb[97].mxu0  ;;  %v3420_v49 = vpop.f32.mrb[97].mxu1 }
 0x1bb   : > { %v3357_v39 = vadd.f32 %v3356_v54, %v3355_v37  ;;  %v3421_v43 = vadd.f32 %v3420_v49, %v3419_v47  ;;  %v3358_v10 = vpop.f32.mrb[98].mxu0  ;;  %v3422_v58 = vpop.f32.mrb[98].mxu1 }
 0x1bc   : > { %v3359_v55 = vpop.f32.mrb[99].mxu0  ;;  %v3423_v25 = vpop.f32.mrb[99].mxu1 }
 0x1bd   : > { %v4526_v52 = vadd.f32 %v3357_v39, %v4430_v60  ;;  %v3360_v45 = vadd.f32 %v3359_v55, %v3358_v10  ;;  %v3424_v40 = vadd.f32 %v3423_v25, %v3422_v58  ;;  %v4529_v36 = vadd.f32 %v3421_v43, %v4433_v11 }
 0x1bf   : > { %v4532_v31 = vadd.f32 %v3360_v45, %v4436_v23  ;;  %v4535_v21 = vadd.f32 %v3424_v40, %v4439_v15 }
 0x1c1   : > { %v3361_v2 = vpop.f32.mrb[100].mxu0  ;;  %v3425_v8 = vpop.f32.mrb[100].mxu1 }
 0x1c2   : > { %v3362_v35 = vpop.f32.mrb[101].mxu0  ;;  %v3426_v42 = vpop.f32.mrb[101].mxu1 }
 0x1c3   : > { %v3363_v32 = vadd.f32 %v3362_v35, %v3361_v2  ;;  %v3427_v13 = vadd.f32 %v3426_v42, %v3425_v8  ;;  %v3364_v46 = vpop.f32.mrb[102].mxu0  ;;  %v3428_v60 = vpop.f32.mrb[102].mxu1 }
 0x1c4   : > { %v3365_v19 = vpop.f32.mrb[103].mxu0  ;;  %v3429_v38 = vpop.f32.mrb[103].mxu1 }
 0x1c5   : > { %v4538_v9 = vadd.f32 %v3363_v32, %v4442_v34  ;;  %v3366_v11 = vadd.f32 %v3365_v19, %v3364_v46  ;;  %v3430_v1 = vadd.f32 %v3429_v38, %v3428_v60  ;;  %v4541_v23 = vadd.f32 %v3427_v13, %v4445_v3 }
 0x1c7   : > { %v4544_v15 = vadd.f32 %v3366_v11, %v4448_v33  ;;  %v4547_v44 = vadd.f32 %v3430_v1, %v4451_v63 }
 0x1c9   : > { %v3367_v62 = vpop.f32.mrb[104].mxu0  ;;  %v3431_v27 = vpop.f32.mrb[104].mxu1 }
 0x1ca   : > { %v3368_v51 = vpop.f32.mrb[105].mxu0  ;;  %v3432_v17 = vpop.f32.mrb[105].mxu1 }
 0x1cb   : > { %v3369_v37 = vadd.f32 %v3368_v51, %v3367_v62  ;;  %v3433_v47 = vadd.f32 %v3432_v17, %v3431_v27  ;;  %v3370_v54 = vpop.f32.mrb[106].mxu0  ;;  %v3434_v34 = vpop.f32.mrb[106].mxu1 }
 0x1cc   : > { %v3371_v49 = vpop.f32.mrb[107].mxu0  ;;  %v3435_v39 = vpop.f32.mrb[107].mxu1 }
 0x1cd   : > { %v4550_v43 = vadd.f32 %v3369_v37, %v4454_v41  ;;  %v3372_v3 = vadd.f32 %v3371_v49, %v3370_v54  ;;  %v3436_v10 = vadd.f32 %v3435_v39, %v3434_v34  ;;  %v4553_v33 = vadd.f32 %v3433_v47, %v4457_v14 }
 0x1cf   : > { %v4556_v63 = vadd.f32 %v3372_v3, %v4460_v56  ;;  %v4559_v58 = vadd.f32 %v3436_v10, %v4463_v4 }
 0x1d1   : > { %v3373_v55 = vpop.f32.mrb[108].mxu0  ;;  %v3437_v25 = vpop.f32.mrb[108].mxu1 }
 0x1d2   : > { %v3374_v45 = vpop.f32.mrb[109].mxu0  ;;  %v3438_v40 = vpop.f32.mrb[109].mxu1 }
 0x1d3   : > { %v3375_v2 = vadd.f32 %v3374_v45, %v3373_v55  ;;  %v3439_v8 = vadd.f32 %v3438_v40, %v3437_v25  ;;  %v3376_v41 = vpop.f32.mrb[110].mxu0  ;;  %v3440_v35 = vpop.f32.mrb[110].mxu1 }
 0x1d4   : > { %v3377_v42 = vpop.f32.mrb[111].mxu0  ;;  %v3441_v32 = vpop.f32.mrb[111].mxu1 }
 0x1d5   : > { %v4562_v14 = vadd.f32 %v3375_v2, %v4466_v22  ;;  %v3378_v13 = vadd.f32 %v3377_v42, %v3376_v41  ;;  %v3442_v56 = vadd.f32 %v3441_v32, %v3440_v35  ;;  %v4565_v46 = vadd.f32 %v3439_v8, %v4469_v53 }
 0x1d7   : > { %v4568_v4 = vadd.f32 %v3378_v13, %v4472_v12  ;;  %v4571_v60 = vadd.f32 %v3442_v56, %v4475_v61 }
 0x1d9   : > { %v3443_v19 = vpop.f32.mrb[112].mxu1  ;;  %v3533_v38 = vpop.f32.mrb[112].mxu0 }
 0x1da   : > { %v2308_v11 = vadd.f32 %v3533_v38, %v4493_v24  ;;  %v3444_v1 = vpop.f32.mrb[113].mxu1  ;;  %v2299_v62 = vpop.f32.mrb[113].mxu0 }
 0x1db   : > { %v3445_v22 = vadd.f32 %v3444_v1, %v3443_v19  ;;  %v2300_v27 = vadd.f32 %v2299_v62, %v4481_v7  ;;  %v3446_v51 = vpop.f32.mrb[114].mxu1  ;;  %v3534_v17 = vpop.f32.mrb[114].mxu0 }
 0x1dc   : > { %v2311_v53 = vadd.f32 %v3534_v17, %v4499_v5  ;;  %v3447_v37 = vpop.f32.mrb[115].mxu1  ;;  %v2302_v12 = vpop.f32.mrb[115].mxu0  ;;  %v2626_v3 = vmul.f32 %v2308_v11, %v2308_v11 }
 0x1dd   : > { %v3448_v61 = vadd.f32 %v3447_v37, %v3446_v51  ;;  %v2303_v24 = vadd.f32 %v2302_v12, %v4487_v50  ;;  %v4584_v47 = vadd.f32 %v3445_v22, %v4478_v28  ;;  %v2624_v7 = vmul.f32 %v2300_v27, %v2300_v27 }
 0x1de   : > { %v2956_v54 = vpack.c.bf16 %v2311_v53, %v2308_v11  ;;  %v2627_v40 = vmul.f32 %v2311_v53, %v2311_v53 }
 0x1df   : > { %v2951_v34 = vpack.c.bf16 %v2303_v24, %v2300_v27  ;;  %v2586_v49 = vadd.f32 %v2303_v24, %v2300_v27  ;;  %v2625_v5 = vmul.f32 %v2303_v24, %v2303_v24  ;;  %v4587_v39 = vadd.f32 %v3448_v61, %v4484_v16 }
 0x1e0   : > { %3028 = vst [vmem:[%s4580_s28 + $0x8] sm:$0xff] %v2956_v54  }
 0x1e1   : > { %2952 = vst [vmem:[%s4580_s28] sm:$0xff] %v2951_v34   ;;  %v2587_v10 = vadd.f32 %v2586_v49, %v2308_v11  ;;  %v2656_v55 = vadd.f32 %v2625_v5, %v2624_v7  ;;  %v3449_v25 = vpop.f32.mrb[116].mxu1  ;;  %v3537_v45 = vpop.f32.mrb[116].mxu0 }
 0x1e2   : > { %v2324_v50 = vadd.f32 %v3537_v45, %v4517_v0  ;;  %v3450_v28 = vpop.f32.mrb[117].mxu1  ;;  %v2315_v2 = vpop.f32.mrb[117].mxu0 }
 0x1e3   : > { %v2657_v8 = vadd.f32 %v2656_v55, %v2626_v3  ;;  %v3451_v41 = vadd.f32 %v3450_v28, %v3449_v25  ;;  %v2316_v35 = vadd.f32 %v2315_v2, %v4505_v57  ;;  %v2588_v42 = vadd.f32 %v2587_v10, %v2311_v53  ;;  %v3452_v16 = vpop.f32.mrb[118].mxu1  ;;  %v3538_v32 = vpop.f32.mrb[118].mxu0 }
 0x1e4   : > { %v2327_v13 = vadd.f32 %v3538_v32, %v4523_v26  ;;  %v3453_v56 = vpop.f32.mrb[119].mxu1  ;;  %v2318_v19 = vpop.f32.mrb[119].mxu0  ;;  %v2630_v61 = vmul.f32 %v2324_v50, %v2324_v50 }
 0x1e5   : > { %v2589_v38 = vadd.f32 %v2588_v42, %v2316_v35  ;;  %v2628_v11 = vmul.f32 %v2316_v35, %v2316_v35  ;;  %v2658_v1 = vadd.f32 %v2657_v8, %v2627_v40  ;;  %v3454_v62 = vadd.f32 %v3453_v56, %v3452_v16 }
 0x1e6   : > { %v2966_v0 = vpack.c.bf16 %v2327_v13, %v2324_v50  ;;  %v2319_v22 = vadd.f32 %v2318_v19, %v4511_v20  ;;  %v4596_v27 = vadd.f32 %v3451_v41, %v4490_v29  ;;  %v2631_v3 = vmul.f32 %v2327_v13, %v2327_v13 }
 0x1e7   : > { %v2659_v57 = vadd.f32 %v2658_v1, %v2628_v11  ;;  %v4599_v51 = vadd.f32 %v3454_v62, %v4496_v59 }
 0x1e8   : > { %3030 = vst [vmem:[%s4580_s28 + $0x18] sm:$0xff] %v2966_v0   ;;  %v2961_v17 = vpack.c.bf16 %v2319_v22, %v2316_v35  ;;  %v2590_v26 = vadd.f32 %v2589_v38, %v2319_v22  ;;  %v2629_v53 = vmul.f32 %v2319_v22, %v2319_v22 }
 0x1e9   : > { %v3455_v37 = vpop.f32.mrb[120].mxu1  ;;  %v3541_v12 = vpop.f32.mrb[120].mxu0 }
 0x1ea   : > { %3029 = vst [vmem:[%s4580_s28 + $0x10] sm:$0xff] %v2961_v17   ;;  %v2591_v24 = vadd.f32 %v2590_v26, %v2324_v50  ;;  %v2660_v7 = vadd.f32 %v2659_v57, %v2629_v53  ;;  %v2340_v54 = vadd.f32 %v3541_v12, %v4541_v23  ;;  %v3456_v20 = vpop.f32.mrb[121].mxu1  ;;  %v2331_v34 = vpop.f32.mrb[121].mxu0 }
 0x1eb   : > { %v3457_v29 = vadd.f32 %v3456_v20, %v3455_v37  ;;  %v2332_v49 = vadd.f32 %v2331_v34, %v4529_v36  ;;  %v3458_v5 = vpop.f32.mrb[122].mxu1  ;;  %v3542_v59 = vpop.f32.mrb[122].mxu0 }
 0x1ec   : > { %v2661_v10 = vadd.f32 %v2660_v7, %v2630_v61  ;;  %v2592_v55 = vadd.f32 %v2591_v24, %v2327_v13  ;;  %v2343_v25 = vadd.f32 %v3542_v59, %v4547_v44  ;;  %v3459_v45 = vpop.f32.mrb[123].mxu1  ;;  %v2334_v40 = vpop.f32.mrb[123].mxu0  ;;  %v2634_v19 = vmul.f32 %v2340_v54, %v2340_v54 }
 0x1ed   : > { %v2632_v50 = vmul.f32 %v2332_v49, %v2332_v49  ;;  %v3460_v28 = vadd.f32 %v3459_v45, %v3458_v5  ;;  %v2335_v23 = vadd.f32 %v2334_v40, %v4535_v21  ;;  %v4608_v2 = vadd.f32 %v3457_v29, %v4502_v30 }
 0x1ee   : > { %v2593_v8 = vadd.f32 %v2592_v55, %v2332_v49  ;;  %v2662_v36 = vadd.f32 %v2661_v10, %v2631_v3  ;;  %v2976_v41 = vpack.c.bf16 %v2343_v25, %v2340_v54 }
 0x1ef   : > { %v2971_v35 = vpack.c.bf16 %v2335_v23, %v2332_v49  ;;  %v2633_v42 = vmul.f32 %v2335_v23, %v2335_v23  ;;  %v4611_v16 = vadd.f32 %v3460_v28, %v4508_v6  ;;  %v2635_v6 = vmul.f32 %v2343_v25, %v2343_v25 }
 0x1f0   : > { %v2663_v32 = vadd.f32 %v2662_v36, %v2632_v50  ;;  %3032 = vst [vmem:[%s4580_s28 + $0x28] sm:$0xff] %v2976_v41   ;;  %v2594_v44 = vadd.f32 %v2593_v8, %v2335_v23 }
 0x1f1   : > { %3031 = vst [vmem:[%s4580_s28 + $0x20] sm:$0xff] %v2971_v35   ;;  %v3461_v13 = vpop.f32.mrb[124].mxu1  ;;  %v3545_v56 = vpop.f32.mrb[124].mxu0 }
 0x1f2   : > { %v2595_v38 = vadd.f32 %v2594_v44, %v2340_v54  ;;  %v2664_v21 = vadd.f32 %v2663_v32, %v2633_v42  ;;  %v2356_v30 = vadd.f32 %v3545_v56, %v4565_v46  ;;  %v3462_v11 = vpop.f32.mrb[125].mxu1  ;;  %v2347_v1 = vpop.f32.mrb[125].mxu0 }
 0x1f3   : > { %v3463_v62 = vadd.f32 %v3462_v11, %v3461_v13  ;;  %v2348_v0 = vadd.f32 %v2347_v1, %v4553_v33  ;;  %v3464_v22 = vpop.f32.mrb[126].mxu1  ;;  %v3546_v57 = vpop.f32.mrb[126].mxu0 }
 0x1f4   : > { %v2665_v17 = vadd.f32 %v2664_v21, %v2634_v19  ;;  %v2596_v26 = vadd.f32 %v2595_v38, %v2343_v25  ;;  %v2359_v53 = vadd.f32 %v3546_v57, %v4571_v60  ;;  %v3465_v37 = vpop.f32.mrb[127].mxu1  ;;  %v2350_v12 = vpop.f32.mrb[127].mxu0  ;;  %v2638_v10 = vmul.f32 %v2356_v30, %v2356_v30 }
 0x1f5   : > { %v2636_v61 = vmul.f32 %v2348_v0, %v2348_v0  ;;  %v3466_v24 = vadd.f32 %v3465_v37, %v3464_v22  ;;  %v2351_v46 = vadd.f32 %v2350_v12, %v4559_v58  ;;  %v2227_v7 = vadd.f32 %v3463_v62, %v4514_v18 }
 0x1f6   : > { %v2597_v54 = vadd.f32 %v2596_v26, %v2348_v0  ;;  %v2666_v20 = vadd.f32 %v2665_v17, %v2635_v6  ;;  %v2986_v33 = vpack.c.bf16 %v2359_v53, %v2356_v30  ;;  %v2639_v8 = vmul.f32 %v2359_v53, %v2359_v53 }
 0x1f7   : > { %v2981_v34 = vpack.c.bf16 %v2351_v46, %v2348_v0  ;;  %v2637_v29 = vmul.f32 %v2351_v46, %v2351_v46  ;;  %v2230_v49 = vadd.f32 %v3466_v24, %v4520_v48 }
 0x1f8   : > { %v2667_v5 = vadd.f32 %v2666_v20, %v2636_v61  ;;  %3034 = vst [vmem:[%s4580_s28 + $0x38] sm:$0xff] %v2986_v33   ;;  %v2598_v59 = vadd.f32 %v2597_v54, %v2351_v46 }
 0x1f9   : > { %3033 = vst [vmem:[%s4580_s28 + $0x30] sm:$0xff] %v2981_v34   ;;  %v3467_v60 = vpop.f32.mrb[128].mxu1  ;;  %v3549_v3 = vpop.f32.mrb[128].mxu0 }
 0x1fa   : > { %v2599_v55 = vadd.f32 %v2598_v59, %v2356_v30  ;;  %v2668_v25 = vadd.f32 %v2667_v5, %v2637_v29  ;;  %v2372_v58 = vadd.f32 %v3549_v3, %v4596_v27  ;;  %v3468_v45 = vpop.f32.mrb[129].mxu1  ;;  %v2363_v18 = vpop.f32.mrb[129].mxu0 }
 0x1fb   : > { %v3469_v40 = vadd.f32 %v3468_v45, %v3467_v60  ;;  %v2364_v50 = vadd.f32 %v2363_v18, %v4584_v47  ;;  %v3470_v28 = vpop.f32.mrb[130].mxu1  ;;  %v3550_v23 = vpop.f32.mrb[130].mxu0 }
 0x1fc   : > { %v2669_v48 = vadd.f32 %v2668_v25, %v2638_v10  ;;  %v2600_v36 = vadd.f32 %v2599_v55, %v2359_v53  ;;  %v2375_v41 = vadd.f32 %v3550_v23, %v4599_v51  ;;  %v3471_v35 = vpop.f32.mrb[131].mxu1  ;;  %v2366_v42 = vpop.f32.mrb[131].mxu0  ;;  %v2642_v0 = vmul.f32 %v2372_v58, %v2372_v58 }
 0x1fd   : > { %v2640_v32 = vmul.f32 %v2364_v50, %v2364_v50  ;;  %v3472_v44 = vadd.f32 %v3471_v35, %v3470_v28  ;;  %v2367_v27 = vadd.f32 %v2366_v42, %v4587_v39  ;;  %v2235_v13 = vadd.f32 %v3469_v40, %v4526_v52 }
 0x1fe   : > { %v2601_v56 = vadd.f32 %v2600_v36, %v2364_v50  ;;  %v2670_v19 = vadd.f32 %v2669_v48, %v2639_v8  ;;  %v2996_v47 = vpack.c.bf16 %v2375_v41, %v2372_v58  ;;  %v2643_v12 = vmul.f32 %v2375_v41, %v2375_v41 }
 0x1ff   : > { %v2991_v38 = vpack.c.bf16 %v2367_v27, %v2364_v50  ;;  %v2641_v21 = vmul.f32 %v2367_v27, %v2367_v27  ;;  %v2238_v30 = vadd.f32 %v3472_v44, %v4532_v31 }
 0x200   : > { %v2671_v11 = vadd.f32 %v2670_v19, %v2640_v32  ;;  %3036 = vst [vmem:[%s4580_s28 + $0x48] sm:$0xff] %v2996_v47   ;;  %v2602_v1 = vadd.f32 %v2601_v56, %v2367_v27 }
 0x201   : > { %3035 = vst [vmem:[%s4580_s28 + $0x40] sm:$0xff] %v2991_v38   ;;  %v3473_v51 = vpop.f32.mrb[132].mxu1  ;;  %v3553_v62 = vpop.f32.mrb[132].mxu0 }
 0x202   : > { %v2603_v22 = vadd.f32 %v2602_v1, %v2372_v58  ;;  %v2672_v57 = vadd.f32 %v2671_v11, %v2641_v21  ;;  %v2388_v6 = vadd.f32 %v3553_v62, %v2227_v7  ;;  %v3474_v39 = vpop.f32.mrb[133].mxu1  ;;  %v2379_v17 = vpop.f32.mrb[133].mxu0 }
 0x203   : > { %v3475_v52 = vadd.f32 %v3474_v39, %v3473_v51  ;;  %v2380_v26 = vadd.f32 %v2379_v17, %v4608_v2  ;;  %v3476_v53 = vpop.f32.mrb[134].mxu1  ;;  %v3554_v37 = vpop.f32.mrb[134].mxu0 }
 0x204   : > { %v2673_v61 = vadd.f32 %v2672_v57, %v2642_v0  ;;  %v2604_v31 = vadd.f32 %v2603_v22, %v2375_v41  ;;  %v2391_v24 = vadd.f32 %v3554_v37, %v2230_v49  ;;  %v3477_v46 = vpop.f32.mrb[135].mxu1  ;;  %v2382_v54 = vpop.f32.mrb[135].mxu0  ;;  %v2646_v58 = vmul.f32 %v2388_v6, %v2388_v6 }
 0x205   : > { %v2644_v20 = vmul.f32 %v2380_v26, %v2380_v26  ;;  %v3478_v33 = vadd.f32 %v3477_v46, %v3476_v53  ;;  %v2383_v34 = vadd.f32 %v2382_v54, %v4611_v16  ;;  %v2243_v7 = vadd.f32 %v3475_v52, %v4538_v9 }
 0x206   : > { %v2605_v29 = vadd.f32 %v2604_v31, %v2380_v26  ;;  %v2674_v5 = vadd.f32 %v2673_v61, %v2643_v12  ;;  %v3006_v59 = vpack.c.bf16 %v2391_v24, %v2388_v6  ;;  %v2647_v48 = vmul.f32 %v2391_v24, %v2391_v24 }
 0x207   : > { %v3001_v2 = vpack.c.bf16 %v2383_v34, %v2380_v26  ;;  %v2645_v60 = vmul.f32 %v2383_v34, %v2383_v34  ;;  %v2246_v3 = vadd.f32 %v3478_v33, %v4544_v15 }
 0x208   : > { %v2675_v10 = vadd.f32 %v2674_v5, %v2644_v20  ;;  %3038 = vst [vmem:[%s4580_s28 + $0x58] sm:$0xff] %v3006_v59   ;;  %v2606_v55 = vadd.f32 %v2605_v29, %v2383_v34 }
 0x209   : > { %3037 = vst [vmem:[%s4580_s28 + $0x50] sm:$0xff] %v3001_v2   ;;  %v3479_v49 = vpop.f32.mrb[136].mxu1  ;;  %v3557_v25 = vpop.f32.mrb[136].mxu0 }
 0x20a   : > { %v2607_v45 = vadd.f32 %v2606_v55, %v2388_v6  ;;  %v2676_v18 = vadd.f32 %v2675_v10, %v2645_v60  ;;  %v2404_v40 = vadd.f32 %v3557_v25, %v2243_v7  ;;  %v3480_v16 = vpop.f32.mrb[137].mxu1  ;;  %v2395_v50 = vpop.f32.mrb[137].mxu0 }
 0x20b   : > { %v3481_v9 = vadd.f32 %v3480_v16, %v3479_v49  ;;  %v2396_v28 = vadd.f32 %v2395_v50, %v2235_v13  ;;  %v3482_v23 = vpop.f32.mrb[138].mxu1  ;;  %v3558_v8 = vpop.f32.mrb[138].mxu0 }
 0x20c   : > { %v2677_v36 = vadd.f32 %v2676_v18, %v2646_v58  ;;  %v2608_v15 = vadd.f32 %v2607_v45, %v2391_v24  ;;  %v2407_v41 = vadd.f32 %v3558_v8, %v2246_v3  ;;  %v3483_v35 = vpop.f32.mrb[139].mxu1  ;;  %v2398_v42 = vpop.f32.mrb[139].mxu0  ;;  %v2650_v22 = vmul.f32 %v2404_v40, %v2404_v40 }
 0x20d   : > { %v2648_v32 = vmul.f32 %v2396_v28, %v2396_v28  ;;  %v3484_v44 = vadd.f32 %v3483_v35, %v3482_v23  ;;  %v2399_v27 = vadd.f32 %v2398_v42, %v2238_v30  ;;  %v2251_v56 = vadd.f32 %v3481_v9, %v4550_v43 }
 0x20e   : > { %v2609_v19 = vadd.f32 %v2608_v15, %v2396_v28  ;;  %v2678_v47 = vadd.f32 %v2677_v36, %v2647_v48  ;;  %v3016_v38 = vpack.c.bf16 %v2407_v41, %v2404_v40  ;;  %v2651_v53 = vmul.f32 %v2407_v41, %v2407_v41 }
 0x20f   : > { %v3011_v21 = vpack.c.bf16 %v2399_v27, %v2396_v28  ;;  %v2649_v13 = vmul.f32 %v2399_v27, %v2399_v27  ;;  %v2254_v11 = vadd.f32 %v3484_v44, %v4556_v63 }
 0x210   : > { %v2679_v1 = vadd.f32 %v2678_v47, %v2648_v32  ;;  %3040 = vst [vmem:[%s4580_s28 + $0x68] sm:$0xff] %v3016_v38   ;;  %v2610_v51 = vadd.f32 %v2609_v19, %v2399_v27 }
 0x211   : > { %3039 = vst [vmem:[%s4580_s28 + $0x60] sm:$0xff] %v3011_v21   ;;  %v3485_v62 = vpop.f32.mrb[140].mxu1  ;;  %v3561_v0 = vpop.f32.mrb[140].mxu0 }
 0x212   : > { %v2611_v57 = vadd.f32 %v2610_v51, %v2404_v40  ;;  %v2680_v6 = vadd.f32 %v2679_v1, %v2649_v13  ;;  %v3486_v39 = vpop.f32.mrb[141].mxu1  ;;  %v2411_v30 = vpop.f32.mrb[141].mxu0 }
 0x213   : > { %v3487_v17 = vadd.f32 %v3486_v39, %v3485_v62  ;;  %v2412_v43 = vadd.f32 %v2411_v30, %v2251_v56  ;;  %v3488_v52 = vpop.f32.mrb[142].mxu1  ;;  %v3562_v26 = vpop.f32.mrb[142].mxu0 }
 0x214   : > { %v2681_v37 = vadd.f32 %v2680_v6, %v2650_v22  ;;  %v2612_v12 = vadd.f32 %v2611_v57, %v2407_v41  ;;  %v3489_v61 = vpop.f32.mrb[143].mxu1  ;;  %v2414_v63 = vpop.f32.mrb[143].mxu0 }
 0x215   : > { %v2259_v31 = vadd.f32 %v3487_v17, %v4562_v14  ;;  %v2652_v24 = vmul.f32 %v2412_v43, %v2412_v43  ;;  %v3490_v46 = vadd.f32 %v3489_v61, %v3488_v52  ;;  %v2415_v54 = vadd.f32 %v2414_v63, %v2254_v11 }
 0x216   : > { %v2613_v20 = vadd.f32 %v2612_v12, %v2412_v43  ;;  %v2682_v33 = vadd.f32 %v2681_v37, %v2651_v53 }
 0x217   : > { %v2420_v34 = vadd.f32 %v3561_v0, %v2259_v31  ;;  %v2262_v7 = vadd.f32 %v3490_v46, %v4568_v4  ;;  %v3021_v29 = vpack.c.bf16 %v2415_v54, %v2412_v43  ;;  %v2653_v5 = vmul.f32 %v2415_v54, %v2415_v54 }
 0x218   : > { %v2683_v59 = vadd.f32 %v2682_v33, %v2652_v24  ;;  %v2614_v2 = vadd.f32 %v2613_v20, %v2415_v54 }
 0x219   : > { %v2654_v60 = vmul.f32 %v2420_v34, %v2420_v34  ;;  %v2423_v3 = vadd.f32 %v3562_v26, %v2262_v7  ;;  %3041 = vst [vmem:[%s4580_s28 + $0x70] sm:$0xff] %v3021_v29  }
 0x21a   : > { %v2615_v10 = vadd.f32 %v2614_v2, %v2420_v34  ;;  %v2684_v55 = vadd.f32 %v2683_v59, %v2653_v5 }
 0x21b   : > { %v3026_v14 = vpack.c.bf16 %v2423_v3, %v2420_v34  ;;  %v2655_v49 = vmul.f32 %v2423_v3, %v2423_v3 }
 0x21c   : > { %v2616_v25 = vadd.f32 %v2615_v10, %v2423_v3  ;;  %v2685_v58 = vadd.f32 %v2684_v55, %v2654_v60 }
 0x21d   : > { %3042 = vst [vmem:[%s4580_s28 + $0x78] sm:$0xff] %v3026_v14  }
 0x21e   : > { %v2617_v45 = vrot.slane %v2616_v25, 4  ;;  %v2686_v18 = vadd.f32 %v2685_v58, %v2655_v49 }
 0x220   : > { %v2618_v40 = vadd.f32 %v2617_v45, %v2616_v25  ;;  %v2687_v4 = vrot.slane %v2686_v18, 4 }
 0x222   : > { %v2619_v16 = vrot.slane %v2618_v40, 2  ;;  %v2688_v50 = vadd.f32 %v2687_v4, %v2686_v18 }
 0x224   : > { %v2620_v9 = vadd.f32 %v2619_v16, %v2618_v40  ;;  %v2689_v28 = vrot.slane %v2688_v50, 2 }
 0x226   : > { %v2621_v23 = vrot.slane %v2620_v9, 1  ;;  %v2690_v8 = vadd.f32 %v2689_v28, %v2688_v50 }
 0x228   : > { %v2622_v48 = vadd.f32 %v2621_v23, %v2620_v9  ;;  %v2691_v36 = vrot.slane %v2690_v8, 1 }
 0x22a   : > { %2623 = vst [vmem:[%s211_s5] sm:$0x1] %v2622_v48  ;;  %v2692_v15 = vadd.f32 %v2691_v36, %v2690_v8 }
 0x22c   : > { %2693 = vst [vmem:[%s214_s8] sm:$0x1] %v2692_v15 }
 0x22d PF: > { %s15_s15 = sadd.s32 1, %s3667_s15  }
 0x22e   : > { %p12_p4 = scmp.ge.s32.totalorder %s15_s15, 4  }
 0x230   :  { %14 = sbr.rel (!%p12_p4) target bundleno = 1 (0x1), region = 85 }

</bundles_post_ra>
